<compile_context>
chip_gen: v5e
topology: v5e:2x2
jax: 0.10.0
libtpu: 0.0.40
codegen_flags: <defaults>
</compile_context>

<pallas_src>
import functools

import jax
import jax.numpy as jnp
from jax import lax
from jax.experimental import pallas as pl
from jax.experimental.pallas import tpu as pltpu


# ----------------------------------------------------------------------------
# Fused Pallas kernel: conv1 -> conv2 -> (flatten) -> fc1 -> fc2 -> output
# ----------------------------------------------------------------------------
def _fused_forward_kernel(p1_ref, w1_ref, b1_ref, w2_ref, b2_ref,
                          fc1w_ref, fc1b_ref, fc2w_ref, fc2b_ref,
                          ow_ref, ob_ref, o_ref, h1_ref, *, tb):
    """One batch block of tb samples.

    p1_ref : (60*tb, 9)     conv1 im2col patches, rows ordered (i1, j1, n)
    w1_ref : (9, 32)        conv1 weight          b1_ref : (1, 32)
    w2_ref : (9, 32, 32)    conv2 weight per tap  b2_ref : (1, 32)
    fc1w_ref: (32, 32, 128) fc1 weight as [pos r=(i*8+j), in-channel, out]
    fc2w_ref: (128, 128)    ow_ref: (128, 128) zero-padded   o_ref: (tb, 128)
    h1_ref : VMEM scratch (60*tb, 32) for the conv1 output
    """
    f32 = jnp.float32
    w1 = w1_ref[...]                    # (9, 32)   hoisted ref reads
    b1 = b1_ref[...]                    # (1, 32)
    b2 = b2_ref[...]                    # (1, 32)

    band = 10 * tb                      # rows of one conv1 output row i1

    # ---- conv1: im2col matmul + bias + ReLU, staged per row band into VMEM --
    for i1 in range(6):
        lo, hi = i1 * band, (i1 + 1) * band
        h = jnp.dot(p1_ref[lo:hi, :], w1, preferred_element_type=f32)
        h1_ref[lo:hi, :] = jnp.maximum(h + b1, 0.0)          # rows (i1, j1, n)

    # ---- conv2 (+ReLU) fused with flatten + fc1 -----------------------------
    # conv2 output row i is handled as an (8*tb, 32) slab with rows (j, n);
    # each (j)-group of tb rows is one flatten position r=(i*8+j) feeding fc1.
    acc1 = jnp.zeros((tb, 128), f32)                         # fc1 accumulator
    for i in range(4):
        acc_i = jnp.zeros((8 * tb, 32), f32)
        for ki in range(3):
            for kj in range(3):
                row0 = ((i + ki) * 10 + kj) * tb             # multiple of 8
                sub = h1_ref[row0:row0 + 8 * tb, :]          # (8*tb, 32), free slice
                acc_i = acc_i + jnp.dot(sub, w2_ref[ki * 3 + kj],
                                        preferred_element_type=f32)
        h2_i = jnp.maximum(acc_i + b2, 0.0)                  # (8*tb, 32)
        for j in range(8):
            r = i * 8 + j                                    # NCHW order absorbed
            acc1 = acc1 + jnp.dot(h2_i[j * tb:(j + 1) * tb, :], fc1w_ref[r],
                                  preferred_element_type=f32)

    # ---- fc1 epilogue, fc2, output (lane-dense 128-wide store) --------------
    h = jnp.maximum(acc1 + fc1b_ref[...], 0.0)               # (tb, 128)
    h = jnp.dot(h, fc2w_ref[...], preferred_element_type=f32)
    h = jnp.maximum(h + fc2b_ref[...], 0.0)
    o = jnp.dot(h, ow_ref[...], preferred_element_type=f32)
    o_ref[...] = (o + ob_ref[...]).astype(o_ref.dtype)       # (tb, 128)


# ----------------------------------------------------------------------------
# Wrapper
# ----------------------------------------------------------------------------
def mlmodel_forward(x, params, *, tb=None):
    """x: (N, 8, 12) float32 -> (N, 5) float32."""
    N = x.shape[0]
    if tb is None:
        # Bigger batch blocks -> bigger MXU matmuls, but never over-pad tiny N.
        tb = max(8, min(64, ((N + 7) // 8) * 8))
    assert tb % 8 == 0
    n_blocks = pl.cdiv(N, tb)
    n_pad = n_blocks * tb
    if n_pad != N:
        x = jnp.pad(x, ((0, n_pad - N), (0, 0), (0, 0)))

    # conv1 im2col on the raw input (the only XLA glue), rows ordered
    # (block, i1, j1, n_in_block) so the kernel never needs a reshape.
    cols = [x[:, ki:ki + 6, kj:kj + 10] for ki in range(3) for kj in range(3)]
    p1 = jnp.stack(cols, axis=-1)                        # (n_pad, 6, 10, 9)
    p1 = p1.reshape(n_blocks, tb, 60, 9)
    p1 = jnp.transpose(p1, (0, 2, 1, 3)).reshape(n_blocks * 60 * tb, 9)

    # One-time parameter prep (constant-folded under jit).
    w1r = params["w1"].reshape(9, 32)                    # (3,3,1,32) -> (9,32)
    b1r = params["b1"].reshape(1, 32)
    w2r = params["w2"].reshape(9, 32, 32)                # tap t = ki*3+kj
    b2r = params["b2"].reshape(1, 32)
    # Absorb PyTorch's NCHW flatten: fc1w row index = c*32 + (i*8+j); rearrange
    # to [position r=(i*8+j), channel c, out].
    fc1w_r = jnp.transpose(params["fc1w"].reshape(32, 32, 128), (1, 0, 2))
    fc1b_r = params["fc1b"].reshape(1, 128)
    fc2w = params["fc2w"]
    fc2b_r = params["fc2b"].reshape(1, 128)
    # Lane-dense output: pad (128, 5) -> (128, 128).
    ow_pad = jnp.zeros((128, 128), jnp.float32).at[:, :5].set(params["ow"])
    ob_pad = jnp.zeros((1, 128), jnp.float32).at[0, :5].set(params["ob"])

    def full_spec(a):
        nd = a.ndim
        return pl.BlockSpec(a.shape, lambda b: (0,) * nd)

    flops_per_sample = 2 * (60 * 9 * 32 + 32 * 9 * 32 * 32
                            + 1024 * 128 + 128 * 128 + 128 * 128)
    param_bytes = 4 * (w1r.size + b1r.size + w2r.size + b2r.size + fc1w_r.size
                       + fc1b_r.size + fc2w.size + fc2b_r.size
                       + ow_pad.size + ob_pad.size)
    cost = pl.CostEstimate(
        flops=int(n_pad * flops_per_sample),
        transcendentals=0,
        bytes_accessed=int(p1.size * 4 + param_bytes + n_pad * 128 * 4))

    out = pl.pallas_call(
        functools.partial(_fused_forward_kernel, tb=tb),
        out_shape=jax.ShapeDtypeStruct((n_pad, 128), jnp.float32),
        grid=(n_blocks,),
        in_specs=[
            pl.BlockSpec((60 * tb, 9), lambda b: (b, 0)),   # conv1 patches
            full_spec(w1r), full_spec(b1r), full_spec(w2r), full_spec(b2r),
            full_spec(fc1w_r), full_spec(fc1b_r), full_spec(fc2w),
            full_spec(fc2b_r), full_spec(ow_pad), full_spec(ob_pad),
        ],
        out_specs=pl.BlockSpec((tb, 128), lambda b: (b, 0)),
        scratch_shapes=[pltpu.VMEM((60 * tb, 32), jnp.float32)],
        compiler_params=pltpu.CompilerParams(
            dimension_semantics=("parallel",)),
        cost_estimate=cost,
    )(p1, w1r, b1r, w2r, b2r, fc1w_r, fc1b_r, fc2w, fc2b_r, ow_pad, ob_pad)

    return out[:N, :5]


# ----------------------------------------------------------------------------
# Pure-JAX reference (NCHW, mirrors the PyTorch forward exactly)
# ----------------------------------------------------------------------------
def reference_forward(x, p):
    h = x[:, None, :, :]                                # (N,1,8,12) NCHW
    for w, b in ((p["w1"], p["b1"]), (p["w2"], p["b2"])):
        w_oihw = jnp.transpose(w, (3, 2, 0, 1))
        h = lax.conv_general_dilated(h, w_oihw, (1, 1), "VALID")
        h = jax.nn.relu(h + b.reshape(1, -1, 1, 1))
    h = h.reshape(h.shape[0], -1)
    h = jax.nn.relu(h @ p["fc1w"] + p["fc1b"])
    h = jax.nn.relu(h @ p["fc2w"] + p["fc2b"])
    return h @ p["ow"] + p["ob"]


# ----------------------------------------------------------------------------
def make_params(key):
    ks = jax.random.split(key, 10)
    s = 0.1
    return {
        "w1": s * jax.random.normal(ks[0], (3, 3, 1, 32), jnp.float32),
        "b1": s * jax.random.normal(ks[1], (32,), jnp.float32),
        "w2": s * jax.random.normal(ks[2], (3, 3, 32, 32), jnp.float32),
        "b2": s * jax.random.normal(ks[3], (32,), jnp.float32),
        "fc1w": s * jax.random.normal(ks[4], (1024, 128), jnp.float32),
        "fc1b": s * jax.random.normal(ks[5], (128,), jnp.float32),
        "fc2w": s * jax.random.normal(ks[6], (128, 128), jnp.float32),
        "fc2b": s * jax.random.normal(ks[7], (128,), jnp.float32),
        "ow": s * jax.random.normal(ks[8], (128, 5), jnp.float32),
        "ob": s * jax.random.normal(ks[9], (5,), jnp.float32),
    }


if __name__ == "__main__":
    key = jax.random.PRNGKey(0)
    pkey, xkey = jax.random.split(key)
    params = make_params(pkey)

    # Forward takes (batch, 8, 12); the module unsqueezes a channel dim (C=1).
    x = jax.random.normal(xkey, (2, 8, 12), jnp.float32)

    fwd = jax.jit(mlmodel_forward)
    out = jax.block_until_ready(fwd(x, params))
    ref = jax.block_until_ready(reference_forward(x, params))

    assert out.shape == (2, 5)
    assert jnp.allclose(out, ref, atol=1e-4, rtol=1e-4), (out, ref)
    print("KERNEL_OK")
</pallas_src>

<mosaic_0001>
module attributes {stable_mosaic.version = 11 : i64} {
  func.func @_fused_forward_kernel(%arg0: i32, %arg1: memref<480x9xf32, #tpu.memory_space<vmem>>, %arg2: memref<9x32xf32, #tpu.memory_space<vmem>>, %arg3: memref<1x32xf32, #tpu.memory_space<vmem>>, %arg4: memref<9x32x32xf32, #tpu.memory_space<vmem>>, %arg5: memref<1x32xf32, #tpu.memory_space<vmem>>, %arg6: memref<32x32x128xf32, #tpu.memory_space<vmem>>, %arg7: memref<1x128xf32, #tpu.memory_space<vmem>>, %arg8: memref<128x128xf32, #tpu.memory_space<vmem>>, %arg9: memref<1x128xf32, #tpu.memory_space<vmem>>, %arg10: memref<128x128xf32, #tpu.memory_space<vmem>>, %arg11: memref<1x128xf32, #tpu.memory_space<vmem>>, %arg12: memref<8x128xf32, #tpu.memory_space<vmem>>, %arg13: memref<480x32xf32, #tpu.memory_space<vmem>>) attributes {dimension_semantics = [#tpu.dimension_semantics<parallel>], iteration_bounds = array<i64: 1>, scalar_prefetch = 0 : i64, scratch_operands = 1 : i64, tpu.core_type = #tpu.core_type<tc>, window_params = [{transform_indices = @transform_0, window_bounds = array<i64: 480, 9>}, {pipeline_mode = #tpu.pipeline_mode<synchronous>, transform_indices = @transform_1, window_bounds = array<i64: 9, 32>}, {pipeline_mode = #tpu.pipeline_mode<synchronous>, transform_indices = @transform_2, window_bounds = array<i64: 1, 32>}, {pipeline_mode = #tpu.pipeline_mode<synchronous>, transform_indices = @transform_3, window_bounds = array<i64: 9, 32, 32>}, {pipeline_mode = #tpu.pipeline_mode<synchronous>, transform_indices = @transform_4, window_bounds = array<i64: 1, 32>}, {pipeline_mode = #tpu.pipeline_mode<synchronous>, transform_indices = @transform_5, window_bounds = array<i64: 32, 32, 128>}, {pipeline_mode = #tpu.pipeline_mode<synchronous>, transform_indices = @transform_6, window_bounds = array<i64: 1, 128>}, {pipeline_mode = #tpu.pipeline_mode<synchronous>, transform_indices = @transform_7, window_bounds = array<i64: 128, 128>}, {pipeline_mode = #tpu.pipeline_mode<synchronous>, transform_indices = @transform_8, window_bounds = array<i64: 1, 128>}, {pipeline_mode = #tpu.pipeline_mode<synchronous>, transform_indices = @transform_9, window_bounds = array<i64: 128, 128>}, {pipeline_mode = #tpu.pipeline_mode<synchronous>, transform_indices = @transform_10, window_bounds = array<i64: 1, 128>}, {transform_indices = @transform_11, window_bounds = array<i64: 8, 128>}]} {
    %c0 = arith.constant 0 : index
    %c0_0 = arith.constant 0 : index
    %0 = vector.load %arg2[%c0, %c0_0] : memref<9x32xf32, #tpu.memory_space<vmem>>, vector<9x32xf32>
    %c0_1 = arith.constant 0 : index
    %c0_2 = arith.constant 0 : index
    %1 = vector.load %arg3[%c0_1, %c0_2] : memref<1x32xf32, #tpu.memory_space<vmem>>, vector<1x32xf32>
    %c0_3 = arith.constant 0 : index
    %c0_4 = arith.constant 0 : index
    %2 = vector.load %arg5[%c0_3, %c0_4] : memref<1x32xf32, #tpu.memory_space<vmem>>, vector<1x32xf32>
    %c0_5 = arith.constant 0 : index
    %c0_6 = arith.constant 0 : index
    %3 = vector.load %arg1[%c0_5, %c0_6] : memref<480x9xf32, #tpu.memory_space<vmem>>, vector<80x9xf32>
    %cst = arith.constant dense<0.000000e+00> : vector<80x32xf32>
    %4 = tpu.matmul %3, %0, %cst {dimension_numbers = #tpu.dot_dimension_numbers<[1], [0], [0], [1], [0, 0, 1, 1], [], []>} : vector<80x9xf32>, vector<9x32xf32>, vector<80x32xf32> -> vector<80x32xf32>
    %5 = vector.broadcast %1 : vector<1x32xf32> to vector<80x32xf32>
    %6 = arith.addf %4, %5 : vector<80x32xf32>
    %cst_7 = arith.constant 0.000000e+00 : f32
    %7 = vector.broadcast %cst_7 : f32 to vector<80x32xf32>
    %8 = arith.maximumf %6, %7 : vector<80x32xf32>
    %c0_8 = arith.constant 0 : index
    %c0_9 = arith.constant 0 : index
    %9 = vector.load %arg13[%c0_8, %c0_9] : memref<480x32xf32, #tpu.memory_space<vmem>>, vector<80x32xf32>
    tpu.vector_store %arg13[%c0_8, %c0_9], %8 {strides = array<i32>} : memref<480x32xf32, #tpu.memory_space<vmem>>, vector<80x32xf32>,
    %c80 = arith.constant 80 : index
    %c0_10 = arith.constant 0 : index
    %10 = vector.load %arg1[%c80, %c0_10] : memref<480x9xf32, #tpu.memory_space<vmem>>, vector<80x9xf32>
    %cst_11 = arith.constant dense<0.000000e+00> : vector<80x32xf32>
    %11 = tpu.matmul %10, %0, %cst_11 {dimension_numbers = #tpu.dot_dimension_numbers<[1], [0], [0], [1], [0, 0, 1, 1], [], []>} : vector<80x9xf32>, vector<9x32xf32>, vector<80x32xf32> -> vector<80x32xf32>
    %12 = vector.broadcast %1 : vector<1x32xf32> to vector<80x32xf32>
    %13 = arith.addf %11, %12 : vector<80x32xf32>
    %cst_12 = arith.constant 0.000000e+00 : f32
    %14 = vector.broadcast %cst_12 : f32 to vector<80x32xf32>
    %15 = arith.maximumf %13, %14 : vector<80x32xf32>
    %c80_13 = arith.constant 80 : index
    %c0_14 = arith.constant 0 : index
    %16 = vector.load %arg13[%c80_13, %c0_14] : memref<480x32xf32, #tpu.memory_space<vmem>>, vector<80x32xf32>
    tpu.vector_store %arg13[%c80_13, %c0_14], %15 {strides = array<i32>} : memref<480x32xf32, #tpu.memory_space<vmem>>, vector<80x32xf32>,
    %c160 = arith.constant 160 : index
    %c0_15 = arith.constant 0 : index
    %17 = vector.load %arg1[%c160, %c0_15] : memref<480x9xf32, #tpu.memory_space<vmem>>, vector<80x9xf32>
    %cst_16 = arith.constant dense<0.000000e+00> : vector<80x32xf32>
    %18 = tpu.matmul %17, %0, %cst_16 {dimension_numbers = #tpu.dot_dimension_numbers<[1], [0], [0], [1], [0, 0, 1, 1], [], []>} : vector<80x9xf32>, vector<9x32xf32>, vector<80x32xf32> -> vector<80x32xf32>
    %19 = vector.broadcast %1 : vector<1x32xf32> to vector<80x32xf32>
    %20 = arith.addf %18, %19 : vector<80x32xf32>
    %cst_17 = arith.constant 0.000000e+00 : f32
    %21 = vector.broadcast %cst_17 : f32 to vector<80x32xf32>
    %22 = arith.maximumf %20, %21 : vector<80x32xf32>
    %c160_18 = arith.constant 160 : index
    %c0_19 = arith.constant 0 : index
    %23 = vector.load %arg13[%c160_18, %c0_19] : memref<480x32xf32, #tpu.memory_space<vmem>>, vector<80x32xf32>
    tpu.vector_store %arg13[%c160_18, %c0_19], %22 {strides = array<i32>} : memref<480x32xf32, #tpu.memory_space<vmem>>, vector<80x32xf32>,
    %c240 = arith.constant 240 : index
    %c0_20 = arith.constant 0 : index
    %24 = vector.load %arg1[%c240, %c0_20] : memref<480x9xf32, #tpu.memory_space<vmem>>, vector<80x9xf32>
    %cst_21 = arith.constant dense<0.000000e+00> : vector<80x32xf32>
    %25 = tpu.matmul %24, %0, %cst_21 {dimension_numbers = #tpu.dot_dimension_numbers<[1], [0], [0], [1], [0, 0, 1, 1], [], []>} : vector<80x9xf32>, vector<9x32xf32>, vector<80x32xf32> -> vector<80x32xf32>
    %26 = vector.broadcast %1 : vector<1x32xf32> to vector<80x32xf32>
    %27 = arith.addf %25, %26 : vector<80x32xf32>
    %cst_22 = arith.constant 0.000000e+00 : f32
    %28 = vector.broadcast %cst_22 : f32 to vector<80x32xf32>
    %29 = arith.maximumf %27, %28 : vector<80x32xf32>
    %c240_23 = arith.constant 240 : index
    %c0_24 = arith.constant 0 : index
    %30 = vector.load %arg13[%c240_23, %c0_24] : memref<480x32xf32, #tpu.memory_space<vmem>>, vector<80x32xf32>
    tpu.vector_store %arg13[%c240_23, %c0_24], %29 {strides = array<i32>} : memref<480x32xf32, #tpu.memory_space<vmem>>, vector<80x32xf32>,
    %c320 = arith.constant 320 : index
    %c0_25 = arith.constant 0 : index
    %31 = vector.load %arg1[%c320, %c0_25] : memref<480x9xf32, #tpu.memory_space<vmem>>, vector<80x9xf32>
    %cst_26 = arith.constant dense<0.000000e+00> : vector<80x32xf32>
    %32 = tpu.matmul %31, %0, %cst_26 {dimension_numbers = #tpu.dot_dimension_numbers<[1], [0], [0], [1], [0, 0, 1, 1], [], []>} : vector<80x9xf32>, vector<9x32xf32>, vector<80x32xf32> -> vector<80x32xf32>
    %33 = vector.broadcast %1 : vector<1x32xf32> to vector<80x32xf32>
    %34 = arith.addf %32, %33 : vector<80x32xf32>
    %cst_27 = arith.constant 0.000000e+00 : f32
    %35 = vector.broadcast %cst_27 : f32 to vector<80x32xf32>
    %36 = arith.maximumf %34, %35 : vector<80x32xf32>
    %c320_28 = arith.constant 320 : index
    %c0_29 = arith.constant 0 : index
    %37 = vector.load %arg13[%c320_28, %c0_29] : memref<480x32xf32, #tpu.memory_space<vmem>>, vector<80x32xf32>
    tpu.vector_store %arg13[%c320_28, %c0_29], %36 {strides = array<i32>} : memref<480x32xf32, #tpu.memory_space<vmem>>, vector<80x32xf32>,
    %c400 = arith.constant 400 : index
    %c0_30 = arith.constant 0 : index
    %38 = vector.load %arg1[%c400, %c0_30] : memref<480x9xf32, #tpu.memory_space<vmem>>, vector<80x9xf32>
    %cst_31 = arith.constant dense<0.000000e+00> : vector<80x32xf32>
    %39 = tpu.matmul %38, %0, %cst_31 {dimension_numbers = #tpu.dot_dimension_numbers<[1], [0], [0], [1], [0, 0, 1, 1], [], []>} : vector<80x9xf32>, vector<9x32xf32>, vector<80x32xf32> -> vector<80x32xf32>
    %40 = vector.broadcast %1 : vector<1x32xf32> to vector<80x32xf32>
    %41 = arith.addf %39, %40 : vector<80x32xf32>
    %cst_32 = arith.constant 0.000000e+00 : f32
    %42 = vector.broadcast %cst_32 : f32 to vector<80x32xf32>
    %43 = arith.maximumf %41, %42 : vector<80x32xf32>
    %c400_33 = arith.constant 400 : index
    %c0_34 = arith.constant 0 : index
    %44 = vector.load %arg13[%c400_33, %c0_34] : memref<480x32xf32, #tpu.memory_space<vmem>>, vector<80x32xf32>
    tpu.vector_store %arg13[%c400_33, %c0_34], %43 {strides = array<i32>} : memref<480x32xf32, #tpu.memory_space<vmem>>, vector<80x32xf32>,
    %cst_35 = arith.constant 0.000000e+00 : f32
    %45 = vector.broadcast %cst_35 : f32 to vector<8x128xf32>
    %cst_36 = arith.constant 0.000000e+00 : f32
    %46 = vector.broadcast %cst_36 : f32 to vector<64x32xf32>
    %c0_37 = arith.constant 0 : index
    %c0_38 = arith.constant 0 : index
    %47 = vector.load %arg13[%c0_37, %c0_38] : memref<480x32xf32, #tpu.memory_space<vmem>>, vector<64x32xf32>
    %c0_39 = arith.constant 0 : index
    %c0_40 = arith.constant 0 : index
    %c0_41 = arith.constant 0 : index
    %48 = vector.load %arg4[%c0_39, %c0_40, %c0_41] : memref<9x32x32xf32, #tpu.memory_space<vmem>>, vector<1x32x32xf32>
    %49 = vector.shape_cast %48 : vector<1x32x32xf32> to vector<32x32xf32>
    %cst_42 = arith.constant dense<0.000000e+00> : vector<64x32xf32>
    %50 = tpu.matmul %47, %49, %cst_42 {dimension_numbers = #tpu.dot_dimension_numbers<[1], [0], [0], [1], [0, 0, 1, 1], [], []>} : vector<64x32xf32>, vector<32x32xf32>, vector<64x32xf32> -> vector<64x32xf32>
    %51 = arith.addf %46, %50 : vector<64x32xf32>
    %c8 = arith.constant 8 : index
    %c0_43 = arith.constant 0 : index
    %52 = vector.load %arg13[%c8, %c0_43] : memref<480x32xf32, #tpu.memory_space<vmem>>, vector<64x32xf32>
    %c1 = arith.constant 1 : index
    %c0_44 = arith.constant 0 : index
    %c0_45 = arith.constant 0 : index
    %53 = vector.load %arg4[%c1, %c0_44, %c0_45] : memref<9x32x32xf32, #tpu.memory_space<vmem>>, vector<1x32x32xf32>
    %54 = vector.shape_cast %53 : vector<1x32x32xf32> to vector<32x32xf32>
    %cst_46 = arith.constant dense<0.000000e+00> : vector<64x32xf32>
    %55 = tpu.matmul %52, %54, %cst_46 {dimension_numbers = #tpu.dot_dimension_numbers<[1], [0], [0], [1], [0, 0, 1, 1], [], []>} : vector<64x32xf32>, vector<32x32xf32>, vector<64x32xf32> -> vector<64x32xf32>
    %56 = arith.addf %51, %55 : vector<64x32xf32>
    %c16 = arith.constant 16 : index
    %c0_47 = arith.constant 0 : index
    %57 = vector.load %arg13[%c16, %c0_47] : memref<480x32xf32, #tpu.memory_space<vmem>>, vector<64x32xf32>
    %c2 = arith.constant 2 : index
    %c0_48 = arith.constant 0 : index
    %c0_49 = arith.constant 0 : index
    %58 = vector.load %arg4[%c2, %c0_48, %c0_49] : memref<9x32x32xf32, #tpu.memory_space<vmem>>, vector<1x32x32xf32>
    %59 = vector.shape_cast %58 : vector<1x32x32xf32> to vector<32x32xf32>
    %cst_50 = arith.constant dense<0.000000e+00> : vector<64x32xf32>
    %60 = tpu.matmul %57, %59, %cst_50 {dimension_numbers = #tpu.dot_dimension_numbers<[1], [0], [0], [1], [0, 0, 1, 1], [], []>} : vector<64x32xf32>, vector<32x32xf32>, vector<64x32xf32> -> vector<64x32xf32>
    %61 = arith.addf %56, %60 : vector<64x32xf32>
    %c80_51 = arith.constant 80 : index
    %c0_52 = arith.constant 0 : index
    %62 = vector.load %arg13[%c80_51, %c0_52] : memref<480x32xf32, #tpu.memory_space<vmem>>, vector<64x32xf32>
    %c3 = arith.constant 3 : index
    %c0_53 = arith.constant 0 : index
    %c0_54 = arith.constant 0 : index
    %63 = vector.load %arg4[%c3, %c0_53, %c0_54] : memref<9x32x32xf32, #tpu.memory_space<vmem>>, vector<1x32x32xf32>
    %64 = vector.shape_cast %63 : vector<1x32x32xf32> to vector<32x32xf32>
    %cst_55 = arith.constant dense<0.000000e+00> : vector<64x32xf32>
    %65 = tpu.matmul %62, %64, %cst_55 {dimension_numbers = #tpu.dot_dimension_numbers<[1], [0], [0], [1], [0, 0, 1, 1], [], []>} : vector<64x32xf32>, vector<32x32xf32>, vector<64x32xf32> -> vector<64x32xf32>
    %66 = arith.addf %61, %65 : vector<64x32xf32>
    %c88 = arith.constant 88 : index
    %c0_56 = arith.constant 0 : index
    %67 = vector.load %arg13[%c88, %c0_56] : memref<480x32xf32, #tpu.memory_space<vmem>>, vector<64x32xf32>
    %c4 = arith.constant 4 : index
    %c0_57 = arith.constant 0 : index
    %c0_58 = arith.constant 0 : index
    %68 = vector.load %arg4[%c4, %c0_57, %c0_58] : memref<9x32x32xf32, #tpu.memory_space<vmem>>, vector<1x32x32xf32>
    %69 = vector.shape_cast %68 : vector<1x32x32xf32> to vector<32x32xf32>
    %cst_59 = arith.constant dense<0.000000e+00> : vector<64x32xf32>
    %70 = tpu.matmul %67, %69, %cst_59 {dimension_numbers = #tpu.dot_dimension_numbers<[1], [0], [0], [1], [0, 0, 1, 1], [], []>} : vector<64x32xf32>, vector<32x32xf32>, vector<64x32xf32> -> vector<64x32xf32>
    %71 = arith.addf %66, %70 : vector<64x32xf32>
    %c96 = arith.constant 96 : index
    %c0_60 = arith.constant 0 : index
    %72 = vector.load %arg13[%c96, %c0_60] : memref<480x32xf32, #tpu.memory_space<vmem>>, vector<64x32xf32>
    %c5 = arith.constant 5 : index
    %c0_61 = arith.constant 0 : index
    %c0_62 = arith.constant 0 : index
    %73 = vector.load %arg4[%c5, %c0_61, %c0_62] : memref<9x32x32xf32, #tpu.memory_space<vmem>>, vector<1x32x32xf32>
    %74 = vector.shape_cast %73 : vector<1x32x32xf32> to vector<32x32xf32>
    %cst_63 = arith.constant dense<0.000000e+00> : vector<64x32xf32>
    %75 = tpu.matmul %72, %74, %cst_63 {dimension_numbers = #tpu.dot_dimension_numbers<[1], [0], [0], [1], [0, 0, 1, 1], [], []>} : vector<64x32xf32>, vector<32x32xf32>, vector<64x32xf32> -> vector<64x32xf32>
    %76 = arith.addf %71, %75 : vector<64x32xf32>
    %c160_64 = arith.constant 160 : index
    %c0_65 = arith.constant 0 : index
    %77 = vector.load %arg13[%c160_64, %c0_65] : memref<480x32xf32, #tpu.memory_space<vmem>>, vector<64x32xf32>
    %c6 = arith.constant 6 : index
    %c0_66 = arith.constant 0 : index
    %c0_67 = arith.constant 0 : index
    %78 = vector.load %arg4[%c6, %c0_66, %c0_67] : memref<9x32x32xf32, #tpu.memory_space<vmem>>, vector<1x32x32xf32>
    %79 = vector.shape_cast %78 : vector<1x32x32xf32> to vector<32x32xf32>
    %cst_68 = arith.constant dense<0.000000e+00> : vector<64x32xf32>
    %80 = tpu.matmul %77, %79, %cst_68 {dimension_numbers = #tpu.dot_dimension_numbers<[1], [0], [0], [1], [0, 0, 1, 1], [], []>} : vector<64x32xf32>, vector<32x32xf32>, vector<64x32xf32> -> vector<64x32xf32>
    %81 = arith.addf %76, %80 : vector<64x32xf32>
    %c168 = arith.constant 168 : index
    %c0_69 = arith.constant 0 : index
    %82 = vector.load %arg13[%c168, %c0_69] : memref<480x32xf32, #tpu.memory_space<vmem>>, vector<64x32xf32>
    %c7 = arith.constant 7 : index
    %c0_70 = arith.constant 0 : index
    %c0_71 = arith.constant 0 : index
    %83 = vector.load %arg4[%c7, %c0_70, %c0_71] : memref<9x32x32xf32, #tpu.memory_space<vmem>>, vector<1x32x32xf32>
    %84 = vector.shape_cast %83 : vector<1x32x32xf32> to vector<32x32xf32>
    %cst_72 = arith.constant dense<0.000000e+00> : vector<64x32xf32>
    %85 = tpu.matmul %82, %84, %cst_72 {dimension_numbers = #tpu.dot_dimension_numbers<[1], [0], [0], [1], [0, 0, 1, 1], [], []>} : vector<64x32xf32>, vector<32x32xf32>, vector<64x32xf32> -> vector<64x32xf32>
    %86 = arith.addf %81, %85 : vector<64x32xf32>
    %c176 = arith.constant 176 : index
    %c0_73 = arith.constant 0 : index
    %87 = vector.load %arg13[%c176, %c0_73] : memref<480x32xf32, #tpu.memory_space<vmem>>, vector<64x32xf32>
    %c8_74 = arith.constant 8 : index
    %c0_75 = arith.constant 0 : index
    %c0_76 = arith.constant 0 : index
    %88 = vector.load %arg4[%c8_74, %c0_75, %c0_76] : memref<9x32x32xf32, #tpu.memory_space<vmem>>, vector<1x32x32xf32>
    %89 = vector.shape_cast %88 : vector<1x32x32xf32> to vector<32x32xf32>
    %cst_77 = arith.constant dense<0.000000e+00> : vector<64x32xf32>
    %90 = tpu.matmul %87, %89, %cst_77 {dimension_numbers = #tpu.dot_dimension_numbers<[1], [0], [0], [1], [0, 0, 1, 1], [], []>} : vector<64x32xf32>, vector<32x32xf32>, vector<64x32xf32> -> vector<64x32xf32>
    %91 = arith.addf %86, %90 : vector<64x32xf32>
    %92 = vector.broadcast %2 : vector<1x32xf32> to vector<64x32xf32>
    %93 = arith.addf %91, %92 : vector<64x32xf32>
    %cst_78 = arith.constant 0.000000e+00 : f32
    %94 = vector.broadcast %cst_78 : f32 to vector<64x32xf32>
    %95 = arith.maximumf %93, %94 : vector<64x32xf32>
    %96 = vector.extract_strided_slice %95 {offsets = [0, 0], sizes = [8, 32], strides = [1, 1]} : vector<64x32xf32> to vector<8x32xf32>
    %c0_79 = arith.constant 0 : index
    %c0_80 = arith.constant 0 : index
    %c0_81 = arith.constant 0 : index
    %97 = vector.load %arg6[%c0_79, %c0_80, %c0_81] : memref<32x32x128xf32, #tpu.memory_space<vmem>>, vector<1x32x128xf32>
    %98 = vector.shape_cast %97 : vector<1x32x128xf32> to vector<32x128xf32>
    %cst_82 = arith.constant dense<0.000000e+00> : vector<8x128xf32>
    %99 = tpu.matmul %96, %98, %cst_82 {dimension_numbers = #tpu.dot_dimension_numbers<[1], [0], [0], [1], [0, 0, 1, 1], [], []>} : vector<8x32xf32>, vector<32x128xf32>, vector<8x128xf32> -> vector<8x128xf32>
    %100 = arith.addf %45, %99 : vector<8x128xf32>
    %101 = vector.extract_strided_slice %95 {offsets = [8, 0], sizes = [8, 32], strides = [1, 1]} : vector<64x32xf32> to vector<8x32xf32>
    %c1_83 = arith.constant 1 : index
    %c0_84 = arith.constant 0 : index
    %c0_85 = arith.constant 0 : index
    %102 = vector.load %arg6[%c1_83, %c0_84, %c0_85] : memref<32x32x128xf32, #tpu.memory_space<vmem>>, vector<1x32x128xf32>
    %103 = vector.shape_cast %102 : vector<1x32x128xf32> to vector<32x128xf32>
    %cst_86 = arith.constant dense<0.000000e+00> : vector<8x128xf32>
    %104 = tpu.matmul %101, %103, %cst_86 {dimension_numbers = #tpu.dot_dimension_numbers<[1], [0], [0], [1], [0, 0, 1, 1], [], []>} : vector<8x32xf32>, vector<32x128xf32>, vector<8x128xf32> -> vector<8x128xf32>
    %105 = arith.addf %100, %104 : vector<8x128xf32>
    %106 = vector.extract_strided_slice %95 {offsets = [16, 0], sizes = [8, 32], strides = [1, 1]} : vector<64x32xf32> to vector<8x32xf32>
    %c2_87 = arith.constant 2 : index
    %c0_88 = arith.constant 0 : index
    %c0_89 = arith.constant 0 : index
    %107 = vector.load %arg6[%c2_87, %c0_88, %c0_89] : memref<32x32x128xf32, #tpu.memory_space<vmem>>, vector<1x32x128xf32>
    %108 = vector.shape_cast %107 : vector<1x32x128xf32> to vector<32x128xf32>
    %cst_90 = arith.constant dense<0.000000e+00> : vector<8x128xf32>
    %109 = tpu.matmul %106, %108, %cst_90 {dimension_numbers = #tpu.dot_dimension_numbers<[1], [0], [0], [1], [0, 0, 1, 1], [], []>} : vector<8x32xf32>, vector<32x128xf32>, vector<8x128xf32> -> vector<8x128xf32>
    %110 = arith.addf %105, %109 : vector<8x128xf32>
    %111 = vector.extract_strided_slice %95 {offsets = [24, 0], sizes = [8, 32], strides = [1, 1]} : vector<64x32xf32> to vector<8x32xf32>
    %c3_91 = arith.constant 3 : index
    %c0_92 = arith.constant 0 : index
    %c0_93 = arith.constant 0 : index
    %112 = vector.load %arg6[%c3_91, %c0_92, %c0_93] : memref<32x32x128xf32, #tpu.memory_space<vmem>>, vector<1x32x128xf32>
    %113 = vector.shape_cast %112 : vector<1x32x128xf32> to vector<32x128xf32>
    %cst_94 = arith.constant dense<0.000000e+00> : vector<8x128xf32>
    %114 = tpu.matmul %111, %113, %cst_94 {dimension_numbers = #tpu.dot_dimension_numbers<[1], [0], [0], [1], [0, 0, 1, 1], [], []>} : vector<8x32xf32>, vector<32x128xf32>, vector<8x128xf32> -> vector<8x128xf32>
    %115 = arith.addf %110, %114 : vector<8x128xf32>
    %116 = vector.extract_strided_slice %95 {offsets = [32, 0], sizes = [8, 32], strides = [1, 1]} : vector<64x32xf32> to vector<8x32xf32>
    %c4_95 = arith.constant 4 : index
    %c0_96 = arith.constant 0 : index
    %c0_97 = arith.constant 0 : index
    %117 = vector.load %arg6[%c4_95, %c0_96, %c0_97] : memref<32x32x128xf32, #tpu.memory_space<vmem>>, vector<1x32x128xf32>
    %118 = vector.shape_cast %117 : vector<1x32x128xf32> to vector<32x128xf32>
    %cst_98 = arith.constant dense<0.000000e+00> : vector<8x128xf32>
    %119 = tpu.matmul %116, %118, %cst_98 {dimension_numbers = #tpu.dot_dimension_numbers<[1], [0], [0], [1], [0, 0, 1, 1], [], []>} : vector<8x32xf32>, vector<32x128xf32>, vector<8x128xf32> -> vector<8x128xf32>
    %120 = arith.addf %115, %119 : vector<8x128xf32>
    %121 = vector.extract_strided_slice %95 {offsets = [40, 0], sizes = [8, 32], strides = [1, 1]} : vector<64x32xf32> to vector<8x32xf32>
    %c5_99 = arith.constant 5 : index
    %c0_100 = arith.constant 0 : index
    %c0_101 = arith.constant 0 : index
    %122 = vector.load %arg6[%c5_99, %c0_100, %c0_101] : memref<32x32x128xf32, #tpu.memory_space<vmem>>, vector<1x32x128xf32>
    %123 = vector.shape_cast %122 : vector<1x32x128xf32> to vector<32x128xf32>
    %cst_102 = arith.constant dense<0.000000e+00> : vector<8x128xf32>
    %124 = tpu.matmul %121, %123, %cst_102 {dimension_numbers = #tpu.dot_dimension_numbers<[1], [0], [0], [1], [0, 0, 1, 1], [], []>} : vector<8x32xf32>, vector<32x128xf32>, vector<8x128xf32> -> vector<8x128xf32>
    %125 = arith.addf %120, %124 : vector<8x128xf32>
    %126 = vector.extract_strided_slice %95 {offsets = [48, 0], sizes = [8, 32], strides = [1, 1]} : vector<64x32xf32> to vector<8x32xf32>
    %c6_103 = arith.constant 6 : index
    %c0_104 = arith.constant 0 : index
    %c0_105 = arith.constant 0 : index
    %127 = vector.load %arg6[%c6_103, %c0_104, %c0_105] : memref<32x32x128xf32, #tpu.memory_space<vmem>>, vector<1x32x128xf32>
    %128 = vector.shape_cast %127 : vector<1x32x128xf32> to vector<32x128xf32>
    %cst_106 = arith.constant dense<0.000000e+00> : vector<8x128xf32>
    %129 = tpu.matmul %126, %128, %cst_106 {dimension_numbers = #tpu.dot_dimension_numbers<[1], [0], [0], [1], [0, 0, 1, 1], [], []>} : vector<8x32xf32>, vector<32x128xf32>, vector<8x128xf32> -> vector<8x128xf32>
    %130 = arith.addf %125, %129 : vector<8x128xf32>
    %131 = vector.extract_strided_slice %95 {offsets = [56, 0], sizes = [8, 32], strides = [1, 1]} : vector<64x32xf32> to vector<8x32xf32>
    %c7_107 = arith.constant 7 : index
    %c0_108 = arith.constant 0 : index
    %c0_109 = arith.constant 0 : index
    %132 = vector.load %arg6[%c7_107, %c0_108, %c0_109] : memref<32x32x128xf32, #tpu.memory_space<vmem>>, vector<1x32x128xf32>
    %133 = vector.shape_cast %132 : vector<1x32x128xf32> to vector<32x128xf32>
    %cst_110 = arith.constant dense<0.000000e+00> : vector<8x128xf32>
    %134 = tpu.matmul %131, %133, %cst_110 {dimension_numbers = #tpu.dot_dimension_numbers<[1], [0], [0], [1], [0, 0, 1, 1], [], []>} : vector<8x32xf32>, vector<32x128xf32>, vector<8x128xf32> -> vector<8x128xf32>
    %135 = arith.addf %130, %134 : vector<8x128xf32>
    %cst_111 = arith.constant 0.000000e+00 : f32
    %136 = vector.broadcast %cst_111 : f32 to vector<64x32xf32>
    %c80_112 = arith.constant 80 : index
    %c0_113 = arith.constant 0 : index
    %137 = vector.load %arg13[%c80_112, %c0_113] : memref<480x32xf32, #tpu.memory_space<vmem>>, vector<64x32xf32>
    %c0_114 = arith.constant 0 : index
    %c0_115 = arith.constant 0 : index
    %c0_116 = arith.constant 0 : index
    %138 = vector.load %arg4[%c0_114, %c0_115, %c0_116] : memref<9x32x32xf32, #tpu.memory_space<vmem>>, vector<1x32x32xf32>
    %139 = vector.shape_cast %138 : vector<1x32x32xf32> to vector<32x32xf32>
    %cst_117 = arith.constant dense<0.000000e+00> : vector<64x32xf32>
    %140 = tpu.matmul %137, %139, %cst_117 {dimension_numbers = #tpu.dot_dimension_numbers<[1], [0], [0], [1], [0, 0, 1, 1], [], []>} : vector<64x32xf32>, vector<32x32xf32>, vector<64x32xf32> -> vector<64x32xf32>
    %141 = arith.addf %136, %140 : vector<64x32xf32>
    %c88_118 = arith.constant 88 : index
    %c0_119 = arith.constant 0 : index
    %142 = vector.load %arg13[%c88_118, %c0_119] : memref<480x32xf32, #tpu.memory_space<vmem>>, vector<64x32xf32>
    %c1_120 = arith.constant 1 : index
    %c0_121 = arith.constant 0 : index
    %c0_122 = arith.constant 0 : index
    %143 = vector.load %arg4[%c1_120, %c0_121, %c0_122] : memref<9x32x32xf32, #tpu.memory_space<vmem>>, vector<1x32x32xf32>
    %144 = vector.shape_cast %143 : vector<1x32x32xf32> to vector<32x32xf32>
    %cst_123 = arith.constant dense<0.000000e+00> : vector<64x32xf32>
    %145 = tpu.matmul %142, %144, %cst_123 {dimension_numbers = #tpu.dot_dimension_numbers<[1], [0], [0], [1], [0, 0, 1, 1], [], []>} : vector<64x32xf32>, vector<32x32xf32>, vector<64x32xf32> -> vector<64x32xf32>
    %146 = arith.addf %141, %145 : vector<64x32xf32>
    %c96_124 = arith.constant 96 : index
    %c0_125 = arith.constant 0 : index
    %147 = vector.load %arg13[%c96_124, %c0_125] : memref<480x32xf32, #tpu.memory_space<vmem>>, vector<64x32xf32>
    %c2_126 = arith.constant 2 : index
    %c0_127 = arith.constant 0 : index
    %c0_128 = arith.constant 0 : index
    %148 = vector.load %arg4[%c2_126, %c0_127, %c0_128] : memref<9x32x32xf32, #tpu.memory_space<vmem>>, vector<1x32x32xf32>
    %149 = vector.shape_cast %148 : vector<1x32x32xf32> to vector<32x32xf32>
    %cst_129 = arith.constant dense<0.000000e+00> : vector<64x32xf32>
    %150 = tpu.matmul %147, %149, %cst_129 {dimension_numbers = #tpu.dot_dimension_numbers<[1], [0], [0], [1], [0, 0, 1, 1], [], []>} : vector<64x32xf32>, vector<32x32xf32>, vector<64x32xf32> -> vector<64x32xf32>
    %151 = arith.addf %146, %150 : vector<64x32xf32>
    %c160_130 = arith.constant 160 : index
    %c0_131 = arith.constant 0 : index
    %152 = vector.load %arg13[%c160_130, %c0_131] : memref<480x32xf32, #tpu.memory_space<vmem>>, vector<64x32xf32>
    %c3_132 = arith.constant 3 : index
    %c0_133 = arith.constant 0 : index
    %c0_134 = arith.constant 0 : index
    %153 = vector.load %arg4[%c3_132, %c0_133, %c0_134] : memref<9x32x32xf32, #tpu.memory_space<vmem>>, vector<1x32x32xf32>
    %154 = vector.shape_cast %153 : vector<1x32x32xf32> to vector<32x32xf32>
    %cst_135 = arith.constant dense<0.000000e+00> : vector<64x32xf32>
    %155 = tpu.matmul %152, %154, %cst_135 {dimension_numbers = #tpu.dot_dimension_numbers<[1], [0], [0], [1], [0, 0, 1, 1], [], []>} : vector<64x32xf32>, vector<32x32xf32>, vector<64x32xf32> -> vector<64x32xf32>
    %156 = arith.addf %151, %155 : vector<64x32xf32>
    %c168_136 = arith.constant 168 : index
    %c0_137 = arith.constant 0 : index
    %157 = vector.load %arg13[%c168_136, %c0_137] : memref<480x32xf32, #tpu.memory_space<vmem>>, vector<64x32xf32>
    %c4_138 = arith.constant 4 : index
    %c0_139 = arith.constant 0 : index
    %c0_140 = arith.constant 0 : index
    %158 = vector.load %arg4[%c4_138, %c0_139, %c0_140] : memref<9x32x32xf32, #tpu.memory_space<vmem>>, vector<1x32x32xf32>
    %159 = vector.shape_cast %158 : vector<1x32x32xf32> to vector<32x32xf32>
    %cst_141 = arith.constant dense<0.000000e+00> : vector<64x32xf32>
    %160 = tpu.matmul %157, %159, %cst_141 {dimension_numbers = #tpu.dot_dimension_numbers<[1], [0], [0], [1], [0, 0, 1, 1], [], []>} : vector<64x32xf32>, vector<32x32xf32>, vector<64x32xf32> -> vector<64x32xf32>
    %161 = arith.addf %156, %160 : vector<64x32xf32>
    %c176_142 = arith.constant 176 : index
    %c0_143 = arith.constant 0 : index
    %162 = vector.load %arg13[%c176_142, %c0_143] : memref<480x32xf32, #tpu.memory_space<vmem>>, vector<64x32xf32>
    %c5_144 = arith.constant 5 : index
    %c0_145 = arith.constant 0 : index
    %c0_146 = arith.constant 0 : index
    %163 = vector.load %arg4[%c5_144, %c0_145, %c0_146] : memref<9x32x32xf32, #tpu.memory_space<vmem>>, vector<1x32x32xf32>
    %164 = vector.shape_cast %163 : vector<1x32x32xf32> to vector<32x32xf32>
    %cst_147 = arith.constant dense<0.000000e+00> : vector<64x32xf32>
    %165 = tpu.matmul %162, %164, %cst_147 {dimension_numbers = #tpu.dot_dimension_numbers<[1], [0], [0], [1], [0, 0, 1, 1], [], []>} : vector<64x32xf32>, vector<32x32xf32>, vector<64x32xf32> -> vector<64x32xf32>
    %166 = arith.addf %161, %165 : vector<64x32xf32>
    %c240_148 = arith.constant 240 : index
    %c0_149 = arith.constant 0 : index
    %167 = vector.load %arg13[%c240_148, %c0_149] : memref<480x32xf32, #tpu.memory_space<vmem>>, vector<64x32xf32>
    %c6_150 = arith.constant 6 : index
    %c0_151 = arith.constant 0 : index
    %c0_152 = arith.constant 0 : index
    %168 = vector.load %arg4[%c6_150, %c0_151, %c0_152] : memref<9x32x32xf32, #tpu.memory_space<vmem>>, vector<1x32x32xf32>
    %169 = vector.shape_cast %168 : vector<1x32x32xf32> to vector<32x32xf32>
    %cst_153 = arith.constant dense<0.000000e+00> : vector<64x32xf32>
    %170 = tpu.matmul %167, %169, %cst_153 {dimension_numbers = #tpu.dot_dimension_numbers<[1], [0], [0], [1], [0, 0, 1, 1], [], []>} : vector<64x32xf32>, vector<32x32xf32>, vector<64x32xf32> -> vector<64x32xf32>
    %171 = arith.addf %166, %170 : vector<64x32xf32>
    %c248 = arith.constant 248 : index
    %c0_154 = arith.constant 0 : index
    %172 = vector.load %arg13[%c248, %c0_154] : memref<480x32xf32, #tpu.memory_space<vmem>>, vector<64x32xf32>
    %c7_155 = arith.constant 7 : index
    %c0_156 = arith.constant 0 : index
    %c0_157 = arith.constant 0 : index
    %173 = vector.load %arg4[%c7_155, %c0_156, %c0_157] : memref<9x32x32xf32, #tpu.memory_space<vmem>>, vector<1x32x32xf32>
    %174 = vector.shape_cast %173 : vector<1x32x32xf32> to vector<32x32xf32>
    %cst_158 = arith.constant dense<0.000000e+00> : vector<64x32xf32>
    %175 = tpu.matmul %172, %174, %cst_158 {dimension_numbers = #tpu.dot_dimension_numbers<[1], [0], [0], [1], [0, 0, 1, 1], [], []>} : vector<64x32xf32>, vector<32x32xf32>, vector<64x32xf32> -> vector<64x32xf32>
    %176 = arith.addf %171, %175 : vector<64x32xf32>
    %c256 = arith.constant 256 : index
    %c0_159 = arith.constant 0 : index
    %177 = vector.load %arg13[%c256, %c0_159] : memref<480x32xf32, #tpu.memory_space<vmem>>, vector<64x32xf32>
    %c8_160 = arith.constant 8 : index
    %c0_161 = arith.constant 0 : index
    %c0_162 = arith.constant 0 : index
    %178 = vector.load %arg4[%c8_160, %c0_161, %c0_162] : memref<9x32x32xf32, #tpu.memory_space<vmem>>, vector<1x32x32xf32>
    %179 = vector.shape_cast %178 : vector<1x32x32xf32> to vector<32x32xf32>
    %cst_163 = arith.constant dense<0.000000e+00> : vector<64x32xf32>
    %180 = tpu.matmul %177, %179, %cst_163 {dimension_numbers = #tpu.dot_dimension_numbers<[1], [0], [0], [1], [0, 0, 1, 1], [], []>} : vector<64x32xf32>, vector<32x32xf32>, vector<64x32xf32> -> vector<64x32xf32>
    %181 = arith.addf %176, %180 : vector<64x32xf32>
    %182 = vector.broadcast %2 : vector<1x32xf32> to vector<64x32xf32>
    %183 = arith.addf %181, %182 : vector<64x32xf32>
    %cst_164 = arith.constant 0.000000e+00 : f32
    %184 = vector.broadcast %cst_164 : f32 to vector<64x32xf32>
    %185 = arith.maximumf %183, %184 : vector<64x32xf32>
    %186 = vector.extract_strided_slice %185 {offsets = [0, 0], sizes = [8, 32], strides = [1, 1]} : vector<64x32xf32> to vector<8x32xf32>
    %c8_165 = arith.constant 8 : index
    %c0_166 = arith.constant 0 : index
    %c0_167 = arith.constant 0 : index
    %187 = vector.load %arg6[%c8_165, %c0_166, %c0_167] : memref<32x32x128xf32, #tpu.memory_space<vmem>>, vector<1x32x128xf32>
    %188 = vector.shape_cast %187 : vector<1x32x128xf32> to vector<32x128xf32>
    %cst_168 = arith.constant dense<0.000000e+00> : vector<8x128xf32>
    %189 = tpu.matmul %186, %188, %cst_168 {dimension_numbers = #tpu.dot_dimension_numbers<[1], [0], [0], [1], [0, 0, 1, 1], [], []>} : vector<8x32xf32>, vector<32x128xf32>, vector<8x128xf32> -> vector<8x128xf32>
    %190 = arith.addf %135, %189 : vector<8x128xf32>
    %191 = vector.extract_strided_slice %185 {offsets = [8, 0], sizes = [8, 32], strides = [1, 1]} : vector<64x32xf32> to vector<8x32xf32>
    %c9 = arith.constant 9 : index
    %c0_169 = arith.constant 0 : index
    %c0_170 = arith.constant 0 : index
    %192 = vector.load %arg6[%c9, %c0_169, %c0_170] : memref<32x32x128xf32, #tpu.memory_space<vmem>>, vector<1x32x128xf32>
    %193 = vector.shape_cast %192 : vector<1x32x128xf32> to vector<32x128xf32>
    %cst_171 = arith.constant dense<0.000000e+00> : vector<8x128xf32>
    %194 = tpu.matmul %191, %193, %cst_171 {dimension_numbers = #tpu.dot_dimension_numbers<[1], [0], [0], [1], [0, 0, 1, 1], [], []>} : vector<8x32xf32>, vector<32x128xf32>, vector<8x128xf32> -> vector<8x128xf32>
    %195 = arith.addf %190, %194 : vector<8x128xf32>
    %196 = vector.extract_strided_slice %185 {offsets = [16, 0], sizes = [8, 32], strides = [1, 1]} : vector<64x32xf32> to vector<8x32xf32>
    %c10 = arith.constant 10 : index
    %c0_172 = arith.constant 0 : index
    %c0_173 = arith.constant 0 : index
    %197 = vector.load %arg6[%c10, %c0_172, %c0_173] : memref<32x32x128xf32, #tpu.memory_space<vmem>>, vector<1x32x128xf32>
    %198 = vector.shape_cast %197 : vector<1x32x128xf32> to vector<32x128xf32>
    %cst_174 = arith.constant dense<0.000000e+00> : vector<8x128xf32>
    %199 = tpu.matmul %196, %198, %cst_174 {dimension_numbers = #tpu.dot_dimension_numbers<[1], [0], [0], [1], [0, 0, 1, 1], [], []>} : vector<8x32xf32>, vector<32x128xf32>, vector<8x128xf32> -> vector<8x128xf32>
    %200 = arith.addf %195, %199 : vector<8x128xf32>
    %201 = vector.extract_strided_slice %185 {offsets = [24, 0], sizes = [8, 32], strides = [1, 1]} : vector<64x32xf32> to vector<8x32xf32>
    %c11 = arith.constant 11 : index
    %c0_175 = arith.constant 0 : index
    %c0_176 = arith.constant 0 : index
    %202 = vector.load %arg6[%c11, %c0_175, %c0_176] : memref<32x32x128xf32, #tpu.memory_space<vmem>>, vector<1x32x128xf32>
    %203 = vector.shape_cast %202 : vector<1x32x128xf32> to vector<32x128xf32>
    %cst_177 = arith.constant dense<0.000000e+00> : vector<8x128xf32>
    %204 = tpu.matmul %201, %203, %cst_177 {dimension_numbers = #tpu.dot_dimension_numbers<[1], [0], [0], [1], [0, 0, 1, 1], [], []>} : vector<8x32xf32>, vector<32x128xf32>, vector<8x128xf32> -> vector<8x128xf32>
    %205 = arith.addf %200, %204 : vector<8x128xf32>
    %206 = vector.extract_strided_slice %185 {offsets = [32, 0], sizes = [8, 32], strides = [1, 1]} : vector<64x32xf32> to vector<8x32xf32>
    %c12 = arith.constant 12 : index
    %c0_178 = arith.constant 0 : index
    %c0_179 = arith.constant 0 : index
    %207 = vector.load %arg6[%c12, %c0_178, %c0_179] : memref<32x32x128xf32, #tpu.memory_space<vmem>>, vector<1x32x128xf32>
    %208 = vector.shape_cast %207 : vector<1x32x128xf32> to vector<32x128xf32>
    %cst_180 = arith.constant dense<0.000000e+00> : vector<8x128xf32>
    %209 = tpu.matmul %206, %208, %cst_180 {dimension_numbers = #tpu.dot_dimension_numbers<[1], [0], [0], [1], [0, 0, 1, 1], [], []>} : vector<8x32xf32>, vector<32x128xf32>, vector<8x128xf32> -> vector<8x128xf32>
    %210 = arith.addf %205, %209 : vector<8x128xf32>
    %211 = vector.extract_strided_slice %185 {offsets = [40, 0], sizes = [8, 32], strides = [1, 1]} : vector<64x32xf32> to vector<8x32xf32>
    %c13 = arith.constant 13 : index
    %c0_181 = arith.constant 0 : index
    %c0_182 = arith.constant 0 : index
    %212 = vector.load %arg6[%c13, %c0_181, %c0_182] : memref<32x32x128xf32, #tpu.memory_space<vmem>>, vector<1x32x128xf32>
    %213 = vector.shape_cast %212 : vector<1x32x128xf32> to vector<32x128xf32>
    %cst_183 = arith.constant dense<0.000000e+00> : vector<8x128xf32>
    %214 = tpu.matmul %211, %213, %cst_183 {dimension_numbers = #tpu.dot_dimension_numbers<[1], [0], [0], [1], [0, 0, 1, 1], [], []>} : vector<8x32xf32>, vector<32x128xf32>, vector<8x128xf32> -> vector<8x128xf32>
    %215 = arith.addf %210, %214 : vector<8x128xf32>
    %216 = vector.extract_strided_slice %185 {offsets = [48, 0], sizes = [8, 32], strides = [1, 1]} : vector<64x32xf32> to vector<8x32xf32>
    %c14 = arith.constant 14 : index
    %c0_184 = arith.constant 0 : index
    %c0_185 = arith.constant 0 : index
    %217 = vector.load %arg6[%c14, %c0_184, %c0_185] : memref<32x32x128xf32, #tpu.memory_space<vmem>>, vector<1x32x128xf32>
    %218 = vector.shape_cast %217 : vector<1x32x128xf32> to vector<32x128xf32>
    %cst_186 = arith.constant dense<0.000000e+00> : vector<8x128xf32>
    %219 = tpu.matmul %216, %218, %cst_186 {dimension_numbers = #tpu.dot_dimension_numbers<[1], [0], [0], [1], [0, 0, 1, 1], [], []>} : vector<8x32xf32>, vector<32x128xf32>, vector<8x128xf32> -> vector<8x128xf32>
    %220 = arith.addf %215, %219 : vector<8x128xf32>
    %221 = vector.extract_strided_slice %185 {offsets = [56, 0], sizes = [8, 32], strides = [1, 1]} : vector<64x32xf32> to vector<8x32xf32>
    %c15 = arith.constant 15 : index
    %c0_187 = arith.constant 0 : index
    %c0_188 = arith.constant 0 : index
    %222 = vector.load %arg6[%c15, %c0_187, %c0_188] : memref<32x32x128xf32, #tpu.memory_space<vmem>>, vector<1x32x128xf32>
    %223 = vector.shape_cast %222 : vector<1x32x128xf32> to vector<32x128xf32>
    %cst_189 = arith.constant dense<0.000000e+00> : vector<8x128xf32>
    %224 = tpu.matmul %221, %223, %cst_189 {dimension_numbers = #tpu.dot_dimension_numbers<[1], [0], [0], [1], [0, 0, 1, 1], [], []>} : vector<8x32xf32>, vector<32x128xf32>, vector<8x128xf32> -> vector<8x128xf32>
    %225 = arith.addf %220, %224 : vector<8x128xf32>
    %cst_190 = arith.constant 0.000000e+00 : f32
    %226 = vector.broadcast %cst_190 : f32 to vector<64x32xf32>
    %c160_191 = arith.constant 160 : index
    %c0_192 = arith.constant 0 : index
    %227 = vector.load %arg13[%c160_191, %c0_192] : memref<480x32xf32, #tpu.memory_space<vmem>>, vector<64x32xf32>
    %c0_193 = arith.constant 0 : index
    %c0_194 = arith.constant 0 : index
    %c0_195 = arith.constant 0 : index
    %228 = vector.load %arg4[%c0_193, %c0_194, %c0_195] : memref<9x32x32xf32, #tpu.memory_space<vmem>>, vector<1x32x32xf32>
    %229 = vector.shape_cast %228 : vector<1x32x32xf32> to vector<32x32xf32>
    %cst_196 = arith.constant dense<0.000000e+00> : vector<64x32xf32>
    %230 = tpu.matmul %227, %229, %cst_196 {dimension_numbers = #tpu.dot_dimension_numbers<[1], [0], [0], [1], [0, 0, 1, 1], [], []>} : vector<64x32xf32>, vector<32x32xf32>, vector<64x32xf32> -> vector<64x32xf32>
    %231 = arith.addf %226, %230 : vector<64x32xf32>
    %c168_197 = arith.constant 168 : index
    %c0_198 = arith.constant 0 : index
    %232 = vector.load %arg13[%c168_197, %c0_198] : memref<480x32xf32, #tpu.memory_space<vmem>>, vector<64x32xf32>
    %c1_199 = arith.constant 1 : index
    %c0_200 = arith.constant 0 : index
    %c0_201 = arith.constant 0 : index
    %233 = vector.load %arg4[%c1_199, %c0_200, %c0_201] : memref<9x32x32xf32, #tpu.memory_space<vmem>>, vector<1x32x32xf32>
    %234 = vector.shape_cast %233 : vector<1x32x32xf32> to vector<32x32xf32>
    %cst_202 = arith.constant dense<0.000000e+00> : vector<64x32xf32>
    %235 = tpu.matmul %232, %234, %cst_202 {dimension_numbers = #tpu.dot_dimension_numbers<[1], [0], [0], [1], [0, 0, 1, 1], [], []>} : vector<64x32xf32>, vector<32x32xf32>, vector<64x32xf32> -> vector<64x32xf32>
    %236 = arith.addf %231, %235 : vector<64x32xf32>
    %c176_203 = arith.constant 176 : index
    %c0_204 = arith.constant 0 : index
    %237 = vector.load %arg13[%c176_203, %c0_204] : memref<480x32xf32, #tpu.memory_space<vmem>>, vector<64x32xf32>
    %c2_205 = arith.constant 2 : index
    %c0_206 = arith.constant 0 : index
    %c0_207 = arith.constant 0 : index
    %238 = vector.load %arg4[%c2_205, %c0_206, %c0_207] : memref<9x32x32xf32, #tpu.memory_space<vmem>>, vector<1x32x32xf32>
    %239 = vector.shape_cast %238 : vector<1x32x32xf32> to vector<32x32xf32>
    %cst_208 = arith.constant dense<0.000000e+00> : vector<64x32xf32>
    %240 = tpu.matmul %237, %239, %cst_208 {dimension_numbers = #tpu.dot_dimension_numbers<[1], [0], [0], [1], [0, 0, 1, 1], [], []>} : vector<64x32xf32>, vector<32x32xf32>, vector<64x32xf32> -> vector<64x32xf32>
    %241 = arith.addf %236, %240 : vector<64x32xf32>
    %c240_209 = arith.constant 240 : index
    %c0_210 = arith.constant 0 : index
    %242 = vector.load %arg13[%c240_209, %c0_210] : memref<480x32xf32, #tpu.memory_space<vmem>>, vector<64x32xf32>
    %c3_211 = arith.constant 3 : index
    %c0_212 = arith.constant 0 : index
    %c0_213 = arith.constant 0 : index
    %243 = vector.load %arg4[%c3_211, %c0_212, %c0_213] : memref<9x32x32xf32, #tpu.memory_space<vmem>>, vector<1x32x32xf32>
    %244 = vector.shape_cast %243 : vector<1x32x32xf32> to vector<32x32xf32>
    %cst_214 = arith.constant dense<0.000000e+00> : vector<64x32xf32>
    %245 = tpu.matmul %242, %244, %cst_214 {dimension_numbers = #tpu.dot_dimension_numbers<[1], [0], [0], [1], [0, 0, 1, 1], [], []>} : vector<64x32xf32>, vector<32x32xf32>, vector<64x32xf32> -> vector<64x32xf32>
    %246 = arith.addf %241, %245 : vector<64x32xf32>
    %c248_215 = arith.constant 248 : index
    %c0_216 = arith.constant 0 : index
    %247 = vector.load %arg13[%c248_215, %c0_216] : memref<480x32xf32, #tpu.memory_space<vmem>>, vector<64x32xf32>
    %c4_217 = arith.constant 4 : index
    %c0_218 = arith.constant 0 : index
    %c0_219 = arith.constant 0 : index
    %248 = vector.load %arg4[%c4_217, %c0_218, %c0_219] : memref<9x32x32xf32, #tpu.memory_space<vmem>>, vector<1x32x32xf32>
    %249 = vector.shape_cast %248 : vector<1x32x32xf32> to vector<32x32xf32>
    %cst_220 = arith.constant dense<0.000000e+00> : vector<64x32xf32>
    %250 = tpu.matmul %247, %249, %cst_220 {dimension_numbers = #tpu.dot_dimension_numbers<[1], [0], [0], [1], [0, 0, 1, 1], [], []>} : vector<64x32xf32>, vector<32x32xf32>, vector<64x32xf32> -> vector<64x32xf32>
    %251 = arith.addf %246, %250 : vector<64x32xf32>
    %c256_221 = arith.constant 256 : index
    %c0_222 = arith.constant 0 : index
    %252 = vector.load %arg13[%c256_221, %c0_222] : memref<480x32xf32, #tpu.memory_space<vmem>>, vector<64x32xf32>
    %c5_223 = arith.constant 5 : index
    %c0_224 = arith.constant 0 : index
    %c0_225 = arith.constant 0 : index
    %253 = vector.load %arg4[%c5_223, %c0_224, %c0_225] : memref<9x32x32xf32, #tpu.memory_space<vmem>>, vector<1x32x32xf32>
    %254 = vector.shape_cast %253 : vector<1x32x32xf32> to vector<32x32xf32>
    %cst_226 = arith.constant dense<0.000000e+00> : vector<64x32xf32>
    %255 = tpu.matmul %252, %254, %cst_226 {dimension_numbers = #tpu.dot_dimension_numbers<[1], [0], [0], [1], [0, 0, 1, 1], [], []>} : vector<64x32xf32>, vector<32x32xf32>, vector<64x32xf32> -> vector<64x32xf32>
    %256 = arith.addf %251, %255 : vector<64x32xf32>
    %c320_227 = arith.constant 320 : index
    %c0_228 = arith.constant 0 : index
    %257 = vector.load %arg13[%c320_227, %c0_228] : memref<480x32xf32, #tpu.memory_space<vmem>>, vector<64x32xf32>
    %c6_229 = arith.constant 6 : index
    %c0_230 = arith.constant 0 : index
    %c0_231 = arith.constant 0 : index
    %258 = vector.load %arg4[%c6_229, %c0_230, %c0_231] : memref<9x32x32xf32, #tpu.memory_space<vmem>>, vector<1x32x32xf32>
    %259 = vector.shape_cast %258 : vector<1x32x32xf32> to vector<32x32xf32>
    %cst_232 = arith.constant dense<0.000000e+00> : vector<64x32xf32>
    %260 = tpu.matmul %257, %259, %cst_232 {dimension_numbers = #tpu.dot_dimension_numbers<[1], [0], [0], [1], [0, 0, 1, 1], [], []>} : vector<64x32xf32>, vector<32x32xf32>, vector<64x32xf32> -> vector<64x32xf32>
    %261 = arith.addf %256, %260 : vector<64x32xf32>
    %c328 = arith.constant 328 : index
    %c0_233 = arith.constant 0 : index
    %262 = vector.load %arg13[%c328, %c0_233] : memref<480x32xf32, #tpu.memory_space<vmem>>, vector<64x32xf32>
    %c7_234 = arith.constant 7 : index
    %c0_235 = arith.constant 0 : index
    %c0_236 = arith.constant 0 : index
    %263 = vector.load %arg4[%c7_234, %c0_235, %c0_236] : memref<9x32x32xf32, #tpu.memory_space<vmem>>, vector<1x32x32xf32>
    %264 = vector.shape_cast %263 : vector<1x32x32xf32> to vector<32x32xf32>
    %cst_237 = arith.constant dense<0.000000e+00> : vector<64x32xf32>
    %265 = tpu.matmul %262, %264, %cst_237 {dimension_numbers = #tpu.dot_dimension_numbers<[1], [0], [0], [1], [0, 0, 1, 1], [], []>} : vector<64x32xf32>, vector<32x32xf32>, vector<64x32xf32> -> vector<64x32xf32>
    %266 = arith.addf %261, %265 : vector<64x32xf32>
    %c336 = arith.constant 336 : index
    %c0_238 = arith.constant 0 : index
    %267 = vector.load %arg13[%c336, %c0_238] : memref<480x32xf32, #tpu.memory_space<vmem>>, vector<64x32xf32>
    %c8_239 = arith.constant 8 : index
    %c0_240 = arith.constant 0 : index
    %c0_241 = arith.constant 0 : index
    %268 = vector.load %arg4[%c8_239, %c0_240, %c0_241] : memref<9x32x32xf32, #tpu.memory_space<vmem>>, vector<1x32x32xf32>
    %269 = vector.shape_cast %268 : vector<1x32x32xf32> to vector<32x32xf32>
    %cst_242 = arith.constant dense<0.000000e+00> : vector<64x32xf32>
    %270 = tpu.matmul %267, %269, %cst_242 {dimension_numbers = #tpu.dot_dimension_numbers<[1], [0], [0], [1], [0, 0, 1, 1], [], []>} : vector<64x32xf32>, vector<32x32xf32>, vector<64x32xf32> -> vector<64x32xf32>
    %271 = arith.addf %266, %270 : vector<64x32xf32>
    %272 = vector.broadcast %2 : vector<1x32xf32> to vector<64x32xf32>
    %273 = arith.addf %271, %272 : vector<64x32xf32>
    %cst_243 = arith.constant 0.000000e+00 : f32
    %274 = vector.broadcast %cst_243 : f32 to vector<64x32xf32>
    %275 = arith.maximumf %273, %274 : vector<64x32xf32>
    %276 = vector.extract_strided_slice %275 {offsets = [0, 0], sizes = [8, 32], strides = [1, 1]} : vector<64x32xf32> to vector<8x32xf32>
    %c16_244 = arith.constant 16 : index
    %c0_245 = arith.constant 0 : index
    %c0_246 = arith.constant 0 : index
    %277 = vector.load %arg6[%c16_244, %c0_245, %c0_246] : memref<32x32x128xf32, #tpu.memory_space<vmem>>, vector<1x32x128xf32>
    %278 = vector.shape_cast %277 : vector<1x32x128xf32> to vector<32x128xf32>
    %cst_247 = arith.constant dense<0.000000e+00> : vector<8x128xf32>
    %279 = tpu.matmul %276, %278, %cst_247 {dimension_numbers = #tpu.dot_dimension_numbers<[1], [0], [0], [1], [0, 0, 1, 1], [], []>} : vector<8x32xf32>, vector<32x128xf32>, vector<8x128xf32> -> vector<8x128xf32>
    %280 = arith.addf %225, %279 : vector<8x128xf32>
    %281 = vector.extract_strided_slice %275 {offsets = [8, 0], sizes = [8, 32], strides = [1, 1]} : vector<64x32xf32> to vector<8x32xf32>
    %c17 = arith.constant 17 : index
    %c0_248 = arith.constant 0 : index
    %c0_249 = arith.constant 0 : index
    %282 = vector.load %arg6[%c17, %c0_248, %c0_249] : memref<32x32x128xf32, #tpu.memory_space<vmem>>, vector<1x32x128xf32>
    %283 = vector.shape_cast %282 : vector<1x32x128xf32> to vector<32x128xf32>
    %cst_250 = arith.constant dense<0.000000e+00> : vector<8x128xf32>
    %284 = tpu.matmul %281, %283, %cst_250 {dimension_numbers = #tpu.dot_dimension_numbers<[1], [0], [0], [1], [0, 0, 1, 1], [], []>} : vector<8x32xf32>, vector<32x128xf32>, vector<8x128xf32> -> vector<8x128xf32>
    %285 = arith.addf %280, %284 : vector<8x128xf32>
    %286 = vector.extract_strided_slice %275 {offsets = [16, 0], sizes = [8, 32], strides = [1, 1]} : vector<64x32xf32> to vector<8x32xf32>
    %c18 = arith.constant 18 : index
    %c0_251 = arith.constant 0 : index
    %c0_252 = arith.constant 0 : index
    %287 = vector.load %arg6[%c18, %c0_251, %c0_252] : memref<32x32x128xf32, #tpu.memory_space<vmem>>, vector<1x32x128xf32>
    %288 = vector.shape_cast %287 : vector<1x32x128xf32> to vector<32x128xf32>
    %cst_253 = arith.constant dense<0.000000e+00> : vector<8x128xf32>
    %289 = tpu.matmul %286, %288, %cst_253 {dimension_numbers = #tpu.dot_dimension_numbers<[1], [0], [0], [1], [0, 0, 1, 1], [], []>} : vector<8x32xf32>, vector<32x128xf32>, vector<8x128xf32> -> vector<8x128xf32>
    %290 = arith.addf %285, %289 : vector<8x128xf32>
    %291 = vector.extract_strided_slice %275 {offsets = [24, 0], sizes = [8, 32], strides = [1, 1]} : vector<64x32xf32> to vector<8x32xf32>
    %c19 = arith.constant 19 : index
    %c0_254 = arith.constant 0 : index
    %c0_255 = arith.constant 0 : index
    %292 = vector.load %arg6[%c19, %c0_254, %c0_255] : memref<32x32x128xf32, #tpu.memory_space<vmem>>, vector<1x32x128xf32>
    %293 = vector.shape_cast %292 : vector<1x32x128xf32> to vector<32x128xf32>
    %cst_256 = arith.constant dense<0.000000e+00> : vector<8x128xf32>
    %294 = tpu.matmul %291, %293, %cst_256 {dimension_numbers = #tpu.dot_dimension_numbers<[1], [0], [0], [1], [0, 0, 1, 1], [], []>} : vector<8x32xf32>, vector<32x128xf32>, vector<8x128xf32> -> vector<8x128xf32>
    %295 = arith.addf %290, %294 : vector<8x128xf32>
    %296 = vector.extract_strided_slice %275 {offsets = [32, 0], sizes = [8, 32], strides = [1, 1]} : vector<64x32xf32> to vector<8x32xf32>
    %c20 = arith.constant 20 : index
    %c0_257 = arith.constant 0 : index
    %c0_258 = arith.constant 0 : index
    %297 = vector.load %arg6[%c20, %c0_257, %c0_258] : memref<32x32x128xf32, #tpu.memory_space<vmem>>, vector<1x32x128xf32>
    %298 = vector.shape_cast %297 : vector<1x32x128xf32> to vector<32x128xf32>
    %cst_259 = arith.constant dense<0.000000e+00> : vector<8x128xf32>
    %299 = tpu.matmul %296, %298, %cst_259 {dimension_numbers = #tpu.dot_dimension_numbers<[1], [0], [0], [1], [0, 0, 1, 1], [], []>} : vector<8x32xf32>, vector<32x128xf32>, vector<8x128xf32> -> vector<8x128xf32>
    %300 = arith.addf %295, %299 : vector<8x128xf32>
    %301 = vector.extract_strided_slice %275 {offsets = [40, 0], sizes = [8, 32], strides = [1, 1]} : vector<64x32xf32> to vector<8x32xf32>
    %c21 = arith.constant 21 : index
    %c0_260 = arith.constant 0 : index
    %c0_261 = arith.constant 0 : index
    %302 = vector.load %arg6[%c21, %c0_260, %c0_261] : memref<32x32x128xf32, #tpu.memory_space<vmem>>, vector<1x32x128xf32>
    %303 = vector.shape_cast %302 : vector<1x32x128xf32> to vector<32x128xf32>
    %cst_262 = arith.constant dense<0.000000e+00> : vector<8x128xf32>
    %304 = tpu.matmul %301, %303, %cst_262 {dimension_numbers = #tpu.dot_dimension_numbers<[1], [0], [0], [1], [0, 0, 1, 1], [], []>} : vector<8x32xf32>, vector<32x128xf32>, vector<8x128xf32> -> vector<8x128xf32>
    %305 = arith.addf %300, %304 : vector<8x128xf32>
    %306 = vector.extract_strided_slice %275 {offsets = [48, 0], sizes = [8, 32], strides = [1, 1]} : vector<64x32xf32> to vector<8x32xf32>
    %c22 = arith.constant 22 : index
    %c0_263 = arith.constant 0 : index
    %c0_264 = arith.constant 0 : index
    %307 = vector.load %arg6[%c22, %c0_263, %c0_264] : memref<32x32x128xf32, #tpu.memory_space<vmem>>, vector<1x32x128xf32>
    %308 = vector.shape_cast %307 : vector<1x32x128xf32> to vector<32x128xf32>
    %cst_265 = arith.constant dense<0.000000e+00> : vector<8x128xf32>
    %309 = tpu.matmul %306, %308, %cst_265 {dimension_numbers = #tpu.dot_dimension_numbers<[1], [0], [0], [1], [0, 0, 1, 1], [], []>} : vector<8x32xf32>, vector<32x128xf32>, vector<8x128xf32> -> vector<8x128xf32>
    %310 = arith.addf %305, %309 : vector<8x128xf32>
    %311 = vector.extract_strided_slice %275 {offsets = [56, 0], sizes = [8, 32], strides = [1, 1]} : vector<64x32xf32> to vector<8x32xf32>
    %c23 = arith.constant 23 : index
    %c0_266 = arith.constant 0 : index
    %c0_267 = arith.constant 0 : index
    %312 = vector.load %arg6[%c23, %c0_266, %c0_267] : memref<32x32x128xf32, #tpu.memory_space<vmem>>, vector<1x32x128xf32>
    %313 = vector.shape_cast %312 : vector<1x32x128xf32> to vector<32x128xf32>
    %cst_268 = arith.constant dense<0.000000e+00> : vector<8x128xf32>
    %314 = tpu.matmul %311, %313, %cst_268 {dimension_numbers = #tpu.dot_dimension_numbers<[1], [0], [0], [1], [0, 0, 1, 1], [], []>} : vector<8x32xf32>, vector<32x128xf32>, vector<8x128xf32> -> vector<8x128xf32>
    %315 = arith.addf %310, %314 : vector<8x128xf32>
    %cst_269 = arith.constant 0.000000e+00 : f32
    %316 = vector.broadcast %cst_269 : f32 to vector<64x32xf32>
    %c240_270 = arith.constant 240 : index
    %c0_271 = arith.constant 0 : index
    %317 = vector.load %arg13[%c240_270, %c0_271] : memref<480x32xf32, #tpu.memory_space<vmem>>, vector<64x32xf32>
    %c0_272 = arith.constant 0 : index
    %c0_273 = arith.constant 0 : index
    %c0_274 = arith.constant 0 : index
    %318 = vector.load %arg4[%c0_272, %c0_273, %c0_274] : memref<9x32x32xf32, #tpu.memory_space<vmem>>, vector<1x32x32xf32>
    %319 = vector.shape_cast %318 : vector<1x32x32xf32> to vector<32x32xf32>
    %cst_275 = arith.constant dense<0.000000e+00> : vector<64x32xf32>
    %320 = tpu.matmul %317, %319, %cst_275 {dimension_numbers = #tpu.dot_dimension_numbers<[1], [0], [0], [1], [0, 0, 1, 1], [], []>} : vector<64x32xf32>, vector<32x32xf32>, vector<64x32xf32> -> vector<64x32xf32>
    %321 = arith.addf %316, %320 : vector<64x32xf32>
    %c248_276 = arith.constant 248 : index
    %c0_277 = arith.constant 0 : index
    %322 = vector.load %arg13[%c248_276, %c0_277] : memref<480x32xf32, #tpu.memory_space<vmem>>, vector<64x32xf32>
    %c1_278 = arith.constant 1 : index
    %c0_279 = arith.constant 0 : index
    %c0_280 = arith.constant 0 : index
    %323 = vector.load %arg4[%c1_278, %c0_279, %c0_280] : memref<9x32x32xf32, #tpu.memory_space<vmem>>, vector<1x32x32xf32>
    %324 = vector.shape_cast %323 : vector<1x32x32xf32> to vector<32x32xf32>
    %cst_281 = arith.constant dense<0.000000e+00> : vector<64x32xf32>
    %325 = tpu.matmul %322, %324, %cst_281 {dimension_numbers = #tpu.dot_dimension_numbers<[1], [0], [0], [1], [0, 0, 1, 1], [], []>} : vector<64x32xf32>, vector<32x32xf32>, vector<64x32xf32> -> vector<64x32xf32>
    %326 = arith.addf %321, %325 : vector<64x32xf32>
    %c256_282 = arith.constant 256 : index
    %c0_283 = arith.constant 0 : index
    %327 = vector.load %arg13[%c256_282, %c0_283] : memref<480x32xf32, #tpu.memory_space<vmem>>, vector<64x32xf32>
    %c2_284 = arith.constant 2 : index
    %c0_285 = arith.constant 0 : index
    %c0_286 = arith.constant 0 : index
    %328 = vector.load %arg4[%c2_284, %c0_285, %c0_286] : memref<9x32x32xf32, #tpu.memory_space<vmem>>, vector<1x32x32xf32>
    %329 = vector.shape_cast %328 : vector<1x32x32xf32> to vector<32x32xf32>
    %cst_287 = arith.constant dense<0.000000e+00> : vector<64x32xf32>
    %330 = tpu.matmul %327, %329, %cst_287 {dimension_numbers = #tpu.dot_dimension_numbers<[1], [0], [0], [1], [0, 0, 1, 1], [], []>} : vector<64x32xf32>, vector<32x32xf32>, vector<64x32xf32> -> vector<64x32xf32>
    %331 = arith.addf %326, %330 : vector<64x32xf32>
    %c320_288 = arith.constant 320 : index
    %c0_289 = arith.constant 0 : index
    %332 = vector.load %arg13[%c320_288, %c0_289] : memref<480x32xf32, #tpu.memory_space<vmem>>, vector<64x32xf32>
    %c3_290 = arith.constant 3 : index
    %c0_291 = arith.constant 0 : index
    %c0_292 = arith.constant 0 : index
    %333 = vector.load %arg4[%c3_290, %c0_291, %c0_292] : memref<9x32x32xf32, #tpu.memory_space<vmem>>, vector<1x32x32xf32>
    %334 = vector.shape_cast %333 : vector<1x32x32xf32> to vector<32x32xf32>
    %cst_293 = arith.constant dense<0.000000e+00> : vector<64x32xf32>
    %335 = tpu.matmul %332, %334, %cst_293 {dimension_numbers = #tpu.dot_dimension_numbers<[1], [0], [0], [1], [0, 0, 1, 1], [], []>} : vector<64x32xf32>, vector<32x32xf32>, vector<64x32xf32> -> vector<64x32xf32>
    %336 = arith.addf %331, %335 : vector<64x32xf32>
    %c328_294 = arith.constant 328 : index
    %c0_295 = arith.constant 0 : index
    %337 = vector.load %arg13[%c328_294, %c0_295] : memref<480x32xf32, #tpu.memory_space<vmem>>, vector<64x32xf32>
    %c4_296 = arith.constant 4 : index
    %c0_297 = arith.constant 0 : index
    %c0_298 = arith.constant 0 : index
    %338 = vector.load %arg4[%c4_296, %c0_297, %c0_298] : memref<9x32x32xf32, #tpu.memory_space<vmem>>, vector<1x32x32xf32>
    %339 = vector.shape_cast %338 : vector<1x32x32xf32> to vector<32x32xf32>
    %cst_299 = arith.constant dense<0.000000e+00> : vector<64x32xf32>
    %340 = tpu.matmul %337, %339, %cst_299 {dimension_numbers = #tpu.dot_dimension_numbers<[1], [0], [0], [1], [0, 0, 1, 1], [], []>} : vector<64x32xf32>, vector<32x32xf32>, vector<64x32xf32> -> vector<64x32xf32>
    %341 = arith.addf %336, %340 : vector<64x32xf32>
    %c336_300 = arith.constant 336 : index
    %c0_301 = arith.constant 0 : index
    %342 = vector.load %arg13[%c336_300, %c0_301] : memref<480x32xf32, #tpu.memory_space<vmem>>, vector<64x32xf32>
    %c5_302 = arith.constant 5 : index
    %c0_303 = arith.constant 0 : index
    %c0_304 = arith.constant 0 : index
    %343 = vector.load %arg4[%c5_302, %c0_303, %c0_304] : memref<9x32x32xf32, #tpu.memory_space<vmem>>, vector<1x32x32xf32>
    %344 = vector.shape_cast %343 : vector<1x32x32xf32> to vector<32x32xf32>
    %cst_305 = arith.constant dense<0.000000e+00> : vector<64x32xf32>
    %345 = tpu.matmul %342, %344, %cst_305 {dimension_numbers = #tpu.dot_dimension_numbers<[1], [0], [0], [1], [0, 0, 1, 1], [], []>} : vector<64x32xf32>, vector<32x32xf32>, vector<64x32xf32> -> vector<64x32xf32>
    %346 = arith.addf %341, %345 : vector<64x32xf32>
    %c400_306 = arith.constant 400 : index
    %c0_307 = arith.constant 0 : index
    %347 = vector.load %arg13[%c400_306, %c0_307] : memref<480x32xf32, #tpu.memory_space<vmem>>, vector<64x32xf32>
    %c6_308 = arith.constant 6 : index
    %c0_309 = arith.constant 0 : index
    %c0_310 = arith.constant 0 : index
    %348 = vector.load %arg4[%c6_308, %c0_309, %c0_310] : memref<9x32x32xf32, #tpu.memory_space<vmem>>, vector<1x32x32xf32>
    %349 = vector.shape_cast %348 : vector<1x32x32xf32> to vector<32x32xf32>
    %cst_311 = arith.constant dense<0.000000e+00> : vector<64x32xf32>
    %350 = tpu.matmul %347, %349, %cst_311 {dimension_numbers = #tpu.dot_dimension_numbers<[1], [0], [0], [1], [0, 0, 1, 1], [], []>} : vector<64x32xf32>, vector<32x32xf32>, vector<64x32xf32> -> vector<64x32xf32>
    %351 = arith.addf %346, %350 : vector<64x32xf32>
    %c408 = arith.constant 408 : index
    %c0_312 = arith.constant 0 : index
    %352 = vector.load %arg13[%c408, %c0_312] : memref<480x32xf32, #tpu.memory_space<vmem>>, vector<64x32xf32>
    %c7_313 = arith.constant 7 : index
    %c0_314 = arith.constant 0 : index
    %c0_315 = arith.constant 0 : index
    %353 = vector.load %arg4[%c7_313, %c0_314, %c0_315] : memref<9x32x32xf32, #tpu.memory_space<vmem>>, vector<1x32x32xf32>
    %354 = vector.shape_cast %353 : vector<1x32x32xf32> to vector<32x32xf32>
    %cst_316 = arith.constant dense<0.000000e+00> : vector<64x32xf32>
    %355 = tpu.matmul %352, %354, %cst_316 {dimension_numbers = #tpu.dot_dimension_numbers<[1], [0], [0], [1], [0, 0, 1, 1], [], []>} : vector<64x32xf32>, vector<32x32xf32>, vector<64x32xf32> -> vector<64x32xf32>
    %356 = arith.addf %351, %355 : vector<64x32xf32>
    %c416 = arith.constant 416 : index
    %c0_317 = arith.constant 0 : index
    %357 = vector.load %arg13[%c416, %c0_317] : memref<480x32xf32, #tpu.memory_space<vmem>>, vector<64x32xf32>
    %c8_318 = arith.constant 8 : index
    %c0_319 = arith.constant 0 : index
    %c0_320 = arith.constant 0 : index
    %358 = vector.load %arg4[%c8_318, %c0_319, %c0_320] : memref<9x32x32xf32, #tpu.memory_space<vmem>>, vector<1x32x32xf32>
    %359 = vector.shape_cast %358 : vector<1x32x32xf32> to vector<32x32xf32>
    %cst_321 = arith.constant dense<0.000000e+00> : vector<64x32xf32>
    %360 = tpu.matmul %357, %359, %cst_321 {dimension_numbers = #tpu.dot_dimension_numbers<[1], [0], [0], [1], [0, 0, 1, 1], [], []>} : vector<64x32xf32>, vector<32x32xf32>, vector<64x32xf32> -> vector<64x32xf32>
    %361 = arith.addf %356, %360 : vector<64x32xf32>
    %362 = vector.broadcast %2 : vector<1x32xf32> to vector<64x32xf32>
    %363 = arith.addf %361, %362 : vector<64x32xf32>
    %cst_322 = arith.constant 0.000000e+00 : f32
    %364 = vector.broadcast %cst_322 : f32 to vector<64x32xf32>
    %365 = arith.maximumf %363, %364 : vector<64x32xf32>
    %366 = vector.extract_strided_slice %365 {offsets = [0, 0], sizes = [8, 32], strides = [1, 1]} : vector<64x32xf32> to vector<8x32xf32>
    %c24 = arith.constant 24 : index
    %c0_323 = arith.constant 0 : index
    %c0_324 = arith.constant 0 : index
    %367 = vector.load %arg6[%c24, %c0_323, %c0_324] : memref<32x32x128xf32, #tpu.memory_space<vmem>>, vector<1x32x128xf32>
    %368 = vector.shape_cast %367 : vector<1x32x128xf32> to vector<32x128xf32>
    %cst_325 = arith.constant dense<0.000000e+00> : vector<8x128xf32>
    %369 = tpu.matmul %366, %368, %cst_325 {dimension_numbers = #tpu.dot_dimension_numbers<[1], [0], [0], [1], [0, 0, 1, 1], [], []>} : vector<8x32xf32>, vector<32x128xf32>, vector<8x128xf32> -> vector<8x128xf32>
    %370 = arith.addf %315, %369 : vector<8x128xf32>
    %371 = vector.extract_strided_slice %365 {offsets = [8, 0], sizes = [8, 32], strides = [1, 1]} : vector<64x32xf32> to vector<8x32xf32>
    %c25 = arith.constant 25 : index
    %c0_326 = arith.constant 0 : index
    %c0_327 = arith.constant 0 : index
    %372 = vector.load %arg6[%c25, %c0_326, %c0_327] : memref<32x32x128xf32, #tpu.memory_space<vmem>>, vector<1x32x128xf32>
    %373 = vector.shape_cast %372 : vector<1x32x128xf32> to vector<32x128xf32>
    %cst_328 = arith.constant dense<0.000000e+00> : vector<8x128xf32>
    %374 = tpu.matmul %371, %373, %cst_328 {dimension_numbers = #tpu.dot_dimension_numbers<[1], [0], [0], [1], [0, 0, 1, 1], [], []>} : vector<8x32xf32>, vector<32x128xf32>, vector<8x128xf32> -> vector<8x128xf32>
    %375 = arith.addf %370, %374 : vector<8x128xf32>
    %376 = vector.extract_strided_slice %365 {offsets = [16, 0], sizes = [8, 32], strides = [1, 1]} : vector<64x32xf32> to vector<8x32xf32>
    %c26 = arith.constant 26 : index
    %c0_329 = arith.constant 0 : index
    %c0_330 = arith.constant 0 : index
    %377 = vector.load %arg6[%c26, %c0_329, %c0_330] : memref<32x32x128xf32, #tpu.memory_space<vmem>>, vector<1x32x128xf32>
    %378 = vector.shape_cast %377 : vector<1x32x128xf32> to vector<32x128xf32>
    %cst_331 = arith.constant dense<0.000000e+00> : vector<8x128xf32>
    %379 = tpu.matmul %376, %378, %cst_331 {dimension_numbers = #tpu.dot_dimension_numbers<[1], [0], [0], [1], [0, 0, 1, 1], [], []>} : vector<8x32xf32>, vector<32x128xf32>, vector<8x128xf32> -> vector<8x128xf32>
    %380 = arith.addf %375, %379 : vector<8x128xf32>
    %381 = vector.extract_strided_slice %365 {offsets = [24, 0], sizes = [8, 32], strides = [1, 1]} : vector<64x32xf32> to vector<8x32xf32>
    %c27 = arith.constant 27 : index
    %c0_332 = arith.constant 0 : index
    %c0_333 = arith.constant 0 : index
    %382 = vector.load %arg6[%c27, %c0_332, %c0_333] : memref<32x32x128xf32, #tpu.memory_space<vmem>>, vector<1x32x128xf32>
    %383 = vector.shape_cast %382 : vector<1x32x128xf32> to vector<32x128xf32>
    %cst_334 = arith.constant dense<0.000000e+00> : vector<8x128xf32>
    %384 = tpu.matmul %381, %383, %cst_334 {dimension_numbers = #tpu.dot_dimension_numbers<[1], [0], [0], [1], [0, 0, 1, 1], [], []>} : vector<8x32xf32>, vector<32x128xf32>, vector<8x128xf32> -> vector<8x128xf32>
    %385 = arith.addf %380, %384 : vector<8x128xf32>
    %386 = vector.extract_strided_slice %365 {offsets = [32, 0], sizes = [8, 32], strides = [1, 1]} : vector<64x32xf32> to vector<8x32xf32>
    %c28 = arith.constant 28 : index
    %c0_335 = arith.constant 0 : index
    %c0_336 = arith.constant 0 : index
    %387 = vector.load %arg6[%c28, %c0_335, %c0_336] : memref<32x32x128xf32, #tpu.memory_space<vmem>>, vector<1x32x128xf32>
    %388 = vector.shape_cast %387 : vector<1x32x128xf32> to vector<32x128xf32>
    %cst_337 = arith.constant dense<0.000000e+00> : vector<8x128xf32>
    %389 = tpu.matmul %386, %388, %cst_337 {dimension_numbers = #tpu.dot_dimension_numbers<[1], [0], [0], [1], [0, 0, 1, 1], [], []>} : vector<8x32xf32>, vector<32x128xf32>, vector<8x128xf32> -> vector<8x128xf32>
    %390 = arith.addf %385, %389 : vector<8x128xf32>
    %391 = vector.extract_strided_slice %365 {offsets = [40, 0], sizes = [8, 32], strides = [1, 1]} : vector<64x32xf32> to vector<8x32xf32>
    %c29 = arith.constant 29 : index
    %c0_338 = arith.constant 0 : index
    %c0_339 = arith.constant 0 : index
    %392 = vector.load %arg6[%c29, %c0_338, %c0_339] : memref<32x32x128xf32, #tpu.memory_space<vmem>>, vector<1x32x128xf32>
    %393 = vector.shape_cast %392 : vector<1x32x128xf32> to vector<32x128xf32>
    %cst_340 = arith.constant dense<0.000000e+00> : vector<8x128xf32>
    %394 = tpu.matmul %391, %393, %cst_340 {dimension_numbers = #tpu.dot_dimension_numbers<[1], [0], [0], [1], [0, 0, 1, 1], [], []>} : vector<8x32xf32>, vector<32x128xf32>, vector<8x128xf32> -> vector<8x128xf32>
    %395 = arith.addf %390, %394 : vector<8x128xf32>
    %396 = vector.extract_strided_slice %365 {offsets = [48, 0], sizes = [8, 32], strides = [1, 1]} : vector<64x32xf32> to vector<8x32xf32>
    %c30 = arith.constant 30 : index
    %c0_341 = arith.constant 0 : index
    %c0_342 = arith.constant 0 : index
    %397 = vector.load %arg6[%c30, %c0_341, %c0_342] : memref<32x32x128xf32, #tpu.memory_space<vmem>>, vector<1x32x128xf32>
    %398 = vector.shape_cast %397 : vector<1x32x128xf32> to vector<32x128xf32>
    %cst_343 = arith.constant dense<0.000000e+00> : vector<8x128xf32>
    %399 = tpu.matmul %396, %398, %cst_343 {dimension_numbers = #tpu.dot_dimension_numbers<[1], [0], [0], [1], [0, 0, 1, 1], [], []>} : vector<8x32xf32>, vector<32x128xf32>, vector<8x128xf32> -> vector<8x128xf32>
    %400 = arith.addf %395, %399 : vector<8x128xf32>
    %401 = vector.extract_strided_slice %365 {offsets = [56, 0], sizes = [8, 32], strides = [1, 1]} : vector<64x32xf32> to vector<8x32xf32>
    %c31 = arith.constant 31 : index
    %c0_344 = arith.constant 0 : index
    %c0_345 = arith.constant 0 : index
    %402 = vector.load %arg6[%c31, %c0_344, %c0_345] : memref<32x32x128xf32, #tpu.memory_space<vmem>>, vector<1x32x128xf32>
    %403 = vector.shape_cast %402 : vector<1x32x128xf32> to vector<32x128xf32>
    %cst_346 = arith.constant dense<0.000000e+00> : vector<8x128xf32>
    %404 = tpu.matmul %401, %403, %cst_346 {dimension_numbers = #tpu.dot_dimension_numbers<[1], [0], [0], [1], [0, 0, 1, 1], [], []>} : vector<8x32xf32>, vector<32x128xf32>, vector<8x128xf32> -> vector<8x128xf32>
    %405 = arith.addf %400, %404 : vector<8x128xf32>
    %c0_347 = arith.constant 0 : index
    %c0_348 = arith.constant 0 : index
    %406 = vector.load %arg7[%c0_347, %c0_348] : memref<1x128xf32, #tpu.memory_space<vmem>>, vector<1x128xf32>
    %407 = vector.broadcast %406 : vector<1x128xf32> to vector<8x128xf32>
    %408 = arith.addf %405, %407 : vector<8x128xf32>
    %cst_349 = arith.constant 0.000000e+00 : f32
    %409 = vector.broadcast %cst_349 : f32 to vector<8x128xf32>
    %410 = arith.maximumf %408, %409 : vector<8x128xf32>
    %c0_350 = arith.constant 0 : index
    %c0_351 = arith.constant 0 : index
    %411 = vector.load %arg8[%c0_350, %c0_351] : memref<128x128xf32, #tpu.memory_space<vmem>>, vector<128x128xf32>
    %cst_352 = arith.constant dense<0.000000e+00> : vector<8x128xf32>
    %412 = tpu.matmul %410, %411, %cst_352 {dimension_numbers = #tpu.dot_dimension_numbers<[1], [0], [0], [1], [0, 0, 1, 1], [], []>} : vector<8x128xf32>, vector<128x128xf32>, vector<8x128xf32> -> vector<8x128xf32>
    %c0_353 = arith.constant 0 : index
    %c0_354 = arith.constant 0 : index
    %413 = vector.load %arg9[%c0_353, %c0_354] : memref<1x128xf32, #tpu.memory_space<vmem>>, vector<1x128xf32>
    %414 = vector.broadcast %413 : vector<1x128xf32> to vector<8x128xf32>
    %415 = arith.addf %412, %414 : vector<8x128xf32>
    %cst_355 = arith.constant 0.000000e+00 : f32
    %416 = vector.broadcast %cst_355 : f32 to vector<8x128xf32>
    %417 = arith.maximumf %415, %416 : vector<8x128xf32>
    %c0_356 = arith.constant 0 : index
    %c0_357 = arith.constant 0 : index
    %418 = vector.load %arg10[%c0_356, %c0_357] : memref<128x128xf32, #tpu.memory_space<vmem>>, vector<128x128xf32>
    %cst_358 = arith.constant dense<0.000000e+00> : vector<8x128xf32>
    %419 = tpu.matmul %417, %418, %cst_358 {dimension_numbers = #tpu.dot_dimension_numbers<[1], [0], [0], [1], [0, 0, 1, 1], [], []>} : vector<8x128xf32>, vector<128x128xf32>, vector<8x128xf32> -> vector<8x128xf32>
    %c0_359 = arith.constant 0 : index
    %c0_360 = arith.constant 0 : index
    %420 = vector.load %arg11[%c0_359, %c0_360] : memref<1x128xf32, #tpu.memory_space<vmem>>, vector<1x128xf32>
    %421 = vector.broadcast %420 : vector<1x128xf32> to vector<8x128xf32>
    %422 = arith.addf %419, %421 : vector<8x128xf32>
    %c0_361 = arith.constant 0 : index
    %c0_362 = arith.constant 0 : index
    %423 = vector.load %arg12[%c0_361, %c0_362] : memref<8x128xf32, #tpu.memory_space<vmem>>, vector<8x128xf32>
    tpu.vector_store %arg12[%c0_361, %c0_362], %422 {strides = array<i32>} : memref<8x128xf32, #tpu.memory_space<vmem>>, vector<8x128xf32>,
    return
  }
  func.func @transform_0(%arg0: i32) -> (i32, i32) {
    %c0_i32 = arith.constant 0 : i32
    %c0_i32_0 = arith.constant 0 : i32
    return %arg0, %c0_i32 : i32, i32
  }
  func.func @transform_1(%arg0: i32) -> (i32, i32) {
    %c0_i32 = arith.constant 0 : i32
    %c0_i32_0 = arith.constant 0 : i32
    %c0_i32_1 = arith.constant 0 : i32
    return %c0_i32, %c0_i32_0 : i32, i32
  }
  func.func @transform_2(%arg0: i32) -> (i32, i32) {
    %c0_i32 = arith.constant 0 : i32
    %c0_i32_0 = arith.constant 0 : i32
    %c0_i32_1 = arith.constant 0 : i32
    return %c0_i32, %c0_i32_0 : i32, i32
  }
  func.func @transform_3(%arg0: i32) -> (i32, i32, i32) {
    %c0_i32 = arith.constant 0 : i32
    %c0_i32_0 = arith.constant 0 : i32
    %c0_i32_1 = arith.constant 0 : i32
    %c0_i32_2 = arith.constant 0 : i32
    return %c0_i32, %c0_i32_0, %c0_i32_1 : i32, i32, i32
  }
  func.func @transform_4(%arg0: i32) -> (i32, i32) {
    %c0_i32 = arith.constant 0 : i32
    %c0_i32_0 = arith.constant 0 : i32
    %c0_i32_1 = arith.constant 0 : i32
    return %c0_i32, %c0_i32_0 : i32, i32
  }
  func.func @transform_5(%arg0: i32) -> (i32, i32, i32) {
    %c0_i32 = arith.constant 0 : i32
    %c0_i32_0 = arith.constant 0 : i32
    %c0_i32_1 = arith.constant 0 : i32
    %c0_i32_2 = arith.constant 0 : i32
    return %c0_i32, %c0_i32_0, %c0_i32_1 : i32, i32, i32
  }
  func.func @transform_6(%arg0: i32) -> (i32, i32) {
    %c0_i32 = arith.constant 0 : i32
    %c0_i32_0 = arith.constant 0 : i32
    %c0_i32_1 = arith.constant 0 : i32
    return %c0_i32, %c0_i32_0 : i32, i32
  }
  func.func @transform_7(%arg0: i32) -> (i32, i32) {
    %c0_i32 = arith.constant 0 : i32
    %c0_i32_0 = arith.constant 0 : i32
    %c0_i32_1 = arith.constant 0 : i32
    return %c0_i32, %c0_i32_0 : i32, i32
  }
  func.func @transform_8(%arg0: i32) -> (i32, i32) {
    %c0_i32 = arith.constant 0 : i32
    %c0_i32_0 = arith.constant 0 : i32
    %c0_i32_1 = arith.constant 0 : i32
    return %c0_i32, %c0_i32_0 : i32, i32
  }
  func.func @transform_9(%arg0: i32) -> (i32, i32) {
    %c0_i32 = arith.constant 0 : i32
    %c0_i32_0 = arith.constant 0 : i32
    %c0_i32_1 = arith.constant 0 : i32
    return %c0_i32, %c0_i32_0 : i32, i32
  }
  func.func @transform_10(%arg0: i32) -> (i32, i32) {
    %c0_i32 = arith.constant 0 : i32
    %c0_i32_0 = arith.constant 0 : i32
    %c0_i32_1 = arith.constant 0 : i32
    return %c0_i32, %c0_i32_0 : i32, i32
  }
  func.func @transform_11(%arg0: i32) -> (i32, i32) {
    %c0_i32 = arith.constant 0 : i32
    %c0_i32_0 = arith.constant 0 : i32
    return %arg0, %c0_i32 : i32, i32
  }
}

</mosaic_0001>

<bundles_post_ra>
// kernel: mlmodel_forward.1
= control target key start
LH: loop header
LB: loop body
LE: loop exit
PB: predicated region body
PF: predicated region fallthrough
CT: control target
= control target key end

     0   :  { %vm86_vm0 = vcmask 1040384   ;;  %vm55_vm1 = vcmask 72704   ;;  %vm147_vm2 = vcmask 261120   ;;  %s7335_s1 = inlined_call_operand.vmem [shape: f32[9,32], index: 1, kind: input, shape index: {}]   ;;  %s7336_s0 = inlined_call_operand.vmem [shape: f32[480,9], index: 0, kind: input, shape index: {}]   ;;  %s7337_s2 = inlined_call_operand.vmem [shape: f32[1,32], index: 2, kind: input, shape index: {}]   ;;  %s7338_s3 = inlined_call_operand.vmem [shape: f32[9,32,32], index: 3, kind: input, shape index: {}]   ;;  %s7339_s4 = inlined_call_operand.vmem [shape: f32[1,32], index: 4, kind: input, shape index: {}]   ;;  %s7340_s5 = inlined_call_operand.vmem [shape: f32[32,32,128], index: 5, kind: input, shape index: {}]   ;;  %s7341_s7 = inlined_call_operand.vmem [shape: f32[128,128], index: 7, kind: input, shape index: {}]   ;;  %s7342_s6 = inlined_call_operand.vmem [shape: f32[1,128], index: 6, kind: input, shape index: {}]   ;;  %s7343_s8 = inlined_call_operand.vmem [shape: f32[1,128], index: 8, kind: input, shape index: {}]   ;;  %s7344_s9 = inlined_call_operand.vmem [shape: f32[128,128], index: 9, kind: input, shape index: {}]   ;;  %s7345_s10 = inlined_call_operand.vmem [shape: f32[1,128], index: 10, kind: input, shape index: {}]   ;;  %s7346_s11 = inlined_call_operand.vmem [shape: f32[8,128], index: 11, kind: output, shape index: {}]  }
   0x1   :  { %v39_v0 = vld [vmem:[%s7335_s1 + $0x8] sm:$0x1]  ;;  %v38_v1 = vld [vmem:[%s7335_s1] sm:$0xff]  ;;  %v158_v3 = vld [vmem:[%s7336_s0 + $0x50] sm:$0xff] }
   0x2   :  { %4069 = vmatpush.msk.msra.mxu0 %vm86_vm0, %v39_v0  ;;  %4080 = vmatpush.msk.msra.mxu1 %vm86_vm0, %v39_v0  ;;  %v42_v2 = vld [vmem:[%s7336_s0] sm:$0xff]  ;;  %v43_v4 = vld [vmem:[%s7336_s0 + $0x8] sm:$0xff]  ;;  %v159_v5 = vld [vmem:[%s7336_s0 + $0x58] sm:$0xff] }
   0x3   :  { %4611 = vmatpush.msk.msra.mxu3 %vm86_vm0, %v39_v0  ;;  %4613 = vmatpush.msk.msra.mxu2 %vm86_vm0, %v39_v0  ;;  %v44_v6 = vld [vmem:[%s7336_s0 + $0x10] sm:$0xff]  ;;  %v160_v7 = vld [vmem:[%s7336_s0 + $0x60] sm:$0xff]  ;;  %v167_v8 = vld [vmem:[%s7336_s0 + $0x98] sm:$0xff] }
   0x4   :  { %105 = vmatpush.msra.mxu0 %v38_v1  ;;  %213 = vmatpush.msra.mxu1 %v38_v1  ;;  %v45_v9 = vld [vmem:[%s7336_s0 + $0x18] sm:$0xff]  ;;  %v161_v10 = vld [vmem:[%s7336_s0 + $0x68] sm:$0xff]  ;;  %v372_v11 = vld [vmem:[%s7336_s0 + $0xf0] sm:$0xff] }
   0x5   :  { %4070 = vmatmul.msk.f32.vlgmr.msra.gmra.mxu0 %vm55_vm1, %v42_v2  ;;  %4081 = vmatmul.msk.f32.vlgmr.msra.gmra.mxu1 %vm55_vm1, %v158_v3  ;;  %v46_v12 = vld [vmem:[%s7336_s0 + $0x20] sm:$0xff]  ;;  %v162_v13 = vld [vmem:[%s7336_s0 + $0x70] sm:$0xff]  ;;  %v373_v14 = vld [vmem:[%s7336_s0 + $0xf8] sm:$0xff] }
   0x6   :  { %4612 = vmatpush.msra.mxu3 %v38_v1  ;;  %4091 = vmatpush.msk.msrb.mxu0 %vm86_vm0, %v39_v0  ;;  %v704_v15 = vld [vmem:[%s7338_s3 + $0x18] sm:$0xff]  ;;  %v47_v16 = vld [vmem:[%s7336_s0 + $0x28] sm:$0xff]  ;;  %v374_v19 = vld [vmem:[%s7336_s0 + $0x100] sm:$0xff] }
   0x7   :  { %4124 = vmatpush.msk.msrb.mxu1 %vm86_vm0, %v39_v0  ;;  %4614 = vmatpush.msra.mxu2 %v38_v1  ;;  %v163_v17 = vld [vmem:[%s7336_s0 + $0x78] sm:$0xff]  ;;  %v266_v18 = vld [vmem:[%s7336_s0 + $0xa8] sm:$0xff]  ;;  %v48_v21 = vld [vmem:[%s7336_s0 + $0x30] sm:$0xff] }
   0x8   :  { %4102 = vmatpush.msk.msrb.mxu3 %vm86_vm0, %v39_v0  ;;  %320 = vmatpush.msrb.mxu0 %v38_v1  ;;  %v4138_v20 = vld [vmem:[%s7338_s3 + $0x38] sm:$0xff]  ;;  %v164_v22 = vld [vmem:[%s7336_s0 + $0x80] sm:$0xff]  ;;  %v267_v23 = vld [vmem:[%s7336_s0 + $0xb0] sm:$0xff] }
   0x9   :  { %641 = vmatpush.msrb.mxu1 %v38_v1  ;;  %4090 = vmatmul.msk.f32.vlgmr.msra.gmra.mxu3 %vm55_vm1, %v167_v8  ;;  %v375_v24 = vld [vmem:[%s7336_s0 + $0x108] sm:$0xff]  ;;  %v49_v25 = vld [vmem:[%s7336_s0 + $0x38] sm:$0xff]  ;;  %v703_v27 = vld [vmem:[%s7338_s3 + $0x10] sm:$0xff] }
   0xa   :  { %427 = vmatpush.msrb.mxu3 %v38_v1  ;;  %4113 = vmatpush.msk.msra.mxu0 %vm86_vm0, %v39_v0  ;;  %v165_v26 = vld [vmem:[%s7336_s0 + $0x88] sm:$0xff]  ;;  %v268_v28 = vld [vmem:[%s7336_s0 + $0xb8] sm:$0xff]  ;;  %v376_v29 = vld [vmem:[%s7336_s0 + $0x110] sm:$0xff] }
   0xb   :  { %4093 = vmatmul.msk.f32.vlgmr.msra.gmra.mxu2 %vm55_vm1, %v266_v18  ;;  %v4137_v30 = vld [vmem:[%s7338_s3 + $0x30] sm:$0xff]  ;;  %v50_v31 = vld [vmem:[%s7336_s0 + $0x40] sm:$0xff]  ;;  %v377_v34 = vld [vmem:[%s7336_s0 + $0x118] sm:$0xff] }
   0xc   :  { %534 = vmatpush.msra.mxu0 %v38_v1  ;;  %791 = vmatpush.msra.mxu3 %v704_v15  ;;  %v166_v32 = vld [vmem:[%s7336_s0 + $0x90] sm:$0xff]  ;;  %v269_v33 = vld [vmem:[%s7336_s0 + $0xc0] sm:$0xff]  ;;  %v51_v35 = vld [vmem:[%s7336_s0 + $0x48] sm:$0xff] }
   0xd   :  { %4071 = vmatmul.msk.f32.gmra.mxu0 %vm55_vm1, %v43_v4  ;;  %4082 = vmatmul.msk.f32.gmra.mxu1 %vm55_vm1, %v159_v5  ;;  %v586_v36 = vld [vmem:[%s7336_s0 + $0x190] sm:$0xff]  ;;  %v270_v37 = vld [vmem:[%s7336_s0 + $0xc8] sm:$0xff]  ;;  %v378_v38 = vld [vmem:[%s7336_s0 + $0x120] sm:$0xff] }
   0xe   :  { %747 = vmatpush.msrb.mxu2 %v4138_v20  ;;  %792 = vmatpush.msra.mxu3 %v703_v27  ;;  %v702_v39 = vld [vmem:[%s7338_s3 + $0x8] sm:$0xff]  ;;  %v265_v41 = vld [vmem:[%s7336_s0 + $0xa0] sm:$0xff]  ;;  %v587_v42 = vld [vmem:[%s7336_s0 + $0x198] sm:$0xff] }
   0xf   :  { %v4136_v40 = vld [vmem:[%s7338_s3 + $0x28] sm:$0xff]  ;;  %v271_v43 = vld [vmem:[%s7336_s0 + $0xd0] sm:$0xff]  ;;  %v479_v45 = vld [vmem:[%s7336_s0 + $0x140] sm:$0xff] }
  0x10   :  { %748 = vmatpush.msrb.mxu2 %v4137_v30  ;;  %793 = vmatpush.msra.mxu3 %v702_v39  ;;  %v379_v44 = vld [vmem:[%s7336_s0 + $0x128] sm:$0xff]  ;;  %v588_v46 = vld [vmem:[%s7336_s0 + $0x1a0] sm:$0xff]  ;;  %v272_v47 = vld [vmem:[%s7336_s0 + $0xd8] sm:$0xff] }
  0x11   :  { %4103 = vmatmul.msk.f32.vlgmr.msrb.gmra.mxu3 %vm55_vm1, %v372_v11  ;;  %v380_v48 = vld [vmem:[%s7336_s0 + $0x130] sm:$0xff]  ;;  %v480_v49 = vld [vmem:[%s7336_s0 + $0x148] sm:$0xff]  ;;  %v273_v51 = vld [vmem:[%s7336_s0 + $0xe0] sm:$0xff] }
  0x12   :  { %749 = vmatpush.msrb.mxu2 %v4136_v40  ;;  %v589_v50 = vld [vmem:[%s7336_s0 + $0x1a8] sm:$0xff]  ;;  %v381_v52 = vld [vmem:[%s7336_s0 + $0x138] sm:$0xff]  ;;  %v4135_v53 = vld [vmem:[%s7338_s3 + $0x20] sm:$0xff] }
  0x13   :  { %4094 = vmatmul.msk.f32.gmra.mxu2 %vm55_vm1, %v267_v23  ;;  %v701_v54 = vld [vmem:[%s7338_s3] sm:$0xff]  ;;  %v481_v55 = vld [vmem:[%s7336_s0 + $0x150] sm:$0xff]  ;;  %v274_v57 = vld [vmem:[%s7336_s0 + $0xe8] sm:$0xff] }
  0x14   :  { %750 = vmatpush.msrb.mxu2 %v4135_v53  ;;  %794 = vmatpush.msra.mxu3 %v701_v54  ;;  %v590_v56 = vld [vmem:[%s7336_s0 + $0x1b0] sm:$0xff]  ;;  %v4182_v58 = vld [vmem:[%s7338_s3 + $0x98] sm:$0xff]  ;;  %v483_v0 = vld [vmem:[%s7336_s0 + $0x160] sm:$0xff] }
  0x15   :  { %4072 = vmatmul.msk.f32.gmra.mxu0 %vm55_vm1, %v44_v6  ;;  %4083 = vmatmul.msk.f32.gmra.mxu1 %vm55_vm1, %v160_v7  ;;  %v482_v59 = vld [vmem:[%s7336_s0 + $0x158] sm:$0xff]  ;;  %v592_v1 = vld [vmem:[%s7336_s0 + $0x1c0] sm:$0xff]  ;;  %v4193_v2 = vld [vmem:[%s7338_s3 + $0xb0] sm:$0xff] }
  0x16   :  { %v591_v60 = vld [vmem:[%s7336_s0 + $0x1b8] sm:$0xff]  ;;  %v4192_v3 = vld [vmem:[%s7338_s3 + $0xa8] sm:$0xff]  ;;  %v4191_v4 = vld [vmem:[%s7338_s3 + $0xa0] sm:$0xff] }
  0x17   :  { %v4158_v61 = vld [vmem:[%s7338_s3 + $0x58] sm:$0xff]  ;;  %v5036_v5 = vld [vmem:[%s7337_s2] ss:$0 sm:$0xff]  ;;  %v484_v8 = vld [vmem:[%s7336_s0 + $0x168] sm:$0xff] }
  0x18   :  { %v4194_v62 = vld [vmem:[%s7338_s3 + $0xb8] sm:$0xff]  ;;  %869 = vmatpush.msra.mxu2 %v4158_v61  ;;  %v4157_v15 = vld [vmem:[%s7338_s3 + $0x50] sm:$0xff] }
  0x19   :  { %4104 = vmatmul.msk.f32.gmra.mxu3 %vm55_vm1, %v373_v14  ;;  %v5013_v63 = vld [vmem:[%s7338_s3 + $0x78] sm:$0xff]  ;;  %1127 = vmatpush.msra.mxu1 %v4194_v62  ;;  %v4181_v14 = vld [vmem:[%s7338_s3 + $0x90] sm:$0xff]  ;;  %v4155_v62 = vld [vmem:[%s7338_s3 + $0x40] sm:$0xff] }
  0x1a   :  { %955 = vmatpush.msrb.mxu3 %v5013_v63  ;;  %870 = vmatpush.msra.mxu2 %v4157_v15  ;;  %v594_v20 = vld [vmem:[%s7336_s0 + $0x1d0] sm:$0xff]  ;;  %v486_v30 = vld [vmem:[%s7336_s0 + $0x178] sm:$0xff] }
  0x1b   :  { %4095 = vmatmul.msk.f32.gmra.mxu2 %vm55_vm1, %v268_v28  ;;  %1128 = vmatpush.msra.mxu1 %v4193_v2 }
  0x1d   :  { %4073 = vmatmul.msk.f32.gmra.mxu0 %vm55_vm1, %v45_v9  ;;  %4084 = vmatmul.msk.f32.gmra.mxu1 %vm55_vm1, %v161_v10  ;;  %v593_v9 = vld [vmem:[%s7336_s0 + $0x1c8] sm:$0xff] }
  0x1e   :  { %1129 = vmatpush.msra.mxu1 %v4192_v3 }
  0x20   :  { %1130 = vmatpush.msra.mxu1 %v4191_v4 }
  0x21   :  { %4105 = vmatmul.msk.f32.gmra.mxu3 %vm55_vm1, %v374_v19  ;;  %v485_v19 = vld [vmem:[%s7336_s0 + $0x170] sm:$0xff] }
  0x23   :  { %4096 = vmatmul.msk.f32.gmra.mxu2 %vm55_vm1, %v269_v33 }
  0x25   :  { %4074 = vmatmul.msk.f32.gmra.mxu0 %vm55_vm1, %v46_v12  ;;  %4085 = vmatmul.msk.f32.gmra.mxu1 %vm55_vm1, %v162_v13 }
  0x29   :  { %4106 = vmatmul.msk.f32.gmra.mxu3 %vm55_vm1, %v375_v24  ;;  %v4179_v24 = vld [vmem:[%s7338_s3 + $0x80] sm:$0xff] }
  0x2b   :  { %4097 = vmatmul.msk.f32.gmra.mxu2 %vm55_vm1, %v270_v37  ;;  %v4156_v37 = vld [vmem:[%s7338_s3 + $0x48] sm:$0xff] }
  0x2c   :  { %871 = vmatpush.msra.mxu2 %v4156_v37 }
  0x2d   :  { %4075 = vmatmul.msk.f32.gmra.mxu0 %vm55_vm1, %v47_v16  ;;  %4086 = vmatmul.msk.f32.gmra.mxu1 %vm55_vm1, %v163_v17  ;;  %v5059_v16 = vld [vmem:[%s7338_s3 + $0x70] sm:$0xff] }
  0x2e   :  { %956 = vmatpush.msrb.mxu3 %v5059_v16  ;;  %872 = vmatpush.msra.mxu2 %v4155_v62 }
  0x31   :  { %4107 = vmatmul.msk.f32.gmra.mxu3 %vm55_vm1, %v376_v29 }
  0x33   :  { %4098 = vmatmul.msk.f32.gmra.mxu2 %vm55_vm1, %v271_v43 }
  0x35   :  { %4076 = vmatmul.msk.f32.gmra.mxu0 %vm55_vm1, %v48_v21  ;;  %4087 = vmatmul.msk.f32.gmra.mxu1 %vm55_vm1, %v164_v22  ;;  %v4180_v21 = vld [vmem:[%s7338_s3 + $0x88] sm:$0xff] }
  0x39   :  { %4108 = vmatmul.msk.f32.gmra.mxu3 %vm55_vm1, %v377_v34 }
  0x3b   :  { %4099 = vmatmul.msk.f32.gmra.mxu2 %vm55_vm1, %v272_v47 }
  0x3d   :  { %4077 = vmatmul.msk.f32.gmra.mxu0 %vm55_vm1, %v49_v25  ;;  %4088 = vmatmul.msk.f32.gmra.mxu1 %vm55_vm1, %v165_v26 }
  0x41   :  { %4109 = vmatmul.msk.f32.gmra.mxu3 %vm55_vm1, %v378_v38  ;;  %v5101_v38 = vld [vmem:[%s7338_s3 + $0x68] sm:$0xff] }
  0x42   :  { %957 = vmatpush.msrb.mxu3 %v5101_v38 }
  0x43   :  { %4100 = vmatmul.msk.f32.gmra.mxu2 %vm55_vm1, %v273_v51 }
  0x45   :  { %4078 = vmatmul.msk.f32.gmra.mxu0 %vm55_vm1, %v50_v31  ;;  %4089 = vmatmul.msk.f32.gmra.mxu1 %vm55_vm1, %v166_v32  ;;  %v595_v31 = vld [vmem:[%s7336_s0 + $0x1d8] sm:$0xff] }
  0x49   :  { %4110 = vmatmul.msk.f32.gmra.mxu3 %vm55_vm1, %v379_v44 }
  0x4b   :  { %4101 = vmatmul.msk.f32.gmra.mxu2 %vm55_vm1, %v274_v57 }
  0x4d   :  { %4079 = vmatmul.msk.f32.gmra.mxu0 %vm55_vm1, %v51_v35  ;;  %4125 = vmatmul.msk.f32.vlgmr.msrb.gmra.mxu1 %vm55_vm1, %v586_v36 }
  0x51   :  { %4111 = vmatmul.msk.f32.gmra.mxu3 %vm55_vm1, %v380_v48 }
  0x55   :  { %4092 = vmatmul.msk.f32.vlgmr.msrb.gmra.mxu0 %vm55_vm1, %v265_v41  ;;  %4126 = vmatmul.msk.f32.gmra.mxu1 %vm55_vm1, %v587_v42  ;;  %v487_v41 = vld [vmem:[%s7336_s0 + $0x180] sm:$0xff] }
  0x56   :  { %1041 = vmatpush.msrb.mxu0 %v4182_v58 }
  0x58   :  { %1042 = vmatpush.msrb.mxu0 %v4181_v14 }
  0x59   :  { %4112 = vmatmul.msk.f32.gmra.mxu3 %vm55_vm1, %v381_v52  ;;  %v488_v52 = vld [vmem:[%s7336_s0 + $0x188] sm:$0xff] }
  0x5a   :  { %1043 = vmatpush.msrb.mxu0 %v4180_v21 }
  0x5c   :  { %1044 = vmatpush.msrb.mxu0 %v4179_v24 }
  0x5d   :  { %4114 = vmatmul.msk.f32.vlgmr.msra.gmra.mxu0 %vm55_vm1, %v479_v45  ;;  %4127 = vmatmul.msk.f32.gmra.mxu1 %vm55_vm1, %v588_v46 }
  0x65   :  { %4115 = vmatmul.msk.f32.gmra.mxu0 %vm55_vm1, %v480_v49  ;;  %4128 = vmatmul.msk.f32.gmra.mxu1 %vm55_vm1, %v589_v50 }
  0x6d   :  { %4116 = vmatmul.msk.f32.gmra.mxu0 %vm55_vm1, %v481_v55  ;;  %4129 = vmatmul.msk.f32.gmra.mxu1 %vm55_vm1, %v590_v56 }
  0x75   :  { %4117 = vmatmul.msk.f32.gmra.mxu0 %vm55_vm1, %v482_v59  ;;  %4130 = vmatmul.msk.f32.gmra.mxu1 %vm55_vm1, %v591_v60 }
  0x7d   :  { %4118 = vmatmul.msk.f32.gmra.mxu0 %vm55_vm1, %v483_v0  ;;  %4131 = vmatmul.msk.f32.gmra.mxu1 %vm55_vm1, %v592_v1  ;;  %v5149_v0 = vld [vmem:[%s7338_s3 + $0x60] sm:$0xff] }
  0x7e   :  { %958 = vmatpush.msrb.mxu3 %v5149_v0 }
  0x82   :  { %v107_v6 = vpop.f32.mrf.mxu0  ;;  %v215_v7 = vpop.f32.mrf.mxu1 }
  0x83   :  { %v108_v10 = vadd.f32 %v5036_v5, %v107_v6  ;;  %v216_v11 = vadd.f32 %v5036_v5, %v215_v7 }
  0x85   :  { %v137_v12 = vmax.f32 %v108_v10, 0.0  ;;  %v245_v13 = vmax.f32 %v216_v11, 0.0  ;;  %4119 = vmatmul.msk.f32.gmra.mxu0 %vm55_vm1, %v484_v8  ;;  %4132 = vmatmul.msk.f32.gmra.mxu1 %vm55_vm1, %v593_v9 }
  0x87   :  { %148 = vst.msk [vmem:[#allocation2] sm:$0xff] %vm147_vm2, %v137_v12 }
  0x88   :  { %255 = vst.msk [vmem:[#allocation2 + $0x50] sm:$0xff] %vm147_vm2, %v245_v13 }
  0x8a   :  { %v110_v17 = vpop.f32.mrf.mxu0  ;;  %v218_v18 = vpop.f32.mrf.mxu1 }
  0x8b   :  { %v111_v22 = vadd.f32 %v5036_v5, %v110_v17  ;;  %v219_v23 = vadd.f32 %v5036_v5, %v218_v18 }
  0x8c   :  { %v242_v44 = vpop.f32.mrf.mxu3 }
  0x8d   :  { %v138_v25 = vmax.f32 %v111_v22, 0.0  ;;  %v246_v26 = vmax.f32 %v219_v23, 0.0  ;;  %4120 = vmatmul.msk.f32.gmra.mxu0 %vm55_vm1, %v485_v19  ;;  %4133 = vmatmul.msk.f32.gmra.mxu1 %vm55_vm1, %v594_v20  ;;  %v243_v49 = vadd.f32 %v5036_v5, %v242_v44 }
  0x8e   :  { %v693_v27 = vld [vmem:[#allocation2] sm:$0xff]  ;;  %v325_v20 = vpop.f32.mrf.mxu2 }
  0x8f   :  { %149 = vst.msk [vmem:[#allocation2 + $0x8] sm:$0xff] %vm147_vm2, %v138_v25  ;;  %4147 = vmatmul.msk.f32.vlgmr.msra.gmra.mxu3 %vm147_vm2, %v693_v27  ;;  %v254_v53 = vmax.f32 %v243_v49, 0.0  ;;  %v326_v22 = vadd.f32 %v5036_v5, %v325_v20  ;;  %v5223_v49 = vld [vmem:[%s7338_s3 + $0x118] sm:$0xff] }
  0x90   :  { %256 = vst.msk [vmem:[#allocation2 + $0x58] sm:$0xff] %vm147_vm2, %v246_v26  ;;  %1385 = vmatpush.msra.mxu0 %v5223_v49 }
  0x91   :  { %264 = vst.msk [vmem:[#allocation2 + $0x98] sm:$0xff] %vm147_vm2, %v254_v53  ;;  %v353_v26 = vmax.f32 %v326_v22, 0.0  ;;  %v5281_v22 = vld [vmem:[%s7338_s3 + $0x100] sm:$0xff] }
  0x92   :  { %v113_v28 = vpop.f32.mrf.mxu0  ;;  %v221_v29 = vpop.f32.mrf.mxu1 }
  0x93   :  { %v114_v32 = vadd.f32 %v5036_v5, %v113_v28  ;;  %v222_v33 = vadd.f32 %v5036_v5, %v221_v29  ;;  %v4206_v29 = vld [vmem:[%s7338_s3 + $0xd8] sm:$0xff]  ;;  %363 = vst.msk [vmem:[#allocation2 + $0xa8] sm:$0xff] %vm147_vm2, %v353_v26 }
  0x94   :  { %v429_v56 = vpop.f32.mrf.mxu3 }
  0x95   :  { %v139_v34 = vmax.f32 %v114_v32, 0.0  ;;  %v247_v35 = vmax.f32 %v222_v33, 0.0  ;;  %4121 = vmatmul.msk.f32.gmra.mxu0 %vm55_vm1, %v486_v30  ;;  %4134 = vmatmul.msk.f32.gmra.mxu1 %vm55_vm1, %v595_v31  ;;  %v430_v61 = vadd.f32 %v5036_v5, %v429_v56  ;;  %v5197_v30 = vld [vmem:[%s7338_s3 + $0xf8] sm:$0xff] }
  0x96   :  { %v694_v36 = vld [vmem:[#allocation2 + $0x8] sm:$0xff]  ;;  %1299 = vmatpush.msra.mxu3 %v5197_v30 }
  0x97   :  { %150 = vst.msk [vmem:[#allocation2 + $0x10] sm:$0xff] %vm147_vm2, %v139_v34  ;;  %4139 = vmatmul.msk.f32.vlgmr.msrb.gmra.mxu2 %vm147_vm2, %v694_v36  ;;  %4148 = vmatmul.msk.f32.gmra.mxu3 %vm147_vm2, %v694_v36  ;;  %v5152_v3 = vld [vmem:[#allocation2 + $0x58] sm:$0xff]  ;;  %v459_v4 = vmax.f32 %v430_v61, 0.0  ;;  %v328_v36 = vpop.f32.mrf.mxu2 }
  0x98   :  { %257 = vst.msk [vmem:[#allocation2 + $0x60] sm:$0xff] %vm147_vm2, %v247_v35  ;;  %1213 = vmatpush.msrb.mxu2 %v4206_v29 }
  0x99   :  { %469 = vst.msk [vmem:[#allocation2 + $0xf0] sm:$0xff] %vm147_vm2, %v459_v4 }
  0x9a   :  { %v116_v39 = vpop.f32.mrf.mxu0  ;;  %v224_v40 = vpop.f32.mrf.mxu1 }
  0x9b   :  { %v117_v42 = vadd.f32 %v5036_v5, %v116_v39  ;;  %v225_v43 = vadd.f32 %v5036_v5, %v224_v40  ;;  %v329_v39 = vadd.f32 %v5036_v5, %v328_v36 }
  0x9c   :  { %v432_v8 = vpop.f32.mrf.mxu3 }
  0x9d   :  { %v140_v45 = vmax.f32 %v117_v42, 0.0  ;;  %v248_v46 = vmax.f32 %v225_v43, 0.0  ;;  %4122 = vmatmul.msk.f32.gmra.mxu0 %vm55_vm1, %v487_v41  ;;  %v433_v13 = vadd.f32 %v5036_v5, %v432_v8  ;;  %v354_v44 = vmax.f32 %v329_v39, 0.0  ;;  %v5259_v8 = vld [vmem:[%s7338_s3 + $0xf0] sm:$0xff] }
  0x9e   :  { %v5110_v47 = vld [vmem:[#allocation2 + $0x10] sm:$0xff]  ;;  %1300 = vmatpush.msra.mxu3 %v5259_v8 }
  0x9f   :  { %151 = vst.msk [vmem:[#allocation2 + $0x18] sm:$0xff] %vm147_vm2, %v140_v45  ;;  %4140 = vmatmul.msk.f32.gmra.mxu2 %vm147_vm2, %v5110_v47  ;;  %4149 = vmatmul.msk.f32.gmra.mxu3 %vm147_vm2, %v5110_v47  ;;  %v5117_v48 = vld [vmem:[#allocation2 + $0x60] sm:$0xff]  ;;  %v460_v14 = vmax.f32 %v433_v13, 0.0  ;;  %v5269_v13 = vld [vmem:[%s7338_s3 + $0x108] sm:$0xff] }
  0xa0   :  { %258 = vst.msk [vmem:[#allocation2 + $0x68] sm:$0xff] %vm147_vm2, %v248_v46  ;;  %4195 = vmatmul.msk.f32.vlgmr.msra.gmra.mxu1 %vm147_vm2, %v5117_v48 }
  0xa1   :  { %470 = vst.msk [vmem:[#allocation2 + $0xf8] sm:$0xff] %vm147_vm2, %v460_v14 }
  0xa2   :  { %v119_v50 = vpop.f32.mrf.mxu0  ;;  %v227_v51 = vpop.f32.mrf.mxu1  ;;  %364 = vst.msk [vmem:[#allocation2 + $0xb0] sm:$0xff] %vm147_vm2, %v354_v44 }
  0xa3   :  { %v120_v54 = vadd.f32 %v5036_v5, %v119_v50  ;;  %v228_v55 = vadd.f32 %v5036_v5, %v227_v51 }
  0xa4   :  { %v435_v21 = vpop.f32.mrf.mxu3 }
  0xa5   :  { %v141_v57 = vmax.f32 %v120_v54, 0.0  ;;  %v249_v58 = vmax.f32 %v228_v55, 0.0  ;;  %4123 = vmatmul.msk.f32.gmra.mxu0 %vm55_vm1, %v488_v52  ;;  %v436_v28 = vadd.f32 %v5036_v5, %v435_v21  ;;  %v331_v54 = vpop.f32.mrf.mxu2 }
  0xa6   :  { %v5130_v59 = vld [vmem:[#allocation2 + $0x18] sm:$0xff]  ;;  %v332_v56 = vadd.f32 %v5036_v5, %v331_v54 }
  0xa7   :  { %152 = vst.msk [vmem:[#allocation2 + $0x20] sm:$0xff] %vm147_vm2, %v141_v57  ;;  %4141 = vmatmul.msk.f32.gmra.mxu2 %vm147_vm2, %v5130_v59  ;;  %4150 = vmatmul.msk.f32.gmra.mxu3 %vm147_vm2, %v5130_v59  ;;  %v5137_v60 = vld [vmem:[#allocation2 + $0x68] sm:$0xff]  ;;  %v461_v31 = vmax.f32 %v436_v28, 0.0 }
  0xa8   :  { %259 = vst.msk [vmem:[#allocation2 + $0x70] sm:$0xff] %vm147_vm2, %v249_v58  ;;  %4196 = vmatmul.msk.f32.gmra.mxu1 %vm147_vm2, %v5137_v60 }
  0xa9   :  { %471 = vst.msk [vmem:[#allocation2 + $0x100] sm:$0xff] %vm147_vm2, %v461_v31 }
  0xaa   :  { %v122_v1 = vpop.f32.mrf.mxu0  ;;  %v230_v2 = vpop.f32.mrf.mxu1 }
  0xab   :  { %v123_v6 = vadd.f32 %v5036_v5, %v122_v1  ;;  %v231_v7 = vadd.f32 %v5036_v5, %v230_v2  ;;  %v355_v1 = vmax.f32 %v332_v56, 0.0 }
  0xac   :  { %v438_v37 = vpop.f32.mrf.mxu3 }
  0xad   :  { %v142_v9 = vmax.f32 %v123_v6, 0.0  ;;  %v250_v10 = vmax.f32 %v231_v7, 0.0  ;;  %4183 = vmatmul.msk.f32.vlgmr.msrb.gmra.mxu0 %vm147_vm2, %v5152_v3  ;;  %v439_v40 = vadd.f32 %v5036_v5, %v438_v37  ;;  %v5249_v6 = vld [vmem:[%s7338_s3 + $0xd0] sm:$0xff]  ;;  %365 = vst.msk [vmem:[#allocation2 + $0xb8] sm:$0xff] %vm147_vm2, %v355_v1 }
  0xae   :  { %v5159_v11 = vld [vmem:[#allocation2 + $0x20] sm:$0xff]  ;;  %v5254_v7 = vld [vmem:[%s7338_s3 + $0x110] sm:$0xff]  ;;  %1214 = vmatpush.msrb.mxu2 %v5249_v6 }
  0xaf   :  { %153 = vst.msk [vmem:[#allocation2 + $0x28] sm:$0xff] %vm147_vm2, %v142_v9  ;;  %4142 = vmatmul.msk.f32.gmra.mxu2 %vm147_vm2, %v5159_v11  ;;  %4151 = vmatmul.msk.f32.gmra.mxu3 %vm147_vm2, %v5159_v11  ;;  %v5166_v12 = vld [vmem:[#allocation2 + $0x70] sm:$0xff]  ;;  %v462_v45 = vmax.f32 %v439_v40, 0.0 }
  0xb0   :  { %260 = vst.msk [vmem:[#allocation2 + $0x78] sm:$0xff] %vm147_vm2, %v250_v10  ;;  %4197 = vmatmul.msk.f32.gmra.mxu1 %vm147_vm2, %v5166_v12  ;;  %1386 = vmatpush.msra.mxu0 %v5254_v7 }
  0xb1   :  { %472 = vst.msk [vmem:[#allocation2 + $0x108] sm:$0xff] %vm147_vm2, %v462_v45 }
  0xb2   :  { %v125_v15 = vpop.f32.mrf.mxu0  ;;  %v233_v17 = vpop.f32.mrf.mxu1  ;;  %1387 = vmatpush.msra.mxu0 %v5269_v13 }
  0xb3   :  { %v126_v18 = vadd.f32 %v5036_v5, %v125_v15  ;;  %v234_v19 = vadd.f32 %v5036_v5, %v233_v17  ;;  %v334_v17 = vpop.f32.mrf.mxu2 }
  0xb4   :  { %v441_v55 = vpop.f32.mrf.mxu3  ;;  %v335_v20 = vadd.f32 %v5036_v5, %v334_v17  ;;  %1388 = vmatpush.msra.mxu0 %v5281_v22 }
  0xb5   :  { %v143_v23 = vmax.f32 %v126_v18, 0.0  ;;  %v251_v24 = vmax.f32 %v234_v19, 0.0  ;;  %4184 = vmatmul.msk.f32.gmra.mxu0 %vm147_vm2, %v5117_v48  ;;  %v442_v57 = vadd.f32 %v5036_v5, %v441_v55  ;;  %v5274_v19 = vld [vmem:[#allocation2 + $0x50] sm:$0xff] }
  0xb6   :  { %v5178_v25 = vld [vmem:[#allocation2 + $0x28] sm:$0xff]  ;;  %v356_v28 = vmax.f32 %v335_v20, 0.0  ;;  %1813 = vmatpush.msrb.mxu0 %v5013_v63 }
  0xb7   :  { %154 = vst.msk [vmem:[#allocation2 + $0x30] sm:$0xff] %vm147_vm2, %v143_v23  ;;  %4143 = vmatmul.msk.f32.gmra.mxu2 %vm147_vm2, %v5178_v25  ;;  %4152 = vmatmul.msk.f32.gmra.mxu3 %vm147_vm2, %v5178_v25  ;;  %v5185_v27 = vld [vmem:[#allocation2 + $0x78] sm:$0xff]  ;;  %v463_v2 = vmax.f32 %v442_v57, 0.0 }
  0xb8   :  { %261 = vst.msk [vmem:[#allocation2 + $0x80] sm:$0xff] %vm147_vm2, %v251_v24  ;;  %4198 = vmatmul.msk.f32.gmra.mxu1 %vm147_vm2, %v5185_v27  ;;  %1814 = vmatpush.msrb.mxu0 %v5059_v16  ;;  %v5315_v16 = vld [vmem:[#allocation2 + $0x98] sm:$0xff] }
  0xb9   :  { %473 = vst.msk [vmem:[#allocation2 + $0x110] sm:$0xff] %vm147_vm2, %v463_v2 }
  0xba   :  { %v128_v32 = vpop.f32.mrf.mxu0  ;;  %v236_v33 = vpop.f32.mrf.mxu1  ;;  %366 = vst.msk [vmem:[#allocation2 + $0xc0] sm:$0xff] %vm147_vm2, %v356_v28  ;;  %1815 = vmatpush.msrb.mxu0 %v5101_v38  ;;  %v5323_v38 = vld [vmem:[%s7338_s3 + $0xc8] sm:$0xff] }
  0xbb   :  { %v129_v34 = vadd.f32 %v5036_v5, %v128_v32  ;;  %v237_v35 = vadd.f32 %v5036_v5, %v236_v33  ;;  %v337_v36 = vpop.f32.mrf.mxu2  ;;  %7412 = vst [vmem:[#allocation3_spill] sm:$0xff] %v5315_v16  ;;  %1215 = vmatpush.msrb.mxu2 %v5323_v38 }
  0xbc   :  { %v444_v18 = vpop.f32.mrf.mxu3  ;;  %v338_v39 = vadd.f32 %v5036_v5, %v337_v36  ;;  %1816 = vmatpush.msrb.mxu0 %v5149_v0  ;;  %v5328_v0 = vld [vmem:[%s7338_s3 + $0xe8] sm:$0xff] }
  0xbd   :  { %v144_v41 = vmax.f32 %v129_v34, 0.0  ;;  %v252_v42 = vmax.f32 %v237_v35, 0.0  ;;  %4185 = vmatmul.msk.f32.gmra.mxu0 %vm147_vm2, %v5137_v60  ;;  %v445_v21 = vadd.f32 %v5036_v5, %v444_v18  ;;  %7413 = vst [vmem:[#allocation4_spill] sm:$0xff] %v5328_v0  ;;  %1301 = vmatpush.msra.mxu3 %v5328_v0 }
  0xbe   :  { %v5208_v43 = vld [vmem:[#allocation2 + $0x30] sm:$0xff] }
  0xbf   :  { %155 = vst.msk [vmem:[#allocation2 + $0x38] sm:$0xff] %vm147_vm2, %v144_v41  ;;  %4144 = vmatmul.msk.f32.gmra.mxu2 %vm147_vm2, %v5208_v43  ;;  %4153 = vmatmul.msk.f32.gmra.mxu3 %vm147_vm2, %v5208_v43  ;;  %v5215_v46 = vld [vmem:[#allocation2 + $0x80] sm:$0xff]  ;;  %v464_v29 = vmax.f32 %v445_v21, 0.0 }
  0xc0   :  { %262 = vst.msk [vmem:[#allocation2 + $0x88] sm:$0xff] %vm147_vm2, %v252_v42  ;;  %4199 = vmatmul.msk.f32.gmra.mxu1 %vm147_vm2, %v5215_v46  ;;  %v357_v42 = vmax.f32 %v338_v39, 0.0 }
  0xc1   :  { %474 = vst.msk [vmem:[#allocation2 + $0x118] sm:$0xff] %vm147_vm2, %v464_v29 }
  0xc2   :  { %v131_v50 = vpop.f32.mrf.mxu0  ;;  %v239_v51 = vpop.f32.mrf.mxu1  ;;  %367 = vst.msk [vmem:[#allocation2 + $0xc8] sm:$0xff] %vm147_vm2, %v357_v42 }
  0xc3   :  { %v132_v52 = vadd.f32 %v5036_v5, %v131_v50  ;;  %v240_v53 = vadd.f32 %v5036_v5, %v239_v51 }
  0xc4   :  { %v447_v37 = vpop.f32.mrf.mxu3 }
  0xc5   :  { %v145_v58 = vmax.f32 %v132_v52, 0.0  ;;  %v253_v61 = vmax.f32 %v240_v53, 0.0  ;;  %4186 = vmatmul.msk.f32.gmra.mxu0 %vm147_vm2, %v5166_v12  ;;  %v448_v40 = vadd.f32 %v5036_v5, %v447_v37  ;;  %v340_v52 = vpop.f32.mrf.mxu2 }
  0xc6   :  { %v5234_v62 = vld [vmem:[#allocation2 + $0x38] sm:$0xff]  ;;  %v341_v54 = vadd.f32 %v5036_v5, %v340_v52 }
  0xc7   :  { %156 = vst.msk [vmem:[#allocation2 + $0x40] sm:$0xff] %vm147_vm2, %v145_v58  ;;  %4145 = vmatmul.msk.f32.gmra.mxu2 %vm147_vm2, %v5234_v62  ;;  %4154 = vmatmul.msk.f32.gmra.mxu3 %vm147_vm2, %v5234_v62  ;;  %v5241_v4 = vld [vmem:[#allocation2 + $0x88] sm:$0xff]  ;;  %v465_v44 = vmax.f32 %v448_v40, 0.0 }
  0xc8   :  { %263 = vst.msk [vmem:[#allocation2 + $0x90] sm:$0xff] %vm147_vm2, %v253_v61  ;;  %4200 = vmatmul.msk.f32.gmra.mxu1 %vm147_vm2, %v5241_v4  ;;  %v358_v58 = vmax.f32 %v341_v54, 0.0 }
  0xc9   :  { %475 = vst.msk [vmem:[#allocation2 + $0x120] sm:$0xff] %vm147_vm2, %v465_v44 }
  0xca   :  { %v134_v9 = vpop.f32.mrf.mxu0  ;;  %v643_v10 = vpop.f32.mrf.mxu1  ;;  %368 = vst.msk [vmem:[#allocation2 + $0xd0] sm:$0xff] %vm147_vm2, %v358_v58 }
  0xcb   :  { %v135_v14 = vadd.f32 %v5036_v5, %v134_v9  ;;  %v644_v15 = vadd.f32 %v5036_v5, %v643_v10 }
  0xcc   :  { %v450_v53 = vpop.f32.mrf.mxu3 }
  0xcd   :  { %v146_v23 = vmax.f32 %v135_v14, 0.0  ;;  %v673_v24 = vmax.f32 %v644_v15, 0.0  ;;  %4187 = vmatmul.msk.f32.gmra.mxu0 %vm147_vm2, %v5185_v27  ;;  %v451_v55 = vadd.f32 %v5036_v5, %v450_v53  ;;  %v343_v14 = vpop.f32.mrf.mxu2 }
  0xce   :  { %v5285_v26 = vld [vmem:[#allocation2 + $0x40] sm:$0xff]  ;;  %v344_v17 = vadd.f32 %v5036_v5, %v343_v14 }
  0xcf   :  { %157 = vst.msk [vmem:[#allocation2 + $0x48] sm:$0xff] %vm147_vm2, %v146_v23  ;;  %4146 = vmatmul.msk.f32.gmra.mxu2 %vm147_vm2, %v5285_v26  ;;  %4171 = vmatmul.msk.f32.vlgmr.msrb.gmra.mxu3 %vm147_vm2, %v5274_v19  ;;  %v5293_v31 = vld [vmem:[#allocation2 + $0x90] sm:$0xff]  ;;  %v466_v61 = vmax.f32 %v451_v55, 0.0  ;;  %v5363_v23 = vld [vmem:[%s7338_s3 + $0xc0] sm:$0xff] }
  0xd0   :  { %683 = vst.msk [vmem:[#allocation2 + $0x190] sm:$0xff] %vm147_vm2, %v673_v24  ;;  %4201 = vmatmul.msk.f32.gmra.mxu1 %vm147_vm2, %v5293_v31  ;;  %v359_v20 = vmax.f32 %v344_v17, 0.0  ;;  %v5368_v24 = vld [vmem:[%s7338_s3 + $0xe0] sm:$0xff]  ;;  %1216 = vmatpush.msrb.mxu2 %v5363_v23 }
  0xd1   :  { %476 = vst.msk [vmem:[#allocation2 + $0x128] sm:$0xff] %vm147_vm2, %v466_v61  ;;  %1302 = vmatpush.msra.mxu3 %v5368_v24  ;;  %v5410_v55 = vld [vmem:[#allocation2 + $0xc0] sm:$0xff] }
  0xd2   :  { %v322_v32 = vpop.f32.mrf.mxu0  ;;  %v646_v33 = vpop.f32.mrf.mxu1  ;;  %7414 = vst [vmem:[#allocation5_spill] sm:$0xff] %v5368_v24 }
  0xd3   :  { %v323_v34 = vadd.f32 %v5036_v5, %v322_v32  ;;  %v647_v35 = vadd.f32 %v5036_v5, %v646_v33  ;;  %369 = vst.msk [vmem:[#allocation2 + $0xd8] sm:$0xff] %vm147_vm2, %v359_v20 }
  0xd4   :  { %v453_v15 = vpop.f32.mrf.mxu3  ;;  %7415 = vst [vmem:[#allocation6_spill] sm:$0xff] %v5410_v55 }
  0xd5   :  { %v352_v63 = vmax.f32 %v323_v34, 0.0  ;;  %v674_v41 = vmax.f32 %v647_v35, 0.0  ;;  %4188 = vmatmul.msk.f32.gmra.mxu0 %vm147_vm2, %v5215_v46  ;;  %v346_v32 = vpop.f32.mrf.mxu2  ;;  %v5376_v34 = vld [vmem:[#allocation2 + $0xb0] sm:$0xff] }
  0xd6   :  { %v347_v35 = vadd.f32 %v5036_v5, %v346_v32 }
  0xd7   :  { %362 = vst.msk [vmem:[#allocation2 + $0xa0] sm:$0xff] %vm147_vm2, %v352_v63  ;;  %4159 = vmatmul.msk.f32.vlgmr.msra.gmra.mxu2 %vm147_vm2, %v5110_v47  ;;  %4172 = vmatmul.msk.f32.gmra.mxu3 %vm147_vm2, %v5152_v3 }
  0xd8   :  { %684 = vst.msk [vmem:[#allocation2 + $0x198] sm:$0xff] %vm147_vm2, %v674_v41  ;;  %4202 = vmatmul.msk.f32.gmra.mxu1 %vm147_vm2, %v5315_v16  ;;  %v360_v40 = vmax.f32 %v347_v35, 0.0 }
  0xda   :  { %v536_v47 = vpop.f32.mrf.mxu0  ;;  %v649_v45 = vpop.f32.mrf.mxu1  ;;  %370 = vst.msk [vmem:[#allocation2 + $0xe0] sm:$0xff] %vm147_vm2, %v360_v40 }
  0xdb   :  { %v537_v50 = vadd.f32 %v5036_v5, %v536_v47  ;;  %v650_v51 = vadd.f32 %v5036_v5, %v649_v45  ;;  %v5395_v47 = vld [vmem:[#allocation2 + $0xb8] sm:$0xff] }
  0xdc   :  { %v456_v33 = vpop.f32.mrf.mxu3 }
  0xdd   :  { %v566_v56 = vmax.f32 %v537_v50, 0.0  ;;  %v675_v57 = vmax.f32 %v650_v51, 0.0  ;;  %4189 = vmatmul.msk.f32.gmra.mxu0 %vm147_vm2, %v5241_v4  ;;  %v457_v36 = vadd.f32 %v5036_v5, %v456_v33 }
  0xde   :  { %v1164_v32 = vld [vmem:[#allocation2 + $0xa0] sm:$0xff] }
  0xdf   :  { %576 = vst.msk [vmem:[#allocation2 + $0x140] sm:$0xff] %vm147_vm2, %v566_v56  ;;  %4160 = vmatmul.msk.f32.gmra.mxu2 %vm147_vm2, %v5130_v59  ;;  %4173 = vmatmul.msk.f32.gmra.mxu3 %vm147_vm2, %v5117_v48  ;;  %v454_v59 = vadd.f32 %v5036_v5, %v453_v15  ;;  %v468_v63 = vmax.f32 %v457_v36, 0.0  ;;  %v5434_v15 = vld [vmem:[#allocation2 + $0xd0] sm:$0xff] }
  0xe0   :  { %685 = vst.msk [vmem:[#allocation2 + $0x1a0] sm:$0xff] %vm147_vm2, %v675_v57 }
  0xe1   :  { %v467_v21 = vmax.f32 %v454_v59, 0.0  ;;  %478 = vst.msk [vmem:[#allocation2 + $0x138] sm:$0xff] %vm147_vm2, %v468_v63 }
  0xe2   :  { %v539_v1 = vpop.f32.mrf.mxu0  ;;  %v652_v2 = vpop.f32.mrf.mxu1  ;;  %7417 = vst [vmem:[#allocation8_spill] sm:$0xff] %v5434_v15 }
  0xe3   :  { %v540_v9 = vadd.f32 %v5036_v5, %v539_v1  ;;  %v653_v10 = vadd.f32 %v5036_v5, %v652_v2  ;;  %477 = vst.msk [vmem:[#allocation2 + $0x130] sm:$0xff] %vm147_vm2, %v467_v21  ;;  %v5422_v1 = vld [vmem:[#allocation2 + $0xc8] sm:$0xff] }
  0xe4   :  { %7416 = vst [vmem:[#allocation7_spill] sm:$0xff] %v5422_v1 }
  0xe5   :  { %v567_v18 = vmax.f32 %v540_v9, 0.0  ;;  %v676_v48 = vmax.f32 %v653_v10, 0.0  ;;  %4190 = vmatmul.msk.f32.gmra.mxu0 %vm147_vm2, %v5293_v31 }
  0xe7   :  { %577 = vst.msk [vmem:[#allocation2 + $0x148] sm:$0xff] %vm147_vm2, %v567_v18  ;;  %4161 = vmatmul.msk.f32.gmra.mxu2 %vm147_vm2, %v5159_v11  ;;  %4174 = vmatmul.msk.f32.gmra.mxu3 %vm147_vm2, %v5137_v60  ;;  %v827_v18 = vld [vmem:[#allocation2 + $0x48] sm:$0xff] }
  0xe8   :  { %686 = vst.msk [vmem:[#allocation2 + $0x1a8] sm:$0xff] %vm147_vm2, %v676_v48 }
  0xea   :  { %v542_v11 = vpop.f32.mrf.mxu0  ;;  %v655_v60 = vpop.f32.mrf.mxu1 }
  0xeb   :  { %v543_v28 = vadd.f32 %v5036_v5, %v542_v11  ;;  %v656_v29 = vadd.f32 %v5036_v5, %v655_v60  ;;  %v5449_v60 = vld [vmem:[#allocation2 + $0xd8] sm:$0xff] }
  0xec   :  { %7418 = vst [vmem:[#allocation9_spill] sm:$0xff] %v5449_v60 }
  0xed   :  { %v568_v37 = vmax.f32 %v543_v28, 0.0  ;;  %v677_v39 = vmax.f32 %v656_v29, 0.0  ;;  %4231 = vmatmul.msk.f32.vlgmr.msra.gmra.mxu0 %vm147_vm2, %v5376_v34 }
  0xee   :  { %2073 = vmatpush.msra.mxu0 %v5197_v30 }
  0xef   :  { %578 = vst.msk [vmem:[#allocation2 + $0x150] sm:$0xff] %vm147_vm2, %v568_v37  ;;  %4162 = vmatmul.msk.f32.gmra.mxu2 %vm147_vm2, %v5178_v25  ;;  %4175 = vmatmul.msk.f32.gmra.mxu3 %vm147_vm2, %v5166_v12  ;;  %v349_v25 = vpop.f32.mrf.mxu2 }
  0xf0   :  { %687 = vst.msk [vmem:[#allocation2 + $0x1b0] sm:$0xff] %vm147_vm2, %v677_v39  ;;  %2074 = vmatpush.msra.mxu0 %v5259_v8  ;;  %v350_v12 = vadd.f32 %v5036_v5, %v349_v25  ;;  %v5463_v39 = vld [vmem:[#allocation2 + $0xe0] sm:$0xff] }
  0xf1   :  { %7419 = vst [vmem:[#allocation10_spill] sm:$0xff] %v5463_v39 }
  0xf2   :  { %v545_v41 = vpop.f32.mrf.mxu0  ;;  %v658_v42 = vpop.f32.mrf.mxu1  ;;  %2075 = vmatpush.msra.mxu0 %v5328_v0  ;;  %v361_v50 = vmax.f32 %v350_v12, 0.0 }
  0xf3   :  { %v546_v30 = vadd.f32 %v5036_v5, %v545_v41  ;;  %v659_v44 = vadd.f32 %v5036_v5, %v658_v42 }
  0xf4   :  { %2076 = vmatpush.msra.mxu0 %v5368_v24  ;;  %371 = vst.msk [vmem:[#allocation2 + $0xe8] sm:$0xff] %vm147_vm2, %v361_v50  ;;  %v5624_v24 = vld [vmem:[%s7338_s3 + $0x38] sm:$0xff] }
  0xf5   :  { %v569_v8 = vmax.f32 %v546_v30, 0.0  ;;  %v678_v45 = vmax.f32 %v659_v44, 0.0  ;;  %4232 = vmatmul.msk.f32.gmra.mxu0 %vm147_vm2, %v5395_v47  ;;  %7425 = vst [vmem:[#allocation16_spill] sm:$0xff] %v5624_v24 }
  0xf7   :  { %579 = vst.msk [vmem:[#allocation2 + $0x158] sm:$0xff] %vm147_vm2, %v569_v8  ;;  %4163 = vmatmul.msk.f32.gmra.mxu2 %vm147_vm2, %v5208_v43  ;;  %4176 = vmatmul.msk.f32.gmra.mxu3 %vm147_vm2, %v5185_v27 }
  0xf8   :  { %688 = vst.msk [vmem:[#allocation2 + $0x1b8] sm:$0xff] %vm147_vm2, %v678_v45 }
  0xfa   :  { %v548_v51 = vpop.f32.mrf.mxu0  ;;  %v661_v52 = vpop.f32.mrf.mxu1 }
  0xfb   :  { %v549_v53 = vadd.f32 %v5036_v5, %v548_v51  ;;  %v662_v54 = vadd.f32 %v5036_v5, %v661_v52  ;;  %v5477_v44 = vld [vmem:[#allocation2 + $0xe8] sm:$0xff] }
  0xfc   :  { %7420 = vst [vmem:[#allocation11_spill] sm:$0xff] %v5477_v44 }
  0xfd   :  { %v570_v56 = vmax.f32 %v549_v53, 0.0  ;;  %v679_v57 = vmax.f32 %v662_v54, 0.0  ;;  %4233 = vmatmul.msk.f32.gmra.mxu0 %vm147_vm2, %v5410_v55 }
  0xff   :  { %580 = vst.msk [vmem:[#allocation2 + $0x160] sm:$0xff] %vm147_vm2, %v570_v56  ;;  %4164 = vmatmul.msk.f32.gmra.mxu2 %vm147_vm2, %v5234_v62  ;;  %4177 = vmatmul.msk.f32.gmra.mxu3 %vm147_vm2, %v5215_v46 }
 0x100   :  { %689 = vst.msk [vmem:[#allocation2 + $0x1c0] sm:$0xff] %vm147_vm2, %v679_v57 }
 0x102   :  { %v551_v27 = vpop.f32.mrf.mxu0  ;;  %v664_v43 = vpop.f32.mrf.mxu1 }
 0x103   :  { %v552_v58 = vadd.f32 %v5036_v5, %v551_v27  ;;  %v665_v61 = vadd.f32 %v5036_v5, %v664_v43  ;;  %v4242_v43 = vld [vmem:[%s7340_s5 + $0x38] sm:$0xff] }
 0x104   :  { %1465 = vmatpush.msrb.mxu3 %v4242_v43 }
 0x105   :  { %v571_v2 = vmax.f32 %v552_v58, 0.0  ;;  %v680_v9 = vmax.f32 %v665_v61, 0.0  ;;  %4234 = vmatmul.msk.f32.gmra.mxu0 %vm147_vm2, %v5422_v1 }
 0x107   :  { %581 = vst.msk [vmem:[#allocation2 + $0x168] sm:$0xff] %vm147_vm2, %v571_v2  ;;  %4165 = vmatmul.msk.f32.gmra.mxu2 %vm147_vm2, %v5285_v26  ;;  %4178 = vmatmul.msk.f32.gmra.mxu3 %vm147_vm2, %v5241_v4  ;;  %v5438_v26 = vld [vmem:[#allocation2 + $0xa8] sm:$0xff] }
 0x108   :  { %690 = vst.msk [vmem:[#allocation2 + $0x1c8] sm:$0xff] %vm147_vm2, %v680_v9 }
 0x10a   :  { %v554_v46 = vpop.f32.mrf.mxu0  ;;  %v667_v62 = vpop.f32.mrf.mxu1 }
 0x10b   :  { %v555_v10 = vadd.f32 %v5036_v5, %v554_v46  ;;  %v668_v14 = vadd.f32 %v5036_v5, %v667_v62  ;;  %v4241_v62 = vld [vmem:[%s7340_s5 + $0x30] sm:$0xff] }
 0x10c   :  { %1466 = vmatpush.msrb.mxu3 %v4241_v62  ;;  %v1442_v62 = vld [vmem:[%s7340_s5 + $0x8] sm:$0xff] }
 0x10d   :  { %v572_v17 = vmax.f32 %v555_v10, 0.0  ;;  %v681_v59 = vmax.f32 %v668_v14, 0.0  ;;  %4235 = vmatmul.msk.f32.gmra.mxu0 %vm147_vm2, %v5434_v15 }
 0x10f   :  { %582 = vst.msk [vmem:[#allocation2 + $0x170] sm:$0xff] %vm147_vm2, %v572_v17  ;;  %4166 = vmatmul.msk.f32.gmra.mxu2 %vm147_vm2, %v827_v18  ;;  %4219 = vmatmul.msk.f32.vlgmr.msra.gmra.mxu3 %vm147_vm2, %v5438_v26 }
 0x110   :  { %691 = vst.msk [vmem:[#allocation2 + $0x1d0] sm:$0xff] %vm147_vm2, %v681_v59  ;;  %v1444_v59 = vld [vmem:[%s7340_s5 + $0x18] sm:$0xff] }
 0x111   :  { %1488 = vmatpush.msrb.mxu1 %v1444_v59 }
 0x112   :  { %v557_v4 = vpop.f32.mrf.mxu0  ;;  %v5445_v48 = vpop.f32.mrf.mxu3 }
 0x113   :  { %v558_v20 = vadd.f32 %v5036_v5, %v557_v4  ;;  %v670_v21 = vpop.f32.mrf.mxu1 }
 0x114   :  { %v671_v11 = vadd.f32 %v5036_v5, %v670_v21  ;;  %v5572_v21 = vld [vmem:[#allocation2 + $0xf8] sm:$0xff] }
 0x115   :  { %v573_v28 = vmax.f32 %v558_v20, 0.0  ;;  %4236 = vmatmul.msk.f32.gmra.mxu0 %vm147_vm2, %v5449_v60  ;;  %7421 = vst [vmem:[#allocation12_spill] sm:$0xff] %v5572_v21 }
 0x116   :  { %v682_v29 = vmax.f32 %v671_v11, 0.0  ;;  %v4240_v11 = vld [vmem:[%s7340_s5 + $0x28] sm:$0xff] }
 0x117   :  { %583 = vst.msk [vmem:[#allocation2 + $0x178] sm:$0xff] %vm147_vm2, %v573_v28  ;;  %4207 = vmatmul.msk.f32.vlgmr.msrb.gmra.mxu2 %vm147_vm2, %v1164_v32  ;;  %4220 = vmatmul.msk.f32.gmra.mxu3 %vm147_vm2, %v5376_v34 }
 0x118   :  { %692 = vst.msk [vmem:[#allocation2 + $0x1d8] sm:$0xff] %vm147_vm2, %v682_v29  ;;  %1467 = vmatpush.msrb.mxu3 %v4240_v11  ;;  %v4239_v11 = vld [vmem:[%s7340_s5 + $0x20] sm:$0xff] }
 0x11a   :  { %v560_v33 = vpop.f32.mrf.mxu0  ;;  %v5458_v35 = vpop.f32.mrf.mxu2  ;;  %1468 = vmatpush.msrb.mxu3 %v4239_v11 }
 0x11b   :  { %v561_v36 = vadd.f32 %v5036_v5, %v560_v33  ;;  %v5461_v37 = vpop.f32.mrf.mxu3  ;;  %v5585_v33 = vld [vmem:[#allocation2 + $0x100] sm:$0xff] }
 0x11c   :  { %7422 = vst [vmem:[#allocation13_spill] sm:$0xff] %v5585_v33  ;;  %1682 = vmatpush.msra.mxu3 %v5624_v24  ;;  %v797_v24 = vadd.f32 %v5445_v48, %v5458_v35  ;;  %v4248_v48 = vld [vmem:[%s7340_s5 + $0x58] sm:$0xff] }
 0x11d   :  { %v574_v40 = vmax.f32 %v561_v36, 0.0  ;;  %4237 = vmatmul.msk.f32.gmra.mxu0 %vm147_vm2, %v5463_v39  ;;  %v1443_v36 = vld [vmem:[%s7340_s5 + $0x10] sm:$0xff]  ;;  %v1132_v11 = vpop.f32.mrf.mxu1 }
 0x11e   :  { %1489 = vmatpush.msrb.mxu1 %v1443_v36  ;;  %v5612_v36 = vld [vmem:[#allocation2 + $0x110] sm:$0xff] }
 0x11f   :  { %584 = vst.msk [vmem:[#allocation2 + $0x180] sm:$0xff] %vm147_vm2, %v574_v40  ;;  %4208 = vmatmul.msk.f32.gmra.mxu2 %vm147_vm2, %v5438_v26  ;;  %4221 = vmatmul.msk.f32.gmra.mxu3 %vm147_vm2, %v5395_v47 }
 0x120   :  { %1490 = vmatpush.msrb.mxu1 %v1442_v62  ;;  %7424 = vst [vmem:[#allocation15_spill] sm:$0xff] %v5612_v36  ;;  %v5630_v62 = vld [vmem:[%s7338_s3 + $0x30] sm:$0xff] }
 0x121   :  { %7426 = vst [vmem:[#allocation17_spill] sm:$0xff] %v5630_v62  ;;  %1683 = vmatpush.msra.mxu3 %v5630_v62  ;;  %v5648_v62 = vld [vmem:[#allocation2 + $0x118] sm:$0xff] }
 0x122   :  { %v563_v63 = vpop.f32.mrf.mxu0  ;;  %v5472_v41 = vpop.f32.mrf.mxu2  ;;  %7428 = vst [vmem:[#allocation19_spill] sm:$0xff] %v5648_v62 }
 0x123   :  { %v564_v42 = vadd.f32 %v5036_v5, %v563_v63  ;;  %v5475_v30 = vpop.f32.mrf.mxu3 }
 0x125   :  { %v575_v25 = vmax.f32 %v564_v42, 0.0  ;;  %4238 = vmatmul.msk.f32.gmra.mxu0 %vm147_vm2, %v5477_v44  ;;  %v1441_v44 = vld [vmem:[%s7340_s5] sm:$0xff] }
 0x126   :  { %1491 = vmatpush.msrb.mxu1 %v1441_v44  ;;  %v5638_v44 = vld [vmem:[%s7338_s3 + $0x28] sm:$0xff] }
 0x127   :  { %585 = vst.msk [vmem:[#allocation2 + $0x188] sm:$0xff] %vm147_vm2, %v575_v25  ;;  %4209 = vmatmul.msk.f32.gmra.mxu2 %vm147_vm2, %v5376_v34  ;;  %4222 = vmatmul.msk.f32.gmra.mxu3 %vm147_vm2, %v5410_v55  ;;  %v5598_v25 = vld [vmem:[#allocation2 + $0x108] sm:$0xff] }
 0x128   :  { %7423 = vst [vmem:[#allocation14_spill] sm:$0xff] %v5598_v25  ;;  %1684 = vmatpush.msra.mxu3 %v5638_v44  ;;  %1516 = vmatpush.msra.mxu1 %v4248_v48  ;;  %v1135_v48 = vpop.f32.mrf.mxu1 }
 0x129   :  { %7427 = vst [vmem:[#allocation18_spill] sm:$0xff] %v5638_v44 }
 0x12a   :  { %v5486_v12 = vpop.f32.mrf.mxu2  ;;  %v5515_v52 = vpop.f32.mrf.mxu0 }
 0x12b   :  { %v5488_v8 = vpop.f32.mrf.mxu3  ;;  %v803_v16 = vadd.f32 %v5475_v30, %v5486_v12 }
 0x12d   :  { %4299 = vmatmul.msk.f32.vlgmr.msrb.gmra.mxu0 %vm147_vm2, %v1164_v32 }
 0x12f   :  { %4210 = vmatmul.msk.f32.gmra.mxu2 %vm147_vm2, %v5395_v47  ;;  %4223 = vmatmul.msk.f32.gmra.mxu3 %vm147_vm2, %v5422_v1 }
 0x130   :  { %v1138_v12 = vpop.f32.mrf.mxu1 }
 0x132   :  { %v5495_v5 = vpop.f32.mrf.mxu2  ;;  %v5527_v56 = vpop.f32.mrf.mxu0 }
 0x133   :  { %v5497_v45 = vpop.f32.mrf.mxu3 }
 0x135   :  { %4300 = vmatmul.msk.f32.gmra.mxu0 %vm147_vm2, %v5438_v26 }
 0x137   :  { %4211 = vmatmul.msk.f32.gmra.mxu2 %vm147_vm2, %v5410_v55  ;;  %4224 = vmatmul.msk.f32.gmra.mxu3 %vm147_vm2, %v5434_v15 }
 0x13a   :  { %v5505_v50 = vpop.f32.mrf.mxu2  ;;  %v5544_v2 = vpop.f32.mrf.mxu0 }
 0x13b   :  { %v5507_v51 = vpop.f32.mrf.mxu3 }
 0x13d   :  { %4301 = vmatmul.msk.f32.gmra.mxu0 %vm147_vm2, %v5376_v34 }
 0x13f   :  { %4212 = vmatmul.msk.f32.gmra.mxu2 %vm147_vm2, %v5422_v1  ;;  %4225 = vmatmul.msk.f32.gmra.mxu3 %vm147_vm2, %v5449_v60 }
 0x142   :  { %v5517_v53 = vpop.f32.mrf.mxu2  ;;  %v5555_v10 = vpop.f32.mrf.mxu0 }
 0x143   :  { %v5519_v54 = vpop.f32.mrf.mxu3 }
 0x145   :  { %4302 = vmatmul.msk.f32.gmra.mxu0 %vm147_vm2, %v5395_v47 }
 0x147   :  { %4213 = vmatmul.msk.f32.gmra.mxu2 %vm147_vm2, %v5434_v15  ;;  %4226 = vmatmul.msk.f32.gmra.mxu3 %vm147_vm2, %v5463_v39 }
 0x14a   :  { %v5529_v57 = vpop.f32.mrf.mxu2  ;;  %v5566_v18 = vpop.f32.mrf.mxu0 }
 0x14b   :  { %v5531_v27 = vpop.f32.mrf.mxu3 }
 0x14d   :  { %4303 = vmatmul.msk.f32.gmra.mxu0 %vm147_vm2, %v5410_v55 }
 0x14f   :  { %4214 = vmatmul.msk.f32.gmra.mxu2 %vm147_vm2, %v5449_v60 }
 0x152   :  { %v5540_v58 = vpop.f32.mrf.mxu2  ;;  %v5579_v28 = vpop.f32.mrf.mxu0 }
 0x153   :  { %v5542_v61 = vpop.f32.mrf.mxu3 }
 0x155   :  { %4304 = vmatmul.msk.f32.gmra.mxu0 %vm147_vm2, %v5422_v1 }
 0x15a   :  { %v874_v9 = vpop.f32.mrf.mxu2  ;;  %v5596_v42 = vpop.f32.mrf.mxu0 }
 0x15b   :  { %v5548_v46 = vpop.f32.mrf.mxu3  ;;  %v898_v44 = vadd.f32 %v874_v9, %v797_v24  ;;  %v4246_v24 = vld [vmem:[%s7340_s5 + $0x48] sm:$0xff]  ;;  %v800_v9 = vadd.f32 %v5461_v37, %v5472_v41 }
 0x15d   :  { %4305 = vmatmul.msk.f32.gmra.mxu0 %vm147_vm2, %v5434_v15  ;;  %v984_v39 = vadd.f32 %v5542_v61, %v898_v44  ;;  %v4245_v15 = vld [vmem:[%s7340_s5 + $0x40] sm:$0xff] }
 0x15f   :  { %v1070_v44 = vadd.f32 %v5515_v52, %v984_v39  ;;  %v5693_v52 = vld [vmem:[%s7339_s4] ss:$0 sm:$0xff] }
 0x161   :  { %v1156_v37 = vadd.f32 %v1132_v11, %v1070_v44 }
 0x162   :  { %v5557_v14 = vpop.f32.mrf.mxu2 }
 0x163   :  { %v5559_v17 = vpop.f32.mrf.mxu3  ;;  %v899_v61 = vadd.f32 %v5557_v14, %v800_v9  ;;  %v4272_v14 = vld [vmem:[%s7340_s5 + $0xf0] sm:$0xff]  ;;  %v5687_v9 = vld [vmem:[#allocation2 + $0x128] sm:$0xff] }
 0x165   :  { %4306 = vmatmul.msk.f32.gmra.mxu0 %vm147_vm2, %v5449_v60 }
 0x16a   :  { %v5568_v4 = vpop.f32.mrf.mxu2 }
 0x16b   :  { %v5570_v20 = vpop.f32.mrf.mxu3  ;;  %v900_v39 = vadd.f32 %v5568_v4, %v803_v16  ;;  %v806_v16 = vadd.f32 %v5488_v8, %v5495_v5  ;;  %v4252_v5 = vld [vmem:[%s7340_s5 + $0x70] sm:$0xff] }
 0x16d   :  { %4331 = vmatmul.msk.f32.vlgmr.msra.gmra.mxu0 %vm147_vm2, %v5572_v21  ;;  %v5653_v21 = vld [vmem:[%s7338_s3 + $0x20] sm:$0xff]  ;;  %v986_v11 = vadd.f32 %v5559_v17, %v900_v39  ;;  %v1141_v39 = vpop.f32.mrf.mxu1 }
 0x16e   :  { %7429 = vst [vmem:[#allocation20_spill] sm:$0xff] %v5653_v21  ;;  %1685 = vmatpush.msra.mxu3 %v5653_v21 }
 0x16f   :  { %v1072_v8 = vadd.f32 %v5544_v2, %v986_v11  ;;  %v4250_v2 = vld [vmem:[%s7340_s5 + $0x60] sm:$0xff] }
 0x172   :  { %v5581_v29 = vpop.f32.mrf.mxu2 }
 0x173   :  { %v5583_v32 = vpop.f32.mrf.mxu3 }
 0x175   :  { %4332 = vmatmul.msk.f32.gmra.mxu0 %vm147_vm2, %v5585_v33  ;;  %v4273_v33 = vld [vmem:[%s7340_s5 + $0xf8] sm:$0xff] }
 0x176   :  { %1661 = vmatpush.msra.mxu2 %v4273_v33  ;;  %v4247_v33 = vld [vmem:[%s7340_s5 + $0x50] sm:$0xff] }
 0x177   :  { %1517 = vmatpush.msra.mxu1 %v4247_v33  ;;  %v985_v33 = vadd.f32 %v5548_v46, %v899_v61 }
 0x178   :  { %1662 = vmatpush.msra.mxu2 %v4272_v14 }
 0x179   :  { %1518 = vmatpush.msra.mxu1 %v4246_v24  ;;  %v1071_v30 = vadd.f32 %v5527_v56, %v985_v33  ;;  %v5705_v56 = vld [vmem:[#allocation2 + $0x130] sm:$0xff]  ;;  %v4251_v33 = vld [vmem:[%s7340_s5 + $0x68] sm:$0xff] }
 0x17a   :  { %v5592_v40 = vpop.f32.mrf.mxu2 }
 0x17b   :  { %v5594_v63 = vpop.f32.mrf.mxu3  ;;  %1519 = vmatpush.msra.mxu1 %v4245_v15  ;;  %v1157_v44 = vadd.f32 %v1135_v48, %v1071_v30 }
 0x17d   :  { %4333 = vmatmul.msk.f32.gmra.mxu0 %vm147_vm2, %v5598_v25  ;;  %v5619_v25 = vpop.f32.mrf.mxu0 }
 0x182   :  { %v5602_v43 = vpop.f32.mrf.mxu2 }
 0x183   :  { %v5607_v59 = vpop.f32.mrf.mxu3 }
 0x185   :  { %4334 = vmatmul.msk.f32.gmra.mxu0 %vm147_vm2, %v5612_v36  ;;  %v1390_v35 = vpop.f32.mrf.mxu0 }
 0x18a   :  { %v5633_v0 = vpop.f32.mrf.mxu2 }
 0x18b   :  { %v5643_v36 = vpop.f32.mrf.mxu3 }
 0x18d   :  { %4335 = vmatmul.msk.f32.gmra.mxu0 %vm147_vm2, %v5648_v62  ;;  %v5672_v62 = vld [vmem:[#allocation2 + $0x120] sm:$0xff]  ;;  %v1393_v41 = vpop.f32.mrf.mxu0 }
 0x192   :  { %v5665_v60 = vpop.f32.mrf.mxu2 }
 0x193   :  { %v1304_v21 = vpop.f32.mrf.mxu3 }
 0x195   :  { %4336 = vmatmul.msk.f32.gmra.mxu0 %vm147_vm2, %v5672_v62  ;;  %v1396_v14 = vpop.f32.mrf.mxu0 }
 0x19a   :  { %v1218_v24 = vpop.f32.mrf.mxu2 }
 0x19b   :  { %v1242_v1 = vadd.f32 %v1218_v24, %v1156_v37  ;;  %v1307_v55 = vpop.f32.mrf.mxu3  ;;  %v4253_v24 = vld [vmem:[%s7340_s5 + $0x78] sm:$0xff] }
 0x19d   :  { %v1328_v15 = vadd.f32 %v1304_v21, %v1242_v1  ;;  %4337 = vmatmul.msk.f32.gmra.mxu0 %vm147_vm2, %v5687_v9 }
 0x19f   :  { %v1414_v46 = vadd.f32 %v1390_v35, %v1328_v15  ;;  %v901_v35 = vadd.f32 %v5581_v29, %v806_v16  ;;  %v1158_v15 = vadd.f32 %v1138_v12, %v1072_v8  ;;  %v1399_v16 = vpop.f32.mrf.mxu0 }
 0x1a1   :  { %v1425_v61 = vadd.f32 %v5693_v52, %v1414_v46 }
 0x1a2   :  { %v1221_v37 = vpop.f32.mrf.mxu2 }
 0x1a3   :  { %v1433_v1 = vmax.f32 %v1425_v61, 0.0  ;;  %v1243_v4 = vadd.f32 %v1221_v37, %v1157_v44  ;;  %v1310_v21 = vpop.f32.mrf.mxu3  ;;  %v4271_v61 = vld [vmem:[%s7340_s5 + $0xe8] sm:$0xff] }
 0x1a4   :  { %1663 = vmatpush.msra.mxu2 %v4271_v61 }
 0x1a5   :  { %v1329_v17 = vadd.f32 %v1307_v55, %v1243_v4  ;;  %4244 = vmatmul.msk.f32.vlgmr.msrb.gmra.mxu1 %vm147_vm2, %v1433_v1  ;;  %4338 = vmatmul.msk.f32.gmra.mxu0 %vm147_vm2, %v5705_v56  ;;  %v987_v55 = vadd.f32 %v5570_v20, %v901_v35  ;;  %v5740_v1 = vld [vmem:[%s7338_s3 + $0x90] sm:$0xff]  ;;  %v5748_v35 = vld [vmem:[%s7338_s3 + $0x88] sm:$0xff] }
 0x1a6   :  { %1545 = vmatpush.msrb.mxu1 %v4253_v24 }
 0x1a7   :  { %v1415_v48 = vadd.f32 %v1393_v41, %v1329_v17  ;;  %v809_v41 = vadd.f32 %v5497_v45, %v5505_v50  ;;  %v1073_v37 = vadd.f32 %v5555_v10, %v987_v55  ;;  %v5734_v45 = vld [vmem:[%s7338_s3 + $0x98] sm:$0xff] }
 0x1a8   :  { %1546 = vmatpush.msrb.mxu1 %v4252_v5  ;;  %v5759_v5 = vld [vmem:[%s7338_s3 + $0x80] sm:$0xff] }
 0x1a9   :  { %v1426_v29 = vadd.f32 %v5693_v52, %v1415_v48  ;;  %v902_v20 = vadd.f32 %v5592_v40, %v809_v41  ;;  %v1159_v4 = vadd.f32 %v1141_v39, %v1073_v37  ;;  %v5812_v37 = vld [vmem:[%s7338_s3 + $0x50] sm:$0xff] }
 0x1aa   :  { %v1224_v30 = vpop.f32.mrf.mxu2  ;;  %1547 = vmatpush.msrb.mxu1 %v4251_v33 }
 0x1ab   :  { %v1434_v46 = vmax.f32 %v1426_v29, 0.0  ;;  %v1244_v11 = vadd.f32 %v1224_v30, %v1158_v15  ;;  %v1313_v44 = vpop.f32.mrf.mxu3  ;;  %v988_v40 = vadd.f32 %v5583_v32, %v902_v20  ;;  %v4258_v32 = vld [vmem:[%s7340_s5 + $0x98] sm:$0xff]  ;;  %v1402_v29 = vpop.f32.mrf.mxu0 }
 0x1ac   :  { %1548 = vmatpush.msrb.mxu1 %v4250_v2  ;;  %v4255_v2 = vld [vmem:[%s7340_s5 + $0x80] sm:$0xff]  ;;  %v5802_v20 = vld [vmem:[%s7338_s3 + $0x58] sm:$0xff] }
 0x1ad   :  { %v1330_v12 = vadd.f32 %v1310_v21, %v1244_v11  ;;  %4243 = vmatmul.msk.f32.vlgmr.msrb.gmra.mxu3 %vm147_vm2, %v1434_v46  ;;  %v1144_v21 = vpop.f32.mrf.mxu1 }
 0x1ae   :  { %1862 = vmatpush.msrb.mxu3 %v5734_v45 }
 0x1af   :  { %v1416_v50 = vadd.f32 %v1396_v14, %v1330_v12  ;;  %v812_v14 = vadd.f32 %v5507_v51, %v5517_v53  ;;  %v1074_v51 = vadd.f32 %v5566_v18, %v988_v40  ;;  %v4257_v53 = vld [vmem:[%s7340_s5 + $0x90] sm:$0xff]  ;;  %v4261_v12 = vld [vmem:[%s7340_s5 + $0xa8] sm:$0xff] }
 0x1b0   :  { %1863 = vmatpush.msrb.mxu3 %v5740_v1 }
 0x1b1   :  { %v1427_v10 = vadd.f32 %v5693_v52, %v1416_v50  ;;  %v903_v48 = vadd.f32 %v5602_v43, %v812_v14  ;;  %v4256_v43 = vld [vmem:[%s7340_s5 + $0x88] sm:$0xff]  ;;  %v1160_v15 = vadd.f32 %v1144_v21, %v1074_v51 }
 0x1b2   :  { %v1227_v24 = vpop.f32.mrf.mxu2  ;;  %1864 = vmatpush.msrb.mxu3 %v5748_v35  ;;  %v5823_v21 = vld [vmem:[%s7338_s3 + $0x48] sm:$0xff] }
 0x1b3   :  { %v1435_v17 = vmax.f32 %v1427_v10, 0.0  ;;  %v1245_v8 = vadd.f32 %v1227_v24, %v1159_v4  ;;  %v1316_v39 = vpop.f32.mrf.mxu3  ;;  %v4260_v10 = vld [vmem:[%s7340_s5 + $0xa0] sm:$0xff]  ;;  %v1405_v4 = vpop.f32.mrf.mxu0 }
 0x1b4   :  { %1865 = vmatpush.msrb.mxu3 %v5759_v5 }
 0x1b5   :  { %v1331_v33 = vadd.f32 %v1313_v44, %v1245_v8  ;;  %4249 = vmatmul.msk.f32.vlgmr.msra.gmra.mxu1 %vm147_vm2, %v1435_v17  ;;  %4275 = vmatmul.msk.f32.vlgmr.msra.gmra.mxu3 %vm147_vm2, %v5152_v3  ;;  %v989_v3 = vadd.f32 %v5594_v63, %v903_v48  ;;  %v4270_v63 = vld [vmem:[%s7340_s5 + $0xe0] sm:$0xff]  ;;  %v1147_v11 = vpop.f32.mrf.mxu1  ;;  %v4268_v17 = vld [vmem:[%s7340_s5 + $0xd8] sm:$0xff] }
 0x1b6   :  { %1574 = vmatpush.msra.mxu1 %v4258_v32  ;;  %2154 = vmatpush.msra.mxu3 %v5223_v49  ;;  %v815_v49 = vadd.f32 %v5519_v54, %v5529_v57  ;;  %v4262_v57 = vld [vmem:[%s7340_s5 + $0xb0] sm:$0xff]  ;;  %v5834_v8 = vld [vmem:[%s7338_s3 + $0x40] sm:$0xff] }
 0x1b7   :  { %v1417_v55 = vadd.f32 %v1399_v16, %v1331_v33  ;;  %1664 = vmatpush.msra.mxu2 %v4270_v63  ;;  %v1075_v54 = vadd.f32 %v5579_v28, %v989_v3  ;;  %v4267_v33 = vld [vmem:[%s7340_s5 + $0xd0] sm:$0xff] }
 0x1b8   :  { %1575 = vmatpush.msra.mxu1 %v4257_v53  ;;  %2155 = vmatpush.msra.mxu3 %v5254_v7  ;;  %v4263_v7 = vld [vmem:[%s7340_s5 + $0xb8] sm:$0xff]  ;;  %v904_v61 = vadd.f32 %v5633_v0, %v815_v49  ;;  %v5856_v49 = vld [vmem:[#allocation2 + $0x70] sm:$0xff] }
 0x1b9   :  { %v1428_v18 = vadd.f32 %v5693_v52, %v1417_v55  ;;  %1764 = vmatpush.msrb.mxu2 %v5802_v20  ;;  %v1161_v40 = vadd.f32 %v1147_v11, %v1075_v54  ;;  %v5870_v63 = vld [vmem:[%s7338_s3 + $0x10] sm:$0xff] }
 0x1ba   :  { %v1230_v30 = vpop.f32.mrf.mxu2  ;;  %1576 = vmatpush.msra.mxu1 %v4256_v43  ;;  %2156 = vmatpush.msra.mxu3 %v5269_v13  ;;  %v5791_v13 = vld [vmem:[#allocation2 + $0x60] sm:$0xff]  ;;  %v990_v16 = vadd.f32 %v5607_v59, %v904_v61  ;;  %v818_v59 = vadd.f32 %v5531_v27, %v5540_v58  ;;  %v5839_v27 = vld [vmem:[#allocation2 + $0x68] sm:$0xff] }
 0x1bb   :  { %v1436_v41 = vmax.f32 %v1428_v18, 0.0  ;;  %v1246_v46 = vadd.f32 %v1230_v30, %v1160_v15  ;;  %v1319_v28 = vpop.f32.mrf.mxu3  ;;  %1765 = vmatpush.msrb.mxu2 %v5812_v37 }
 0x1bc   :  { %1577 = vmatpush.msra.mxu1 %v4255_v2  ;;  %2157 = vmatpush.msra.mxu3 %v5281_v22  ;;  %v905_v32 = vadd.f32 %v5665_v60, %v818_v59  ;;  %v1076_v58 = vadd.f32 %v5596_v42, %v990_v16  ;;  %v4266_v60 = vld [vmem:[%s7340_s5 + $0xc8] sm:$0xff]  ;;  %v4265_v42 = vld [vmem:[%s7340_s5 + $0xc0] sm:$0xff]  ;;  %v1408_v2 = vpop.f32.mrf.mxu0  ;;  %v4639_v16 = vld [vmem:[#allocation2 + $0x78] sm:$0xff] }
 0x1bd   :  { %v1332_v44 = vadd.f32 %v1316_v39, %v1246_v46  ;;  %4254 = vmatmul.msk.f32.vlgmr.msrb.gmra.mxu1 %vm147_vm2, %v1436_v41  ;;  %4276 = vmatmul.msk.f32.gmra.mxu3 %vm147_vm2, %v5791_v13  ;;  %v1150_v51 = vpop.f32.mrf.mxu1  ;;  %v5864_v41 = vld [vmem:[%s7338_s3 + $0x18] sm:$0xff]  ;;  %v5904_v59 = vld [vmem:[%s7338_s3 + $0xa8] sm:$0xff] }
 0x1be   :  { %1603 = vmatpush.msrb.mxu1 %v4263_v7  ;;  %1766 = vmatpush.msrb.mxu2 %v5823_v21  ;;  %v991_v39 = vadd.f32 %v5643_v36, %v905_v32  ;;  %v1162_v43 = vadd.f32 %v1150_v51, %v1076_v58  ;;  %7432 = vst [vmem:[#allocation23_spill] sm:$0xff] %v5904_v59  ;;  %v5920_v32 = vld [vmem:[%s7338_s3 + $0xd8] sm:$0xff]  ;;  %v7440_v58 = vld [vmem:[#allocation3_spill] sm:$0xff]  ;;  %v1948_v51 = vld [vmem:[#allocation2 + $0xf0] sm:$0xff] }
 0x1bf   :  { %v1418_v0 = vadd.f32 %v1402_v29, %v1332_v44  ;;  %v5877_v44 = vld [vmem:[%s7338_s3 + $0x8] sm:$0xff] }
 0x1c0   :  { %1604 = vmatpush.msrb.mxu1 %v4262_v57  ;;  %1767 = vmatpush.msrb.mxu2 %v5834_v8  ;;  %v1077_v36 = vadd.f32 %v5619_v25, %v991_v39  ;;  %v7445_v39 = vld [vmem:[#allocation12_spill] sm:$0xff] }
 0x1c1   :  { %v1429_v50 = vadd.f32 %v5693_v52, %v1418_v0 }
 0x1c2   :  { %v1233_v22 = vpop.f32.mrf.mxu2  ;;  %1605 = vmatpush.msrb.mxu1 %v4261_v12  ;;  %v5883_v12 = vld [vmem:[%s7338_s3] sm:$0xff] }
 0x1c3   :  { %v1437_v24 = vmax.f32 %v1429_v50, 0.0  ;;  %v1247_v14 = vadd.f32 %v1233_v22, %v1161_v40  ;;  %v1322_v29 = vpop.f32.mrf.mxu3  ;;  %v5891_v40 = vld [vmem:[%s7338_s3 + $0xb8] sm:$0xff] }
 0x1c4   :  { %1606 = vmatpush.msrb.mxu1 %v4260_v10  ;;  %v1411_v50 = vpop.f32.mrf.mxu0  ;;  %7430 = vst [vmem:[#allocation21_spill] sm:$0xff] %v5891_v40 }
 0x1c5   :  { %v1333_v48 = vadd.f32 %v1319_v28, %v1247_v14  ;;  %4259 = vmatmul.msk.f32.vlgmr.msra.gmra.mxu1 %vm147_vm2, %v1437_v24  ;;  %4277 = vmatmul.msk.f32.gmra.mxu3 %vm147_vm2, %v5839_v27  ;;  %v1153_v7 = vpop.f32.mrf.mxu1  ;;  %v5910_v14 = vld [vmem:[%s7338_s3 + $0xa0] sm:$0xff] }
 0x1c6   :  { %1632 = vmatpush.msra.mxu1 %v4268_v17  ;;  %v1163_v61 = vadd.f32 %v1153_v7, %v1077_v36  ;;  %7433 = vst [vmem:[#allocation24_spill] sm:$0xff] %v5910_v14  ;;  %v4644_v17 = vld [vmem:[#allocation2 + $0x80] sm:$0xff] }
 0x1c7   :  { %v1419_v53 = vadd.f32 %v1405_v4, %v1333_v48  ;;  %v5897_v4 = vld [vmem:[%s7338_s3 + $0xb0] sm:$0xff]  ;;  %v4646_v48 = vld [vmem:[#allocation2 + $0x88] sm:$0xff]  ;;  %v7456_v36 = vld [vmem:[#allocation15_spill] sm:$0xff] }
 0x1c8   :  { %1633 = vmatpush.msra.mxu1 %v4267_v33  ;;  %7431 = vst [vmem:[#allocation22_spill] sm:$0xff] %v5897_v4  ;;  %v7441_v33 = vld [vmem:[#allocation8_spill] sm:$0xff] }
 0x1c9   :  { %v1430_v55 = vadd.f32 %v5693_v52, %v1419_v53  ;;  %v7442_v53 = vld [vmem:[#allocation9_spill] sm:$0xff] }
 0x1ca   :  { %v1236_v3 = vpop.f32.mrf.mxu2  ;;  %1634 = vmatpush.msra.mxu1 %v4266_v60  ;;  %v7444_v60 = vld [vmem:[#allocation10_spill] sm:$0xff] }
 0x1cb   :  { %v1438_v18 = vmax.f32 %v1430_v55, 0.0  ;;  %v1248_v15 = vadd.f32 %v1236_v3, %v1162_v43  ;;  %v1325_v0 = vpop.f32.mrf.mxu3  ;;  %v7448_v43 = vld [vmem:[#allocation13_spill] sm:$0xff] }
 0x1cc   :  { %1635 = vmatpush.msra.mxu1 %v4265_v42 }
 0x1cd   :  { %v1334_v30 = vadd.f32 %v1322_v29, %v1248_v15  ;;  %4264 = vmatmul.msk.f32.vlgmr.msrb.gmra.mxu1 %vm147_vm2, %v1438_v18  ;;  %4278 = vmatmul.msk.f32.gmra.mxu3 %vm147_vm2, %v5856_v49  ;;  %v6024_v29 = vld [vmem:[%s7338_s3 + $0xf0] sm:$0xff]  ;;  %v7452_v18 = vld [vmem:[#allocation4_spill] sm:$0xff] }
 0x1ce   :  { %1723 = vmatpush.msrb.mxu1 %v5864_v41  ;;  %7450 = vst [vmem:[#allocation9_spill] sm:$0xff] %v6024_v29  ;;  %v7453_v15 = vld [vmem:[#allocation5_spill] sm:$0xff] }
 0x1cf   :  { %v1420_v46 = vadd.f32 %v1408_v2, %v1334_v30  ;;  %v7454_v2 = vld [vmem:[#allocation14_spill] sm:$0xff] }
 0x1d0   :  { %1724 = vmatpush.msrb.mxu1 %v5870_v63 }
 0x1d1   :  { %v1431_v11 = vadd.f32 %v5693_v52, %v1420_v46 }
 0x1d2   :  { %v1239_v25 = vpop.f32.mrf.mxu2  ;;  %1725 = vmatpush.msrb.mxu1 %v5877_v44 }
 0x1d3   :  { %v1439_v54 = vmax.f32 %v1431_v11, 0.0  ;;  %v1249_v57 = vadd.f32 %v1239_v25, %v1163_v61  ;;  %v7458_v11 = vld [vmem:[#allocation19_spill] sm:$0xff] }
 0x1d4   :  { %1726 = vmatpush.msrb.mxu1 %v5883_v12 }
 0x1d5   :  { %v1335_v28 = vadd.f32 %v1325_v0, %v1249_v57  ;;  %4269 = vmatmul.msk.f32.vlgmr.msra.gmra.mxu1 %vm147_vm2, %v1439_v54  ;;  %4279 = vmatmul.msk.f32.gmra.mxu3 %vm147_vm2, %v4639_v16  ;;  %v7460_v54 = vld [vmem:[#allocation11_spill] sm:$0xff]  ;;  %v6067_v57 = vpop.f32.mrf.mxu0 }
 0x1d6   :  { %1911 = vmatpush.msra.mxu1 %v5891_v40 }
 0x1d7   :  { %v1421_v10 = vadd.f32 %v1411_v50, %v1335_v28 }
 0x1d8   :  { %1912 = vmatpush.msra.mxu1 %v5897_v4 }
 0x1d9   :  { %v1432_v22 = vadd.f32 %v5693_v52, %v1421_v10 }
 0x1da   :  { %1913 = vmatpush.msra.mxu1 %v5904_v59 }
 0x1db   :  { %v1440_v24 = vmax.f32 %v1432_v22, 0.0 }
 0x1dc   :  { %1914 = vmatpush.msra.mxu1 %v5910_v14 }
 0x1dd   :  { %4274 = vmatmul.msk.f32.vlgmr.msra.gmra.mxu2 %vm147_vm2, %v1440_v24  ;;  %4280 = vmatmul.msk.f32.gmra.mxu3 %vm147_vm2, %v4644_v17  ;;  %v6081_v10 = vpop.f32.mrf.mxu0 }
 0x1de   :  { %4283 = vmatmul.msk.f32.vlgmr.msrb.gmra.mxu1 %vm147_vm2, %v5274_v19  ;;  %1992 = vmatpush.msra.mxu2 %v5920_v32  ;;  %v4647_v19 = vld [vmem:[#allocation2 + $0x58] sm:$0xff] }
 0x1e0   :  { %1993 = vmatpush.msra.mxu2 %v5249_v6  ;;  %v5945_v6 = vld [vmem:[%s7338_s3 + $0x78] sm:$0xff] }
 0x1e1   :  { %7434 = vst [vmem:[#allocation25_spill] sm:$0xff] %v5945_v6 }
 0x1e2   :  { %1994 = vmatpush.msra.mxu2 %v5323_v38  ;;  %v5951_v38 = vld [vmem:[%s7338_s3 + $0x70] sm:$0xff] }
 0x1e3   :  { %7435 = vst [vmem:[#allocation26_spill] sm:$0xff] %v5951_v38 }
 0x1e4   :  { %1995 = vmatpush.msra.mxu2 %v5363_v23  ;;  %v5957_v23 = vld [vmem:[%s7338_s3 + $0x68] sm:$0xff] }
 0x1e5   :  { %4281 = vmatmul.msk.f32.gmra.mxu3 %vm147_vm2, %v4646_v48  ;;  %4291 = vmatmul.msk.f32.vlgmr.msrb.gmra.mxu2 %vm147_vm2, %v5791_v13  ;;  %7436 = vst [vmem:[#allocation27_spill] sm:$0xff] %v5957_v23 }
 0x1e6   :  { %4284 = vmatmul.msk.f32.gmra.mxu1 %vm147_vm2, %v4647_v19 }
 0x1ed   :  { %4282 = vmatmul.msk.f32.gmra.mxu3 %vm147_vm2, %v5293_v31  ;;  %4292 = vmatmul.msk.f32.gmra.mxu2 %vm147_vm2, %v5839_v27 }
 0x1ee   :  { %4285 = vmatmul.msk.f32.gmra.mxu1 %vm147_vm2, %v5791_v13  ;;  %v7438_v13 = vld [vmem:[#allocation6_spill] sm:$0xff] }
 0x1f5   :  { %4293 = vmatmul.msk.f32.gmra.mxu2 %vm147_vm2, %v5856_v49  ;;  %4307 = vmatmul.msk.f32.vlgmr.msrb.gmra.mxu3 %vm147_vm2, %v5438_v26  ;;  %v5963_v26 = vld [vmem:[%s7338_s3 + $0x60] sm:$0xff] }
 0x1f6   :  { %4286 = vmatmul.msk.f32.gmra.mxu1 %vm147_vm2, %v5839_v27  ;;  %2582 = vmatpush.msrb.mxu3 %v5945_v6  ;;  %7437 = vst [vmem:[#allocation28_spill] sm:$0xff] %v5963_v26  ;;  %v7439_v27 = vld [vmem:[#allocation7_spill] sm:$0xff] }
 0x1f8   :  { %2583 = vmatpush.msrb.mxu3 %v5951_v38 }
 0x1fa   :  { %2584 = vmatpush.msrb.mxu3 %v5957_v23 }
 0x1fc   :  { %2585 = vmatpush.msrb.mxu3 %v5963_v26  ;;  %v4348_v26 = vld [vmem:[%s7340_s5 + $0x108] sm:$0xff] }
 0x1fd   :  { %4294 = vmatmul.msk.f32.gmra.mxu2 %vm147_vm2, %v4639_v16  ;;  %4308 = vmatmul.msk.f32.gmra.mxu3 %vm147_vm2, %v5376_v34 }
 0x1fe   :  { %4287 = vmatmul.msk.f32.gmra.mxu1 %vm147_vm2, %v5856_v49 }
 0x205   :  { %4295 = vmatmul.msk.f32.gmra.mxu2 %vm147_vm2, %v4644_v17  ;;  %4309 = vmatmul.msk.f32.gmra.mxu3 %vm147_vm2, %v5395_v47 }
 0x206   :  { %4288 = vmatmul.msk.f32.gmra.mxu1 %vm147_vm2, %v4639_v16 }
 0x20d   :  { %4296 = vmatmul.msk.f32.gmra.mxu2 %vm147_vm2, %v4646_v48  ;;  %4310 = vmatmul.msk.f32.gmra.mxu3 %vm147_vm2, %v7438_v13 }
 0x20e   :  { %4289 = vmatmul.msk.f32.gmra.mxu1 %vm147_vm2, %v4644_v17 }
 0x215   :  { %4297 = vmatmul.msk.f32.gmra.mxu2 %vm147_vm2, %v5293_v31  ;;  %4311 = vmatmul.msk.f32.gmra.mxu3 %vm147_vm2, %v7439_v27 }
 0x216   :  { %4290 = vmatmul.msk.f32.gmra.mxu1 %vm147_vm2, %v4646_v48  ;;  %v6091_v48 = vpop.f32.mrf.mxu0 }
 0x21d   :  { %4298 = vmatmul.msk.f32.gmra.mxu2 %vm147_vm2, %v7440_v58  ;;  %4312 = vmatmul.msk.f32.gmra.mxu3 %vm147_vm2, %v7441_v33 }
 0x21e   :  { %4315 = vmatmul.msk.f32.vlgmr.msra.gmra.mxu1 %vm147_vm2, %v5376_v34 }
 0x222   :  { %v5995_v31 = vpop.f32.mrf.mxu1 }
 0x223   :  { %7443 = vst [vmem:[#allocation6_spill] sm:$0xff] %v5995_v31 }
 0x225   :  { %4313 = vmatmul.msk.f32.gmra.mxu3 %vm147_vm2, %v7442_v53  ;;  %4323 = vmatmul.msk.f32.vlgmr.msra.gmra.mxu2 %vm147_vm2, %v1948_v51 }
 0x226   :  { %4316 = vmatmul.msk.f32.gmra.mxu1 %vm147_vm2, %v5395_v47  ;;  %v6016_v47 = vld [vmem:[%s7338_s3 + $0xf8] sm:$0xff] }
 0x227   :  { %7449 = vst [vmem:[#allocation8_spill] sm:$0xff] %v6016_v47 }
 0x22d   :  { %4314 = vmatmul.msk.f32.gmra.mxu3 %vm147_vm2, %v7444_v60  ;;  %4324 = vmatmul.msk.f32.gmra.mxu2 %vm147_vm2, %v7445_v39 }
 0x22e   :  { %4317 = vmatmul.msk.f32.gmra.mxu1 %vm147_vm2, %v7438_v13  ;;  %v6095_v13 = vld [vmem:[#allocation2 + $0x138] sm:$0xff] }
 0x22f   :  { %7462 = vst [vmem:[#allocation14_spill] sm:$0xff] %v6095_v13 }
 0x230   :  { %v6003_v34 = vpop.f32.mrf.mxu3 }
 0x231   :  { %7446 = vst [vmem:[#allocation7_spill] sm:$0xff] %v6003_v34 }
 0x232   :  { %v6005_v55 = vpop.f32.mrf.mxu1 }
 0x233   :  { %7447 = vst [vmem:[#allocation3_spill] sm:$0xff] %v6005_v55 }
 0x235   :  { %4325 = vmatmul.msk.f32.gmra.mxu2 %vm147_vm2, %v7448_v43  ;;  %4339 = vmatmul.msk.f32.vlgmr.msra.gmra.mxu3 %vm147_vm2, %v7448_v43 }
 0x236   :  { %4318 = vmatmul.msk.f32.gmra.mxu1 %vm147_vm2, %v7439_v27  ;;  %2842 = vmatpush.msra.mxu3 %v6016_v47 }
 0x238   :  { %v6019_v42 = vpop.f32.mrf.mxu3  ;;  %2843 = vmatpush.msra.mxu3 %v6024_v29 }
 0x23a   :  { %v6027_v3 = vpop.f32.mrf.mxu1  ;;  %2844 = vmatpush.msra.mxu3 %v7452_v18 }
 0x23b   :  { %7451 = vst [vmem:[#allocation10_spill] sm:$0xff] %v6027_v3 }
 0x23c   :  { %2845 = vmatpush.msra.mxu3 %v7453_v15 }
 0x23d   :  { %4326 = vmatmul.msk.f32.gmra.mxu2 %vm147_vm2, %v7454_v2  ;;  %4340 = vmatmul.msk.f32.gmra.mxu3 %vm147_vm2, %v7454_v2 }
 0x23e   :  { %4319 = vmatmul.msk.f32.gmra.mxu1 %vm147_vm2, %v7441_v33 }
 0x240   :  { %v6037_v30 = vpop.f32.mrf.mxu3 }
 0x242   :  { %v6039_v49 = vpop.f32.mrf.mxu1 }
 0x243   :  { %7455 = vst [vmem:[#allocation12_spill] sm:$0xff] %v6039_v49 }
 0x245   :  { %4327 = vmatmul.msk.f32.gmra.mxu2 %vm147_vm2, %v7456_v36  ;;  %4341 = vmatmul.msk.f32.gmra.mxu3 %vm147_vm2, %v7456_v36 }
 0x246   :  { %4320 = vmatmul.msk.f32.gmra.mxu1 %vm147_vm2, %v7442_v53 }
 0x248   :  { %v6047_v46 = vpop.f32.mrf.mxu3 }
 0x24a   :  { %v6049_v7 = vpop.f32.mrf.mxu1 }
 0x24b   :  { %7457 = vst [vmem:[#allocation13_spill] sm:$0xff] %v6049_v7 }
 0x24d   :  { %4328 = vmatmul.msk.f32.gmra.mxu2 %vm147_vm2, %v7458_v11  ;;  %4342 = vmatmul.msk.f32.gmra.mxu3 %vm147_vm2, %v7458_v11 }
 0x24e   :  { %4321 = vmatmul.msk.f32.gmra.mxu1 %vm147_vm2, %v7444_v60 }
 0x250   :  { %v6057_v61 = vpop.f32.mrf.mxu3 }
 0x252   :  { %v6059_v25 = vpop.f32.mrf.mxu1 }
 0x253   :  { %7459 = vst [vmem:[#allocation4_spill] sm:$0xff] %v6059_v25 }
 0x255   :  { %4329 = vmatmul.msk.f32.gmra.mxu2 %vm147_vm2, %v5672_v62  ;;  %4343 = vmatmul.msk.f32.gmra.mxu3 %vm147_vm2, %v5672_v62 }
 0x256   :  { %4322 = vmatmul.msk.f32.gmra.mxu1 %vm147_vm2, %v7460_v54 }
 0x258   :  { %v6069_v0 = vpop.f32.mrf.mxu3 }
 0x25b   :  { %v6071_v28 = vpop.f32.mrf.mxu1 }
 0x25d   :  { %4330 = vmatmul.msk.f32.gmra.mxu2 %vm147_vm2, %v5687_v9  ;;  %4344 = vmatmul.msk.f32.gmra.mxu3 %vm147_vm2, %v5687_v9 }
 0x260   :  { %v6077_v16 = vpop.f32.mrf.mxu2  ;;  %v6079_v50 = vpop.f32.mrf.mxu3 }
 0x261   :  { %7461 = vst [vmem:[#allocation5_spill] sm:$0xff] %v6077_v16 }
 0x263   :  { %v6083_v22 = vpop.f32.mrf.mxu1 }
 0x265   :  { %4345 = vmatmul.msk.f32.gmra.mxu3 %vm147_vm2, %v5705_v56  ;;  %v6105_v56 = vpop.f32.mrf.mxu0 }
 0x268   :  { %v6087_v24 = vpop.f32.mrf.mxu3  ;;  %v6089_v17 = vpop.f32.mrf.mxu2 }
 0x26b   :  { %v6093_v19 = vpop.f32.mrf.mxu1 }
 0x26d   :  { %4346 = vmatmul.msk.f32.gmra.mxu3 %vm147_vm2, %v6095_v13  ;;  %v6121_v15 = vpop.f32.mrf.mxu0 }
 0x270   :  { %v6099_v27 = vpop.f32.mrf.mxu3  ;;  %v6101_v58 = vpop.f32.mrf.mxu2 }
 0x273   :  { %v6103_v33 = vpop.f32.mrf.mxu1 }
 0x275   :  { %4411 = vmatmul.msk.f32.vlgmr.msrb.gmra.mxu3 %vm147_vm2, %v1948_v51  ;;  %v4360_v51 = vld [vmem:[%s7340_s5 + $0x158] sm:$0xff] }
 0x276   :  { %3302 = vmatpush.msrb.mxu3 %v5802_v20  ;;  %2285 = vmatpush.msrb.mxu0 %v4360_v51  ;;  %v4359_v51 = vld [vmem:[%s7340_s5 + $0x150] sm:$0xff] }
 0x278   :  { %v6109_v53 = vpop.f32.mrf.mxu2  ;;  %v1867_v60 = vpop.f32.mrf.mxu3  ;;  %3303 = vmatpush.msrb.mxu3 %v5812_v37  ;;  %2286 = vmatpush.msrb.mxu0 %v4359_v51  ;;  %v4349_v51 = vld [vmem:[%s7340_s5 + $0x110] sm:$0xff] }
 0x27a   :  { %3304 = vmatpush.msrb.mxu3 %v5823_v21 }
 0x27b   :  { %v6113_v18 = vpop.f32.mrf.mxu1 }
 0x27c   :  { %3305 = vmatpush.msrb.mxu3 %v5834_v8 }
 0x27d   :  { %4412 = vmatmul.msk.f32.gmra.mxu3 %vm147_vm2, %v7445_v39  ;;  %v6135_v39 = vpop.f32.mrf.mxu0 }
 0x280   :  { %v6123_v54 = vpop.f32.mrf.mxu2  ;;  %v6125_v16 = vpop.f32.mrf.mxu3 }
 0x283   :  { %v6127_v25 = vpop.f32.mrf.mxu1 }
 0x285   :  { %4413 = vmatmul.msk.f32.gmra.mxu3 %vm147_vm2, %v7448_v43  ;;  %v6148_v43 = vpop.f32.mrf.mxu0 }
 0x288   :  { %v6131_v7 = vpop.f32.mrf.mxu2  ;;  %v6133_v49 = vpop.f32.mrf.mxu3 }
 0x28b   :  { %v6137_v3 = vpop.f32.mrf.mxu1 }
 0x28d   :  { %4414 = vmatmul.msk.f32.gmra.mxu3 %vm147_vm2, %v7454_v2  ;;  %v4350_v2 = vld [vmem:[%s7340_s5 + $0x118] sm:$0xff]  ;;  %v6167_v23 = vpop.f32.mrf.mxu0 }
 0x28e   :  { %2227 = vmatpush.msrb.mxu1 %v4350_v2 }
 0x290   :  { %v6144_v55 = vpop.f32.mrf.mxu2  ;;  %v6146_v31 = vpop.f32.mrf.mxu3  ;;  %2228 = vmatpush.msrb.mxu1 %v4349_v51  ;;  %v4358_v51 = vld [vmem:[%s7340_s5 + $0x148] sm:$0xff] }
 0x291   :  { %2287 = vmatpush.msrb.mxu0 %v4358_v51  ;;  %v4352_v51 = vld [vmem:[%s7340_s5 + $0x120] sm:$0xff] }
 0x292   :  { %2229 = vmatpush.msrb.mxu1 %v4348_v26  ;;  %v4354_v26 = vld [vmem:[%s7340_s5 + $0x130] sm:$0xff] }
 0x293   :  { %v6150_v34 = vpop.f32.mrf.mxu1 }
 0x295   :  { %4415 = vmatmul.msk.f32.gmra.mxu3 %vm147_vm2, %v7456_v36  ;;  %v4347_v36 = vld [vmem:[%s7340_s5 + $0x100] sm:$0xff]  ;;  %v2078_v13 = vpop.f32.mrf.mxu0 }
 0x296   :  { %2230 = vmatpush.msrb.mxu1 %v4347_v36  ;;  %v4353_v36 = vld [vmem:[%s7340_s5 + $0x128] sm:$0xff] }
 0x298   :  { %v6154_v29 = vpop.f32.mrf.mxu2  ;;  %v6156_v47 = vpop.f32.mrf.mxu3 }
 0x29b   :  { %v1916_v2 = vpop.f32.mrf.mxu1 }
 0x29d   :  { %4416 = vmatmul.msk.f32.gmra.mxu3 %vm147_vm2, %v7458_v11  ;;  %v4355_v11 = vld [vmem:[%s7340_s5 + $0x138] sm:$0xff] }
 0x29e   :  { %2256 = vmatpush.msrb.mxu2 %v4355_v11  ;;  %v1729_v11 = vadd.f32 %v6071_v28, %v6019_v42  ;;  %v1732_v42 = vadd.f32 %v6083_v22, %v6037_v30  ;;  %v4363_v22 = vld [vmem:[%s7340_s5 + $0x168] sm:$0xff] }
 0x2a0   :  { %v6177_v38 = vpop.f32.mrf.mxu2  ;;  %v6179_v6 = vpop.f32.mrf.mxu3  ;;  %2257 = vmatpush.msrb.mxu2 %v4354_v26  ;;  %v1793_v59 = vadd.f32 %v6089_v17, %v1729_v11  ;;  %v4365_v17 = vld [vmem:[%s7340_s5 + $0x178] sm:$0xff]  ;;  %v4364_v11 = vld [vmem:[%s7340_s5 + $0x170] sm:$0xff] }
 0x2a1   :  { %2314 = vmatpush.msra.mxu1 %v4365_v17 }
 0x2a2   :  { %2258 = vmatpush.msrb.mxu2 %v4353_v36  ;;  %v1842_v40 = vadd.f32 %v6067_v57, %v1793_v59  ;;  %v1794_v59 = vadd.f32 %v6101_v58, %v1732_v42  ;;  %v4362_v58 = vld [vmem:[%s7340_s5 + $0x160] sm:$0xff] }
 0x2a3   :  { %v1919_v4 = vpop.f32.mrf.mxu1  ;;  %2315 = vmatpush.msra.mxu1 %v4364_v11 }
 0x2a4   :  { %2259 = vmatpush.msrb.mxu2 %v4352_v51  ;;  %v1891_v28 = vadd.f32 %v1867_v60, %v1842_v40  ;;  %v6217_v40 = vld [vmem:[#allocation2 + $0x148] sm:$0xff]  ;;  %v1843_v60 = vadd.f32 %v6081_v10, %v1794_v59  ;;  %v4370_v10 = vld [vmem:[%s7340_s5 + $0x198] sm:$0xff]  ;;  %v6238_v59 = vld [vmem:[%s7338_s3 + $0xd0] sm:$0xff] }
 0x2a5   :  { %4417 = vmatmul.msk.f32.gmra.mxu3 %vm147_vm2, %v5672_v62  ;;  %v4357_v62 = vld [vmem:[%s7340_s5 + $0x140] sm:$0xff]  ;;  %2316 = vmatpush.msra.mxu1 %v4363_v22 }
 0x2a6   :  { %2288 = vmatpush.msrb.mxu0 %v4357_v62  ;;  %v1940_v57 = vadd.f32 %v1916_v2, %v1891_v28  ;;  %v1735_v2 = vadd.f32 %v6093_v19, %v6047_v46  ;;  %2343 = vmatpush.msra.mxu2 %v4370_v10 }
 0x2a7   :  { %2317 = vmatpush.msra.mxu1 %v4362_v58 }
 0x2a8   :  { %v6197_v14 = vpop.f32.mrf.mxu3  ;;  %v1997_v26 = vpop.f32.mrf.mxu2 }
 0x2a9   :  { %v2021_v62 = vadd.f32 %v1997_v26, %v1940_v57  ;;  %v1892_v26 = vadd.f32 %v6125_v16, %v1843_v60  ;;  %v1795_v57 = vadd.f32 %v6109_v53, %v1735_v2  ;;  %v4369_v16 = vld [vmem:[%s7340_s5 + $0x190] sm:$0xff]  ;;  %v6260_v60 = vld [vmem:[%s7338_s3 + $0xc0] sm:$0xff] }
 0x2aa   :  { %2344 = vmatpush.msra.mxu2 %v4369_v16  ;;  %v6252_v53 = vld [vmem:[#allocation2 + $0x150] sm:$0xff]  ;;  %v4367_v2 = vld [vmem:[%s7340_s5 + $0x180] sm:$0xff] }
 0x2ab   :  { %v1922_v30 = vpop.f32.mrf.mxu1  ;;  %v2102_v42 = vadd.f32 %v2078_v13, %v2021_v62  ;;  %v1941_v46 = vadd.f32 %v1919_v4, %v1892_v26  ;;  %v6248_v13 = vld [vmem:[%s7338_s3 + $0xc8] sm:$0xff]  ;;  %v1844_v58 = vadd.f32 %v6091_v48, %v1795_v57  ;;  %v4375_v48 = vld [vmem:[%s7340_s5 + $0x1b8] sm:$0xff] }
 0x2ac   :  { %v4368_v4 = vld [vmem:[%s7340_s5 + $0x188] sm:$0xff]  ;;  %2372 = vmatpush.msra.mxu0 %v4375_v48 }
 0x2ad   :  { %4418 = vmatmul.msk.f32.gmra.mxu3 %vm147_vm2, %v5687_v9  ;;  %v2081_v9 = vpop.f32.mrf.mxu0  ;;  %2345 = vmatpush.msra.mxu2 %v4368_v4 }
 0x2af   :  { %2346 = vmatpush.msra.mxu2 %v4367_v2 }
 0x2b0   :  { %v6208_v36 = vpop.f32.mrf.mxu3  ;;  %v2000_v51 = vpop.f32.mrf.mxu2 }
 0x2b1   :  { %v2022_v11 = vadd.f32 %v2000_v51, %v1941_v46 }
 0x2b3   :  { %v1925_v26 = vpop.f32.mrf.mxu1  ;;  %v2103_v10 = vadd.f32 %v2081_v9, %v2022_v11  ;;  %v6281_v9 = vld [vmem:[#allocation2 + $0x158] sm:$0xff]  ;;  %v4373_v11 = vld [vmem:[%s7340_s5 + $0x1a8] sm:$0xff] }
 0x2b5   :  { %4443 = vmatmul.msk.f32.vlgmr.msra.gmra.mxu3 %vm147_vm2, %v6217_v40  ;;  %v2084_v22 = vpop.f32.mrf.mxu0 }
 0x2b6   :  { %3530 = vmatpush.msra.mxu3 %v5920_v32 }
 0x2b8   :  { %v2003_v28 = vpop.f32.mrf.mxu2  ;;  %v2159_v17 = vpop.f32.mrf.mxu3  ;;  %3531 = vmatpush.msra.mxu3 %v6238_v59 }
 0x2b9   :  { %v2183_v19 = vadd.f32 %v2159_v17, %v2102_v42  ;;  %v1738_v42 = vadd.f32 %v6103_v33, %v6057_v61  ;;  %v1893_v17 = vadd.f32 %v6133_v49, %v1844_v58  ;;  %v4374_v61 = vld [vmem:[%s7340_s5 + $0x1b0] sm:$0xff] }
 0x2ba   :  { %3532 = vmatpush.msra.mxu3 %v6248_v13  ;;  %2373 = vmatpush.msra.mxu0 %v4374_v61 }
 0x2bb   :  { %v2191_v62 = vadd.f32 %v5693_v52, %v2183_v19  ;;  %v1796_v19 = vadd.f32 %v6123_v54, %v1738_v42  ;;  %v1942_v16 = vadd.f32 %v1922_v30, %v1893_v17  ;;  %v4372_v54 = vld [vmem:[%s7340_s5 + $0x1a0] sm:$0xff]  ;;  %v4380_v17 = vld [vmem:[%s7340_s5 + $0x1d8] sm:$0xff] }
 0x2bc   :  { %3533 = vmatpush.msra.mxu3 %v6260_v60  ;;  %2374 = vmatpush.msra.mxu0 %v4373_v11  ;;  %v7464_v11 = vld [vmem:[#allocation16_spill] sm:$0xff] }
 0x2bd   :  { %v2199_v51 = vmax.f32 %v2191_v62, 0.0  ;;  %4444 = vmatmul.msk.f32.gmra.mxu3 %vm147_vm2, %v6252_v53  ;;  %v2023_v49 = vadd.f32 %v2003_v28, %v1942_v16  ;;  %v1845_v4 = vadd.f32 %v6105_v56, %v1796_v19  ;;  %v2087_v30 = vpop.f32.mrf.mxu0  ;;  %v1741_v28 = vadd.f32 %v6113_v18, %v6069_v0  ;;  %v1928_v56 = vpop.f32.mrf.mxu1  ;;  %v4378_v16 = vld [vmem:[%s7340_s5 + $0x1c8] sm:$0xff] }
 0x2be   :  { %2375 = vmatpush.msra.mxu0 %v4372_v54 }
 0x2bf   :  { %4351 = vmatmul.msk.f32.vlgmr.msrb.gmra.mxu1 %vm147_vm2, %v2199_v51  ;;  %v1894_v51 = vadd.f32 %v6146_v31, %v1845_v4  ;;  %v2104_v2 = vadd.f32 %v2084_v22, %v2023_v49  ;;  %v4379_v31 = vld [vmem:[%s7340_s5 + $0x1d0] sm:$0xff]  ;;  %v6304_v22 = vld [vmem:[#allocation2 + $0x160] sm:$0xff]  ;;  %v4385_v4 = vld [vmem:[%s7340_s5 + $0x1f8] sm:$0xff] }
 0x2c0   :  { %v2006_v57 = vpop.f32.mrf.mxu2  ;;  %v2162_v46 = vpop.f32.mrf.mxu3  ;;  %2401 = vmatpush.msrb.mxu1 %v4380_v17  ;;  %7463 = vst [vmem:[#allocation15_spill] sm:$0xff] %v6304_v22  ;;  %v7467_v17 = vld [vmem:[#allocation18_spill] sm:$0xff] }
 0x2c1   :  { %v2184_v62 = vadd.f32 %v2162_v46, %v2103_v10  ;;  %v1797_v10 = vadd.f32 %v6131_v7, %v1741_v28  ;;  %v1943_v48 = vadd.f32 %v1925_v26, %v1894_v51 }
 0x2c2   :  { %2402 = vmatpush.msrb.mxu1 %v4379_v31 }
 0x2c3   :  { %v2192_v33 = vadd.f32 %v5693_v52, %v2184_v62  ;;  %v2024_v0 = vadd.f32 %v2006_v57, %v1943_v48  ;;  %v1846_v7 = vadd.f32 %v6121_v15, %v1797_v10  ;;  %v4377_v57 = vld [vmem:[%s7340_s5 + $0x1c0] sm:$0xff]  ;;  %v1744_v62 = vadd.f32 %v6127_v25, %v6079_v50  ;;  %v7465_v50 = vld [vmem:[#allocation17_spill] sm:$0xff] }
 0x2c4   :  { %2403 = vmatpush.msrb.mxu1 %v4378_v16  ;;  %v4382_v48 = vld [vmem:[%s7340_s5 + $0x1e0] sm:$0xff] }
 0x2c5   :  { %v2200_v58 = vmax.f32 %v2192_v33, 0.0  ;;  %4445 = vmatmul.msk.f32.gmra.mxu3 %vm147_vm2, %v6281_v9  ;;  %v1895_v61 = vadd.f32 %v6156_v47, %v1846_v7  ;;  %v2105_v49 = vadd.f32 %v2087_v30, %v2024_v0  ;;  %v2090_v33 = vpop.f32.mrf.mxu0  ;;  %v1931_v25 = vpop.f32.mrf.mxu1  ;;  %v4384_v47 = vld [vmem:[%s7340_s5 + $0x1f0] sm:$0xff] }
 0x2c6   :  { %2404 = vmatpush.msrb.mxu1 %v4377_v57 }
 0x2c7   :  { %4356 = vmatmul.msk.f32.vlgmr.msrb.gmra.mxu2 %vm147_vm2, %v2200_v58  ;;  %v1798_v58 = vadd.f32 %v6144_v55, %v1744_v62  ;;  %v1944_v54 = vadd.f32 %v1928_v56, %v1895_v61  ;;  %v4383_v55 = vld [vmem:[%s7340_s5 + $0x1e8] sm:$0xff] }
 0x2c8   :  { %v2165_v42 = vpop.f32.mrf.mxu3  ;;  %v2009_v19 = vpop.f32.mrf.mxu2  ;;  %2430 = vmatpush.msrb.mxu2 %v4385_v4 }
 0x2c9   :  { %v2185_v46 = vadd.f32 %v2165_v42, %v2104_v2  ;;  %v2025_v30 = vadd.f32 %v2009_v19, %v1944_v54  ;;  %v6329_v42 = vld [vmem:[#allocation2 + $0x168] sm:$0xff]  ;;  %v1847_v56 = vadd.f32 %v6135_v39, %v1798_v58  ;;  %v1747_v19 = vadd.f32 %v6137_v3, %v6087_v24  ;;  %v6350_v24 = vld [vmem:[#allocation2 + $0x170] sm:$0xff]  ;;  %v6365_v58 = vld [vmem:[#allocation2 + $0x178] sm:$0xff] }
 0x2ca   :  { %2431 = vmatpush.msrb.mxu2 %v4384_v47  ;;  %7466 = vst [vmem:[#allocation19_spill] sm:$0xff] %v6329_v42 }
 0x2cb   :  { %v2193_v18 = vadd.f32 %v5693_v52, %v2185_v46  ;;  %v7468_v46 = vld [vmem:[#allocation20_spill] sm:$0xff]  ;;  %v1896_v31 = vadd.f32 %v6179_v6, %v1847_v56  ;;  %v2106_v0 = vadd.f32 %v2090_v33, %v2025_v30  ;;  %7469 = vst [vmem:[#allocation11_spill] sm:$0xff] %v6350_v24  ;;  %v7472_v30 = vld [vmem:[#allocation21_spill] sm:$0xff] }
 0x2cc   :  { %2432 = vmatpush.msrb.mxu2 %v4383_v55  ;;  %7470 = vst [vmem:[#allocation16_spill] sm:$0xff] %v6365_v58  ;;  %v7474_v55 = vld [vmem:[#allocation23_spill] sm:$0xff]  ;;  %v6409_v56 = vld [vmem:[%s7338_s3 + $0x108] sm:$0xff] }
 0x2cd   :  { %v2201_v26 = vmax.f32 %v2193_v18, 0.0  ;;  %4446 = vmatmul.msk.f32.gmra.mxu3 %vm147_vm2, %v6304_v22  ;;  %v1799_v18 = vadd.f32 %v6154_v29, %v1747_v19  ;;  %v1945_v16 = vadd.f32 %v1931_v25, %v1896_v31  ;;  %v1934_v3 = vpop.f32.mrf.mxu1  ;;  %v6420_v19 = vld [vmem:[%s7338_s3 + $0x100] sm:$0xff]  ;;  %v4664_v31 = vld [vmem:[#allocation2 + $0xb0] sm:$0xff] }
 0x2ce   :  { %2433 = vmatpush.msrb.mxu2 %v4382_v48  ;;  %v6412_v48 = vld [vmem:[#allocation2 + $0x100] sm:$0xff]  ;;  %7477 = vst [vmem:[#allocation20_spill] sm:$0xff] %v6420_v19 }
 0x2cf   :  { %4361 = vmatmul.msk.f32.vlgmr.msrb.gmra.mxu0 %vm147_vm2, %v2201_v26  ;;  %v2093_v26 = vpop.f32.mrf.mxu0  ;;  %v1848_v6 = vadd.f32 %v6148_v43, %v1799_v18  ;;  %7475 = vst [vmem:[#allocation18_spill] sm:$0xff] %v6412_v48  ;;  %v4667_v18 = vld [vmem:[#allocation2 + $0xb8] sm:$0xff] }
 0x2d0   :  { %v2168_v15 = vpop.f32.mrf.mxu3  ;;  %2451 = vmatpush.msrb.mxu0 %v7464_v11  ;;  %v2012_v2 = vpop.f32.mrf.mxu2 }
 0x2d1   :  { %v2186_v28 = vadd.f32 %v2168_v15, %v2105_v49  ;;  %v2026_v57 = vadd.f32 %v2012_v2, %v1945_v16  ;;  %v1897_v29 = vadd.f32 %v6197_v14, %v1848_v6  ;;  %v6402_v2 = vld [vmem:[%s7339_s4] ss:$0 sm:$0xff]  ;;  %v6437_v16 = vld [vmem:[#allocation2 + $0x110] sm:$0xff] }
 0x2d2   :  { %2452 = vmatpush.msrb.mxu0 %v7465_v50  ;;  %v6377_v50 = vld [vmem:[#allocation2 + $0x180] sm:$0xff] }
 0x2d3   :  { %v2194_v51 = vadd.f32 %v5693_v52, %v2186_v28  ;;  %v2107_v49 = vadd.f32 %v2093_v26, %v2026_v57  ;;  %v1946_v43 = vadd.f32 %v1934_v3, %v1897_v29  ;;  %7471 = vst [vmem:[#allocation17_spill] sm:$0xff] %v6377_v50  ;;  %v6458_v26 = vld [vmem:[#allocation2 + $0x128] sm:$0xff]  ;;  %v4675_v57 = vld [vmem:[#allocation2 + $0xd8] sm:$0xff]  ;;  %v4677_v6 = vld [vmem:[#allocation2 + $0xe0] sm:$0xff] }
 0x2d4   :  { %2453 = vmatpush.msrb.mxu0 %v7467_v17  ;;  %7482 = vst [vmem:[#allocation29_spill] sm:$0xff] %v6458_v26 }
 0x2d5   :  { %v2202_v10 = vmax.f32 %v2194_v51, 0.0  ;;  %4447 = vmatmul.msk.f32.gmra.mxu3 %vm147_vm2, %v6329_v42  ;;  %v7473_v51 = vld [vmem:[#allocation22_spill] sm:$0xff] }
 0x2d6   :  { %2454 = vmatpush.msrb.mxu0 %v7468_v46  ;;  %v7476_v46 = vld [vmem:[#allocation24_spill] sm:$0xff]  ;;  %7479 = vst [vmem:[#allocation22_spill] sm:$0xff] %v6437_v16 }
 0x2d7   :  { %4366 = vmatmul.msk.f32.vlgmr.msra.gmra.mxu1 %vm147_vm2, %v2202_v10  ;;  %v2096_v4 = vpop.f32.mrf.mxu0 }
 0x2d8   :  { %v2171_v39 = vpop.f32.mrf.mxu3  ;;  %2492 = vmatpush.msra.mxu1 %v5864_v41  ;;  %v2015_v41 = vpop.f32.mrf.mxu2 }
 0x2d9   :  { %v2187_v7 = vadd.f32 %v2171_v39, %v2106_v0  ;;  %v2027_v11 = vadd.f32 %v2015_v41, %v1946_v43  ;;  %v4665_v0 = vld [vmem:[#allocation2 + $0xa0] sm:$0xff]  ;;  %v6429_v39 = vld [vmem:[#allocation2 + $0x108] sm:$0xff]  ;;  %v6477_v41 = vld [vmem:[#allocation2 + $0xf8] sm:$0xff] }
 0x2da   :  { %2493 = vmatpush.msra.mxu1 %v5870_v63  ;;  %v1750_v63 = vadd.f32 %v6150_v34, %v6099_v27  ;;  %7478 = vst [vmem:[#allocation21_spill] sm:$0xff] %v6429_v39  ;;  %v7488_v43 = vld [vmem:[#allocation28_spill] sm:$0xff] }
 0x2db   :  { %v2195_v62 = vadd.f32 %v5693_v52, %v2187_v7  ;;  %v4673_v7 = vld [vmem:[#allocation2 + $0xd0] sm:$0xff] }
 0x2dc   :  { %2494 = vmatpush.msra.mxu1 %v5877_v44  ;;  %v1800_v44 = vadd.f32 %v6177_v38, %v1750_v63  ;;  %v7485_v63 = vld [vmem:[#allocation25_spill] sm:$0xff] }
 0x2dd   :  { %v2203_v61 = vmax.f32 %v2195_v62, 0.0  ;;  %4448 = vmatmul.msk.f32.gmra.mxu3 %vm147_vm2, %v6350_v24  ;;  %v6465_v62 = vld [vmem:[#allocation2 + $0x130] sm:$0xff] }
 0x2de   :  { %2495 = vmatpush.msra.mxu1 %v5883_v12  ;;  %v1849_v14 = vadd.f32 %v6167_v23, %v1800_v44  ;;  %7483 = vst [vmem:[#allocation30_spill] sm:$0xff] %v6465_v62  ;;  %v7487_v44 = vld [vmem:[#allocation27_spill] sm:$0xff] }
 0x2df   :  { %4371 = vmatmul.msk.f32.vlgmr.msra.gmra.mxu2 %vm147_vm2, %v2203_v61  ;;  %v7484_v61 = vld [vmem:[#allocation14_spill] sm:$0xff] }
 0x2e0   :  { %v2174_v33 = vpop.f32.mrf.mxu3  ;;  %2533 = vmatpush.msra.mxu2 %v5802_v20  ;;  %v1937_v20 = vpop.f32.mrf.mxu1  ;;  %v1898_v38 = vadd.f32 %v6208_v36, %v1849_v14  ;;  %v6508_v14 = vld [vmem:[#allocation2 + $0x1a0] sm:$0xff] }
 0x2e1   :  { %v2188_v15 = vadd.f32 %v2174_v33, %v2107_v49  ;;  %v2018_v27 = vpop.f32.mrf.mxu2  ;;  %v2099_v36 = vpop.f32.mrf.mxu0  ;;  %v7486_v49 = vld [vmem:[#allocation26_spill] sm:$0xff]  ;;  %v3486_v33 = vld [vmem:[#allocation2 + $0x190] sm:$0xff] }
 0x2e2   :  { %2534 = vmatpush.msra.mxu2 %v5812_v37  ;;  %v2108_v37 = vadd.f32 %v2096_v4, %v2027_v11  ;;  %v1947_v28 = vadd.f32 %v1937_v20, %v1898_v38  ;;  %v6500_v4 = vld [vmem:[#allocation2 + $0x140] sm:$0xff]  ;;  %v6520_v20 = vld [vmem:[#allocation2 + $0x1a8] sm:$0xff] }
 0x2e3   :  { %v2196_v12 = vadd.f32 %v5693_v52, %v2188_v15  ;;  %v4679_v15 = vld [vmem:[#allocation2 + $0xe8] sm:$0xff] }
 0x2e4   :  { %2535 = vmatpush.msra.mxu2 %v5823_v21  ;;  %v2028_v23 = vadd.f32 %v2018_v27, %v1947_v28  ;;  %v6546_v28 = vld [vmem:[#allocation2 + $0x1b8] sm:$0xff] }
 0x2e5   :  { %v2204_v34 = vmax.f32 %v2196_v12, 0.0  ;;  %4449 = vmatmul.msk.f32.gmra.mxu3 %vm147_vm2, %v6365_v58  ;;  %v6496_v12 = vld [vmem:[#allocation2 + $0x198] sm:$0xff] }
 0x2e6   :  { %2536 = vmatpush.msra.mxu2 %v5834_v8 }
 0x2e7   :  { %4376 = vmatmul.msk.f32.vlgmr.msra.gmra.mxu0 %vm147_vm2, %v2204_v34 }
 0x2e8   :  { %v2177_v54 = vpop.f32.mrf.mxu3  ;;  %2631 = vmatpush.msra.mxu0 %v5734_v45  ;;  %v4657_v45 = vld [vmem:[#allocation2 + $0xa8] sm:$0xff] }
 0x2e9   :  { %v2189_v21 = vadd.f32 %v2177_v54, %v2108_v37  ;;  %v6532_v37 = vld [vmem:[#allocation2 + $0x1b0] sm:$0xff] }
 0x2ea   :  { %2632 = vmatpush.msra.mxu0 %v5740_v1  ;;  %v2109_v1 = vadd.f32 %v2099_v36, %v2028_v23 }
 0x2eb   :  { %v2197_v25 = vadd.f32 %v5693_v52, %v2189_v21  ;;  %v6389_v52 = vld [vmem:[%s7338_s3 + $0x118] sm:$0xff] }
 0x2ec   :  { %2633 = vmatpush.msra.mxu0 %v5748_v35 }
 0x2ed   :  { %v2205_v8 = vmax.f32 %v2197_v25, 0.0  ;;  %4450 = vmatmul.msk.f32.gmra.mxu3 %vm147_vm2, %v6377_v50  ;;  %v6560_v25 = vld [vmem:[#allocation2 + $0x1c0] sm:$0xff] }
 0x2ee   :  { %2634 = vmatpush.msra.mxu0 %v5759_v5  ;;  %v6396_v5 = vld [vmem:[%s7338_s3 + $0x110] sm:$0xff] }
 0x2ef   :  { %4381 = vmatmul.msk.f32.vlgmr.msrb.gmra.mxu1 %vm147_vm2, %v2205_v8  ;;  %4387 = vmatmul.msk.f32.vlgmr.msrb.gmra.mxu0 %vm147_vm2, %v4657_v45 }
 0x2f0   :  { %v2180_v47 = vpop.f32.mrf.mxu3  ;;  %2680 = vmatpush.msrb.mxu1 %v7472_v30  ;;  %2923 = vmatpush.msrb.mxu0 %v6389_v52  ;;  %v7493_v30 = vld [vmem:[#allocation8_spill] sm:$0xff] }
 0x2f1   :  { %v2190_v35 = vadd.f32 %v2180_v47, %v2109_v1  ;;  %v6576_v1 = vld [vmem:[#allocation2 + $0x1c8] sm:$0xff] }
 0x2f2   :  { %2681 = vmatpush.msrb.mxu1 %v7473_v51  ;;  %2924 = vmatpush.msrb.mxu0 %v6396_v5  ;;  %v7495_v51 = vld [vmem:[#allocation9_spill] sm:$0xff] }
 0x2f3   :  { %v2198_v17 = vadd.f32 %v6402_v2, %v2190_v35 }
 0x2f4   :  { %2682 = vmatpush.msrb.mxu1 %v7474_v55  ;;  %2925 = vmatpush.msrb.mxu0 %v6409_v56 }
 0x2f5   :  { %v2206_v10 = vmax.f32 %v2198_v17, 0.0  ;;  %4515 = vmatmul.msk.f32.vlgmr.msrb.gmra.mxu3 %vm147_vm2, %v6412_v48 }
 0x2f6   :  { %2683 = vmatpush.msrb.mxu1 %v7476_v46  ;;  %2926 = vmatpush.msrb.mxu0 %v6420_v19  ;;  %v4681_v46 = vld [vmem:[%s7338_s3 + $0xe0] sm:$0xff] }
 0x2f7   :  { %4386 = vmatmul.msk.f32.vlgmr.msrb.gmra.mxu2 %vm147_vm2, %v2206_v10  ;;  %4388 = vmatmul.msk.f32.gmra.mxu0 %vm147_vm2, %v4664_v31  ;;  %v4680_v10 = vld [vmem:[%s7338_s3 + $0xe8] sm:$0xff] }
 0x2f8   :  { %4395 = vmatmul.msk.f32.vlgmr.msra.gmra.mxu1 %vm147_vm2, %v4665_v0  ;;  %2761 = vmatpush.msrb.mxu2 %v5920_v32  ;;  %v4669_v32 = vld [vmem:[#allocation2 + $0xc0] sm:$0xff]  ;;  %v6469_v3 = vpop.f32.mrf.mxu3 }
 0x2fa   :  { %2762 = vmatpush.msrb.mxu2 %v6238_v59  ;;  %v6444_v59 = vld [vmem:[#allocation2 + $0x118] sm:$0xff] }
 0x2fb   :  { %7480 = vst [vmem:[#allocation23_spill] sm:$0xff] %v6444_v59 }
 0x2fc   :  { %2763 = vmatpush.msrb.mxu2 %v6248_v13  ;;  %v4671_v13 = vld [vmem:[#allocation2 + $0xc8] sm:$0xff] }
 0x2fd   :  { %4516 = vmatmul.msk.f32.gmra.mxu3 %vm147_vm2, %v6429_v39 }
 0x2fe   :  { %2764 = vmatpush.msrb.mxu2 %v6260_v60  ;;  %v6451_v60 = vld [vmem:[#allocation2 + $0x120] sm:$0xff] }
 0x2ff   :  { %4389 = vmatmul.msk.f32.gmra.mxu0 %vm147_vm2, %v4667_v18  ;;  %4403 = vmatmul.msk.f32.vlgmr.msra.gmra.mxu2 %vm147_vm2, %v4664_v31  ;;  %7481 = vst [vmem:[#allocation24_spill] sm:$0xff] %v6451_v60 }
 0x300   :  { %4396 = vmatmul.msk.f32.gmra.mxu1 %vm147_vm2, %v4657_v45  ;;  %v6483_v29 = vpop.f32.mrf.mxu3 }
 0x305   :  { %4517 = vmatmul.msk.f32.gmra.mxu3 %vm147_vm2, %v6437_v16 }
 0x307   :  { %4390 = vmatmul.msk.f32.gmra.mxu0 %vm147_vm2, %v4669_v32  ;;  %4404 = vmatmul.msk.f32.gmra.mxu2 %vm147_vm2, %v4667_v18 }
 0x308   :  { %4397 = vmatmul.msk.f32.gmra.mxu1 %vm147_vm2, %v4664_v31  ;;  %v6494_v11 = vpop.f32.mrf.mxu3 }
 0x30d   :  { %4518 = vmatmul.msk.f32.gmra.mxu3 %vm147_vm2, %v6444_v59 }
 0x30f   :  { %4391 = vmatmul.msk.f32.gmra.mxu0 %vm147_vm2, %v4671_v13  ;;  %4405 = vmatmul.msk.f32.gmra.mxu2 %vm147_vm2, %v4669_v32 }
 0x310   :  { %4398 = vmatmul.msk.f32.gmra.mxu1 %vm147_vm2, %v4667_v18  ;;  %v6510_v34 = vpop.f32.mrf.mxu3 }
 0x315   :  { %4519 = vmatmul.msk.f32.gmra.mxu3 %vm147_vm2, %v6451_v60 }
 0x317   :  { %4392 = vmatmul.msk.f32.gmra.mxu0 %vm147_vm2, %v4673_v7  ;;  %4406 = vmatmul.msk.f32.gmra.mxu2 %vm147_vm2, %v4671_v13 }
 0x318   :  { %4399 = vmatmul.msk.f32.gmra.mxu1 %vm147_vm2, %v4669_v32  ;;  %v6524_v38 = vpop.f32.mrf.mxu3 }
 0x31d   :  { %4520 = vmatmul.msk.f32.gmra.mxu3 %vm147_vm2, %v6458_v26 }
 0x31f   :  { %4393 = vmatmul.msk.f32.gmra.mxu0 %vm147_vm2, %v4675_v57  ;;  %4407 = vmatmul.msk.f32.gmra.mxu2 %vm147_vm2, %v4673_v7 }
 0x320   :  { %4400 = vmatmul.msk.f32.gmra.mxu1 %vm147_vm2, %v4671_v13  ;;  %v6542_v27 = vpop.f32.mrf.mxu3 }
 0x325   :  { %4521 = vmatmul.msk.f32.gmra.mxu3 %vm147_vm2, %v6465_v62 }
 0x327   :  { %4394 = vmatmul.msk.f32.gmra.mxu0 %vm147_vm2, %v4677_v6  ;;  %4408 = vmatmul.msk.f32.gmra.mxu2 %vm147_vm2, %v4675_v57 }
 0x328   :  { %4401 = vmatmul.msk.f32.gmra.mxu1 %vm147_vm2, %v4673_v7  ;;  %v6556_v21 = vpop.f32.mrf.mxu3 }
 0x32d   :  { %4522 = vmatmul.msk.f32.gmra.mxu3 %vm147_vm2, %v7484_v61 }
 0x32f   :  { %4409 = vmatmul.msk.f32.gmra.mxu2 %vm147_vm2, %v4677_v6  ;;  %4419 = vmatmul.msk.f32.vlgmr.msra.gmra.mxu0 %vm147_vm2, %v6477_v41 }
 0x330   :  { %4402 = vmatmul.msk.f32.gmra.mxu1 %vm147_vm2, %v4675_v57  ;;  %3351 = vmatpush.msra.mxu0 %v7485_v63  ;;  %v6578_v47 = vpop.f32.mrf.mxu3 }
 0x332   :  { %3352 = vmatpush.msra.mxu0 %v7486_v49 }
 0x334   :  { %3353 = vmatpush.msra.mxu0 %v7487_v44 }
 0x335   :  { %4547 = vmatmul.msk.f32.vlgmr.msra.gmra.mxu3 %vm147_vm2, %v3486_v33 }
 0x336   :  { %3354 = vmatpush.msra.mxu0 %v7488_v43 }
 0x337   :  { %4410 = vmatmul.msk.f32.gmra.mxu2 %vm147_vm2, %v4679_v15  ;;  %4420 = vmatmul.msk.f32.gmra.mxu0 %vm147_vm2, %v6412_v48 }
 0x338   :  { %4427 = vmatmul.msk.f32.vlgmr.msrb.gmra.mxu1 %vm147_vm2, %v6412_v48 }
 0x33c   :  { %v6570_v8 = vpop.f32.mrf.mxu1 }
 0x33d   :  { %4548 = vmatmul.msk.f32.gmra.mxu3 %vm147_vm2, %v6496_v12  ;;  %7491 = vst [vmem:[#allocation26_spill] sm:$0xff] %v6570_v8 }
 0x33f   :  { %4421 = vmatmul.msk.f32.gmra.mxu0 %vm147_vm2, %v6429_v39  ;;  %4435 = vmatmul.msk.f32.vlgmr.msrb.gmra.mxu2 %vm147_vm2, %v6500_v4 }
 0x340   :  { %4428 = vmatmul.msk.f32.gmra.mxu1 %vm147_vm2, %v6429_v39 }
 0x345   :  { %4549 = vmatmul.msk.f32.gmra.mxu3 %vm147_vm2, %v6508_v14 }
 0x347   :  { %4422 = vmatmul.msk.f32.gmra.mxu0 %vm147_vm2, %v6437_v16  ;;  %4436 = vmatmul.msk.f32.gmra.mxu2 %vm147_vm2, %v6217_v40 }
 0x348   :  { %4429 = vmatmul.msk.f32.gmra.mxu1 %vm147_vm2, %v6437_v16 }
 0x34a   :  { %v6572_v36 = vpop.f32.mrf.mxu2 }
 0x34b   :  { %7492 = vst [vmem:[#allocation27_spill] sm:$0xff] %v6572_v36  ;;  %v4460_v36 = vld [vmem:[%s7340_s5 + $0x208] sm:$0xff] }
 0x34c   :  { %v6544_v54 = vpop.f32.mrf.mxu0 }
 0x34d   :  { %4550 = vmatmul.msk.f32.gmra.mxu3 %vm147_vm2, %v6520_v20  ;;  %7489 = vst [vmem:[#allocation14_spill] sm:$0xff] %v6544_v54 }
 0x34f   :  { %4423 = vmatmul.msk.f32.gmra.mxu0 %vm147_vm2, %v6444_v59  ;;  %4437 = vmatmul.msk.f32.gmra.mxu2 %vm147_vm2, %v6252_v53 }
 0x350   :  { %4430 = vmatmul.msk.f32.gmra.mxu1 %vm147_vm2, %v6444_v59  ;;  %v2847_v59 = vpop.f32.mrf.mxu3 }
 0x354   :  { %v6589_v35 = vpop.f32.mrf.mxu1 }
 0x355   :  { %4551 = vmatmul.msk.f32.gmra.mxu3 %vm147_vm2, %v6532_v37  ;;  %7494 = vst [vmem:[#allocation28_spill] sm:$0xff] %v6589_v35 }
 0x357   :  { %4424 = vmatmul.msk.f32.gmra.mxu0 %vm147_vm2, %v6451_v60  ;;  %4438 = vmatmul.msk.f32.gmra.mxu2 %vm147_vm2, %v6281_v9 }
 0x358   :  { %4431 = vmatmul.msk.f32.gmra.mxu1 %vm147_vm2, %v6451_v60 }
 0x35d   :  { %4552 = vmatmul.msk.f32.gmra.mxu3 %vm147_vm2, %v6546_v28 }
 0x35f   :  { %4425 = vmatmul.msk.f32.gmra.mxu0 %vm147_vm2, %v6458_v26  ;;  %4439 = vmatmul.msk.f32.gmra.mxu2 %vm147_vm2, %v6304_v22 }
 0x360   :  { %4432 = vmatmul.msk.f32.gmra.mxu1 %vm147_vm2, %v6458_v26  ;;  %v4467_v26 = vld [vmem:[%s7340_s5 + $0x238] sm:$0xff] }
 0x361   :  { %3025 = vmatpush.msra.mxu2 %v4467_v26 }
 0x362   :  { %v6592_v17 = vpop.f32.mrf.mxu2 }
 0x363   :  { %7496 = vst [vmem:[#allocation8_spill] sm:$0xff] %v6592_v17  ;;  %v4461_v17 = vld [vmem:[%s7340_s5 + $0x210] sm:$0xff] }
 0x364   :  { %v6558_v23 = vpop.f32.mrf.mxu0 }
 0x365   :  { %7490 = vst [vmem:[#allocation25_spill] sm:$0xff] %v6558_v23  ;;  %4553 = vmatmul.msk.f32.gmra.mxu3 %vm147_vm2, %v6560_v25 }
 0x367   :  { %4426 = vmatmul.msk.f32.gmra.mxu0 %vm147_vm2, %v6465_v62  ;;  %4440 = vmatmul.msk.f32.gmra.mxu2 %vm147_vm2, %v6329_v42 }
 0x368   :  { %4433 = vmatmul.msk.f32.gmra.mxu1 %vm147_vm2, %v6465_v62 }
 0x36c   :  { %v6574_v45 = vpop.f32.mrf.mxu0  ;;  %v6606_v31 = vpop.f32.mrf.mxu1 }
 0x36d   :  { %4554 = vmatmul.msk.f32.gmra.mxu3 %vm147_vm2, %v6576_v1  ;;  %7497 = vst [vmem:[#allocation9_spill] sm:$0xff] %v6606_v31 }
 0x36f   :  { %4441 = vmatmul.msk.f32.gmra.mxu2 %vm147_vm2, %v6350_v24  ;;  %4451 = vmatmul.msk.f32.vlgmr.msrb.gmra.mxu0 %vm147_vm2, %v6252_v53 }
 0x370   :  { %4434 = vmatmul.msk.f32.gmra.mxu1 %vm147_vm2, %v7484_v61  ;;  %3611 = vmatpush.msrb.mxu0 %v7493_v30 }
 0x372   :  { %3612 = vmatpush.msrb.mxu0 %v7495_v51  ;;  %v6644_v51 = vld [vmem:[#allocation2 + $0x188] sm:$0xff] }
 0x373   :  { %7499 = vst [vmem:[#allocation32_spill] sm:$0xff] %v6644_v51 }
 0x374   :  { %v6594_v55 = vpop.f32.mrf.mxu0  ;;  %3613 = vmatpush.msrb.mxu0 %v4680_v10  ;;  %v4462_v10 = vld [vmem:[%s7340_s5 + $0x218] sm:$0xff] }
 0x375   :  { %v2497_v32 = vpop.f32.mrf.mxu1  ;;  %2996 = vmatpush.msra.mxu1 %v4462_v10 }
 0x376   :  { %3614 = vmatpush.msrb.mxu0 %v4681_v46  ;;  %v2498_v26 = vadd.f32 %v2497_v32, %v6574_v45 }
 0x377   :  { %4442 = vmatmul.msk.f32.gmra.mxu2 %vm147_vm2, %v6365_v58  ;;  %4452 = vmatmul.msk.f32.gmra.mxu0 %vm147_vm2, %v6281_v9 }
 0x378   :  { %2997 = vmatpush.msra.mxu1 %v4461_v17 }
 0x37a   :  { %v6608_v0 = vpop.f32.mrf.mxu2  ;;  %2998 = vmatpush.msra.mxu1 %v4460_v36  ;;  %v4466_v36 = vld [vmem:[%s7340_s5 + $0x230] sm:$0xff] }
 0x37b   :  { %7498 = vst [vmem:[#allocation31_spill] sm:$0xff] %v6608_v0  ;;  %3026 = vmatpush.msra.mxu2 %v4466_v36 }
 0x37c   :  { %v6610_v18 = vpop.f32.mrf.mxu0 }
 0x37d   :  { %v6620_v6 = vpop.f32.mrf.mxu1 }
 0x37f   :  { %4453 = vmatmul.msk.f32.gmra.mxu0 %vm147_vm2, %v6304_v22 }
 0x382   :  { %v2538_v7 = vpop.f32.mrf.mxu2 }
 0x383   :  { %v2562_v36 = vadd.f32 %v2538_v7, %v2498_v26  ;;  %v2501_v7 = vadd.f32 %v6620_v6, %v6594_v55 }
 0x384   :  { %v6614_v13 = vpop.f32.mrf.mxu0 }
 0x385   :  { %v6630_v49 = vpop.f32.mrf.mxu1  ;;  %v2611_v32 = vadd.f32 %v6469_v3, %v2562_v36  ;;  %v2850_v3 = vpop.f32.mrf.mxu3  ;;  %v4476_v36 = vld [vmem:[%s7340_s5 + $0x270] sm:$0xff] }
 0x387   :  { %4454 = vmatmul.msk.f32.gmra.mxu0 %vm147_vm2, %v6329_v42 }
 0x38a   :  { %v6624_v61 = vpop.f32.mrf.mxu2 }
 0x38c   :  { %v6618_v57 = vpop.f32.mrf.mxu0 }
 0x38d   :  { %v6638_v43 = vpop.f32.mrf.mxu1 }
 0x38f   :  { %4455 = vmatmul.msk.f32.gmra.mxu0 %vm147_vm2, %v6350_v24 }
 0x392   :  { %v6632_v33 = vpop.f32.mrf.mxu2 }
 0x394   :  { %v6626_v63 = vpop.f32.mrf.mxu0 }
 0x395   :  { %v6651_v46 = vpop.f32.mrf.mxu1 }
 0x397   :  { %4456 = vmatmul.msk.f32.gmra.mxu0 %vm147_vm2, %v6365_v58 }
 0x39a   :  { %v6640_v15 = vpop.f32.mrf.mxu2 }
 0x39c   :  { %v6634_v44 = vpop.f32.mrf.mxu0 }
 0x39d   :  { %v6659_v23 = vpop.f32.mrf.mxu1 }
 0x39f   :  { %4457 = vmatmul.msk.f32.gmra.mxu0 %vm147_vm2, %v6377_v50 }
 0x3a2   :  { %v6653_v50 = vpop.f32.mrf.mxu2 }
 0x3a4   :  { %v6642_v30 = vpop.f32.mrf.mxu0 }
 0x3a7   :  { %4458 = vmatmul.msk.f32.gmra.mxu0 %vm147_vm2, %v6644_v51 }
 0x3aa   :  { %v6663_v51 = vpop.f32.mrf.mxu2 }
 0x3ac   :  { %v2636_v0 = vpop.f32.mrf.mxu0 }
 0x3ad   :  { %v2660_v26 = vadd.f32 %v2636_v0, %v2611_v32  ;;  %v4475_v0 = vld [vmem:[%s7340_s5 + $0x268] sm:$0xff] }
 0x3af   :  { %4523 = vmatmul.msk.f32.vlgmr.msra.gmra.mxu0 %vm147_vm2, %v6500_v4  ;;  %v6672_v4 = vpop.f32.mrf.mxu1 }
 0x3b2   :  { %v6674_v10 = vpop.f32.mrf.mxu2 }
 0x3b4   :  { %v6657_v31 = vpop.f32.mrf.mxu0 }
 0x3b7   :  { %4524 = vmatmul.msk.f32.gmra.mxu0 %vm147_vm2, %v6217_v40  ;;  %v6680_v40 = vpop.f32.mrf.mxu1 }
 0x3ba   :  { %v6685_v8 = vpop.f32.mrf.mxu2 }
 0x3bc   :  { %v6668_v35 = vpop.f32.mrf.mxu0 }
 0x3bf   :  { %4525 = vmatmul.msk.f32.gmra.mxu0 %vm147_vm2, %v6252_v53  ;;  %v4459_v53 = vld [vmem:[%s7340_s5 + $0x200] sm:$0xff] }
 0x3c0   :  { %2999 = vmatpush.msra.mxu1 %v4459_v53  ;;  %v4465_v53 = vld [vmem:[%s7340_s5 + $0x228] sm:$0xff] }
 0x3c1   :  { %3027 = vmatpush.msra.mxu2 %v4465_v53  ;;  %v4471_v53 = vld [vmem:[%s7340_s5 + $0x250] sm:$0xff] }
 0x3c2   :  { %v2766_v60 = vpop.f32.mrf.mxu2 }
 0x3c4   :  { %v6676_v54 = vpop.f32.mrf.mxu0 }
 0x3c7   :  { %4526 = vmatmul.msk.f32.gmra.mxu0 %vm147_vm2, %v6281_v9  ;;  %v2685_v9 = vpop.f32.mrf.mxu1 }
 0x3c8   :  { %v2709_v19 = vadd.f32 %v2685_v9, %v2660_v26 }
 0x3ca   :  { %v2769_v45 = vpop.f32.mrf.mxu2 }
 0x3cc   :  { %v6687_v17 = vpop.f32.mrf.mxu0 }
 0x3cf   :  { %4527 = vmatmul.msk.f32.gmra.mxu0 %vm147_vm2, %v6304_v22  ;;  %v4464_v22 = vld [vmem:[%s7340_s5 + $0x220] sm:$0xff]  ;;  %v2688_v39 = vpop.f32.mrf.mxu1 }
 0x3d0   :  { %3028 = vmatpush.msra.mxu2 %v4464_v22  ;;  %v4470_v22 = vld [vmem:[%s7340_s5 + $0x248] sm:$0xff] }
 0x3d2   :  { %v2772_v9 = vpop.f32.mrf.mxu2 }
 0x3d4   :  { %v6694_v62 = vpop.f32.mrf.mxu0 }
 0x3d7   :  { %4528 = vmatmul.msk.f32.gmra.mxu0 %vm147_vm2, %v6329_v42  ;;  %v4472_v42 = vld [vmem:[%s7340_s5 + $0x258] sm:$0xff]  ;;  %v2691_v55 = vpop.f32.mrf.mxu1 }
 0x3d8   :  { %3054 = vmatpush.msrb.mxu1 %v4472_v42  ;;  %v4469_v42 = vld [vmem:[%s7340_s5 + $0x240] sm:$0xff] }
 0x3da   :  { %3055 = vmatpush.msrb.mxu1 %v4471_v53  ;;  %v4477_v53 = vld [vmem:[%s7340_s5 + $0x278] sm:$0xff] }
 0x3db   :  { %3083 = vmatpush.msrb.mxu2 %v4477_v53 }
 0x3dc   :  { %v6711_v16 = vpop.f32.mrf.mxu0  ;;  %3056 = vmatpush.msrb.mxu1 %v4470_v22  ;;  %v2790_v22 = vadd.f32 %v2766_v60, %v2709_v19  ;;  %v2504_v19 = vadd.f32 %v6630_v49, %v6610_v18  ;;  %v2507_v18 = vadd.f32 %v6638_v43, %v6614_v13  ;;  %v4480_v13 = vld [vmem:[%s7340_s5 + $0x288] sm:$0xff]  ;;  %v4479_v43 = vld [vmem:[%s7340_s5 + $0x280] sm:$0xff] }
 0x3dd   :  { %3084 = vmatpush.msrb.mxu2 %v4476_v36 }
 0x3de   :  { %3057 = vmatpush.msrb.mxu1 %v4469_v42  ;;  %v2871_v32 = vadd.f32 %v2847_v59, %v2790_v22  ;;  %v4482_v59 = vld [vmem:[%s7340_s5 + $0x298] sm:$0xff] }
 0x3df   :  { %4529 = vmatmul.msk.f32.gmra.mxu0 %vm147_vm2, %v6350_v24  ;;  %v2563_v24 = vadd.f32 %v6624_v61, %v2501_v7  ;;  %3085 = vmatpush.msrb.mxu2 %v4475_v0  ;;  %v4474_v61 = vld [vmem:[%s7340_s5 + $0x260] sm:$0xff]  ;;  %v2564_v7 = vadd.f32 %v6632_v33, %v2504_v19  ;;  %v2775_v33 = vpop.f32.mrf.mxu2 }
 0x3e1   :  { %v2612_v6 = vadd.f32 %v6483_v29, %v2563_v24  ;;  %3086 = vmatpush.msrb.mxu2 %v4474_v61  ;;  %v2853_v29 = vpop.f32.mrf.mxu3  ;;  %v2613_v0 = vadd.f32 %v6494_v11, %v2564_v7 }
 0x3e3   :  { %v2661_v60 = vadd.f32 %v6657_v31, %v2612_v6  ;;  %v2694_v31 = vpop.f32.mrf.mxu1 }
 0x3e4   :  { %v6730_v48 = vpop.f32.mrf.mxu0 }
 0x3e5   :  { %v2710_v26 = vadd.f32 %v2688_v39, %v2661_v60  ;;  %v2662_v39 = vadd.f32 %v6668_v35, %v2613_v0  ;;  %v4492_v0 = vld [vmem:[%s7340_s5 + $0x2d8] sm:$0xff] }
 0x3e7   :  { %4530 = vmatmul.msk.f32.gmra.mxu0 %vm147_vm2, %v6365_v58  ;;  %v2791_v36 = vadd.f32 %v2769_v45, %v2710_v26  ;;  %v2565_v45 = vadd.f32 %v6640_v15, %v2507_v18  ;;  %v2711_v22 = vadd.f32 %v2691_v55, %v2662_v39  ;;  %v4487_v55 = vld [vmem:[%s7340_s5 + $0x2b8] sm:$0xff]  ;;  %v4491_v39 = vld [vmem:[%s7340_s5 + $0x2d0] sm:$0xff] }
 0x3e9   :  { %v2872_v49 = vadd.f32 %v2850_v3, %v2791_v36  ;;  %v2792_v35 = vadd.f32 %v2772_v9, %v2711_v22  ;;  %v2614_v15 = vadd.f32 %v6510_v34, %v2565_v45  ;;  %v2856_v61 = vpop.f32.mrf.mxu3  ;;  %v2510_v9 = vadd.f32 %v6651_v46, %v6618_v57  ;;  %v4485_v57 = vld [vmem:[%s7340_s5 + $0x2a8] sm:$0xff]  ;;  %v2778_v46 = vpop.f32.mrf.mxu2  ;;  %v4489_v22 = vld [vmem:[%s7340_s5 + $0x2c0] sm:$0xff] }
 0x3eb   :  { %v2663_v19 = vadd.f32 %v6676_v54, %v2614_v15  ;;  %v2873_v60 = vadd.f32 %v2853_v29, %v2792_v35  ;;  %v2697_v34 = vpop.f32.mrf.mxu1  ;;  %v2566_v7 = vadd.f32 %v6653_v50, %v2510_v9  ;;  %v4497_v35 = vld [vmem:[%s7340_s5 + $0x2f8] sm:$0xff] }
 0x3ec   :  { %v2928_v42 = vpop.f32.mrf.mxu0 }
 0x3ed   :  { %v2952_v53 = vadd.f32 %v2928_v42, %v2871_v32  ;;  %v4486_v32 = vld [vmem:[%s7340_s5 + $0x2b0] sm:$0xff]  ;;  %v2712_v26 = vadd.f32 %v2694_v31, %v2663_v19  ;;  %v2615_v50 = vadd.f32 %v6524_v38, %v2566_v7  ;;  %v4495_v19 = vld [vmem:[%s7340_s5 + $0x2e8] sm:$0xff]  ;;  %v2519_v7 = vadd.f32 %v6680_v40, %v6642_v30 }
 0x3ef   :  { %v2960_v24 = vadd.f32 %v6402_v2, %v2952_v53  ;;  %4555 = vmatmul.msk.f32.vlgmr.msrb.gmra.mxu0 %vm147_vm2, %v6496_v12  ;;  %v4481_v12 = vld [vmem:[%s7340_s5 + $0x290] sm:$0xff]  ;;  %v2793_v54 = vadd.f32 %v2775_v33, %v2712_v26  ;;  %v2664_v31 = vadd.f32 %v6687_v17, %v2615_v50  ;;  %v4684_v50 = vld [vmem:[%s7338_s3 + $0x28] sm:$0xff] }
 0x3f1   :  { %v2968_v58 = vmax.f32 %v2960_v24, 0.0  ;;  %v4484_v24 = vld [vmem:[%s7340_s5 + $0x2a0] sm:$0xff]  ;;  %v2874_v18 = vadd.f32 %v2856_v61, %v2793_v54  ;;  %v2713_v33 = vadd.f32 %v2697_v34, %v2664_v31  ;;  %v2569_v54 = vadd.f32 %v6685_v8, %v2519_v7 }
 0x3f3   :  { %4463 = vmatmul.msk.f32.vlgmr.msra.gmra.mxu1 %vm147_vm2, %v2968_v58  ;;  %v2794_v17 = vadd.f32 %v2778_v46, %v2713_v33  ;;  %v4682_v46 = vld [vmem:[%s7338_s3 + $0x38] sm:$0xff]  ;;  %v2618_v8 = vadd.f32 %v6578_v47, %v2569_v54  ;;  %v4687_v33 = vld [vmem:[%s7338_s3 + $0x10] sm:$0xff]  ;;  %v4699_v54 = vld [vmem:[#allocation2 + $0x148] sm:$0xff] }
 0x3f4   :  { %v2931_v11 = vpop.f32.mrf.mxu0  ;;  %3112 = vmatpush.msra.mxu1 %v4482_v59  ;;  %v2513_v59 = vadd.f32 %v6659_v23, %v6626_v63  ;;  %v4490_v23 = vld [vmem:[%s7340_s5 + $0x2c8] sm:$0xff]  ;;  %v2700_v63 = vpop.f32.mrf.mxu1 }
 0x3f5   :  { %v2953_v6 = vadd.f32 %v2931_v11, %v2872_v49  ;;  %v2859_v49 = vpop.f32.mrf.mxu3  ;;  %v2667_v31 = vadd.f32 %v6730_v48, %v2618_v8 }
 0x3f6   :  { %3113 = vmatpush.msra.mxu1 %v4481_v12  ;;  %v2567_v12 = vadd.f32 %v6663_v51, %v2513_v59  ;;  %v2875_v15 = vadd.f32 %v2859_v49, %v2794_v17  ;;  %v4685_v59 = vld [vmem:[%s7338_s3 + $0x20] sm:$0xff] }
 0x3f7   :  { %v2961_v58 = vadd.f32 %v6402_v2, %v2953_v6  ;;  %4556 = vmatmul.msk.f32.gmra.mxu0 %vm147_vm2, %v6508_v14  ;;  %v2781_v6 = vpop.f32.mrf.mxu2 }
 0x3f8   :  { %3114 = vmatpush.msra.mxu1 %v4480_v13  ;;  %v2616_v51 = vadd.f32 %v6542_v27, %v2567_v12 }
 0x3f9   :  { %v2969_v3 = vmax.f32 %v2961_v58, 0.0  ;;  %v2516_v58 = vadd.f32 %v6672_v4, %v6634_v44 }
 0x3fa   :  { %3115 = vmatpush.msra.mxu1 %v4479_v43  ;;  %v2665_v43 = vadd.f32 %v6694_v62, %v2616_v51  ;;  %v4690_v51 = vld [vmem:[%s7338_s3 + $0x98] sm:$0xff] }
 0x3fb   :  { %4468 = vmatmul.msk.f32.vlgmr.msra.gmra.mxu2 %vm147_vm2, %v2969_v3  ;;  %v4496_v3 = vld [vmem:[%s7340_s5 + $0x2f0] sm:$0xff]  ;;  %v2568_v27 = vadd.f32 %v6674_v10, %v2516_v58 }
 0x3fc   :  { %v2934_v42 = vpop.f32.mrf.mxu0  ;;  %3141 = vmatpush.msra.mxu2 %v4487_v55  ;;  %v2714_v61 = vadd.f32 %v2700_v63, %v2665_v43  ;;  %v4691_v58 = vld [vmem:[%s7338_s3 + $0x90] sm:$0xff] }
 0x3fd   :  { %v2954_v53 = vadd.f32 %v2934_v42, %v2873_v60  ;;  %v2862_v44 = vpop.f32.mrf.mxu3  ;;  %v4494_v60 = vld [vmem:[%s7340_s5 + $0x2e0] sm:$0xff]  ;;  %v2617_v10 = vadd.f32 %v6556_v21, %v2568_v27  ;;  %v4695_v27 = vld [vmem:[%s7338_s3 + $0xb0] sm:$0xff] }
 0x3fe   :  { %3142 = vmatpush.msra.mxu2 %v4486_v32  ;;  %v2795_v62 = vadd.f32 %v2781_v6, %v2714_v61  ;;  %v2703_v32 = vpop.f32.mrf.mxu1  ;;  %v4696_v61 = vld [vmem:[%s7338_s3 + $0xa8] sm:$0xff] }
 0x3ff   :  { %v2962_v36 = vadd.f32 %v6402_v2, %v2954_v53  ;;  %4557 = vmatmul.msk.f32.gmra.mxu0 %vm147_vm2, %v6520_v20  ;;  %v2784_v42 = vpop.f32.mrf.mxu2  ;;  %v2666_v26 = vadd.f32 %v6711_v16, %v2617_v10 }
 0x400   :  { %3143 = vmatpush.msra.mxu2 %v4485_v57  ;;  %v2876_v53 = vadd.f32 %v2862_v44, %v2795_v62  ;;  %v4698_v44 = vld [vmem:[#allocation2 + $0xf0] sm:$0xff]  ;;  %v7504_v62 = vld [vmem:[#allocation23_spill] sm:$0xff] }
 0x401   :  { %v2970_v29 = vmax.f32 %v2962_v36, 0.0  ;;  %v2715_v21 = vadd.f32 %v2703_v32, %v2666_v26  ;;  %v7508_v32 = vld [vmem:[#allocation6_spill] sm:$0xff] }
 0x402   :  { %3144 = vmatpush.msra.mxu2 %v4484_v24  ;;  %v4683_v24 = vld [vmem:[%s7338_s3 + $0x30] sm:$0xff]  ;;  %v7511_v26 = vld [vmem:[#allocation10_spill] sm:$0xff] }
 0x403   :  { %4473 = vmatmul.msk.f32.vlgmr.msrb.gmra.mxu1 %vm147_vm2, %v2970_v29  ;;  %v2796_v30 = vadd.f32 %v2784_v42, %v2715_v21  ;;  %v7510_v42 = vld [vmem:[#allocation3_spill] sm:$0xff]  ;;  %v7513_v21 = vld [vmem:[#allocation13_spill] sm:$0xff] }
 0x404   :  { %v2937_v38 = vpop.f32.mrf.mxu0  ;;  %3170 = vmatpush.msrb.mxu1 %v4492_v0 }
 0x405   :  { %v2955_v11 = vadd.f32 %v2937_v38, %v2874_v18  ;;  %v2865_v40 = vpop.f32.mrf.mxu3  ;;  %v4686_v38 = vld [vmem:[%s7338_s3 + $0x18] sm:$0xff] }
 0x406   :  { %3171 = vmatpush.msrb.mxu1 %v4491_v39  ;;  %v2706_v0 = vpop.f32.mrf.mxu1  ;;  %v2877_v18 = vadd.f32 %v2865_v40, %v2796_v30 }
 0x407   :  { %v2963_v45 = vadd.f32 %v6402_v2, %v2955_v11  ;;  %4558 = vmatmul.msk.f32.gmra.mxu0 %vm147_vm2, %v6532_v37  ;;  %v2787_v39 = vpop.f32.mrf.mxu2  ;;  %v2716_v47 = vadd.f32 %v2706_v0, %v2667_v31  ;;  %v7517_v0 = vld [vmem:[#allocation27_spill] sm:$0xff]  ;;  %v7518_v31 = vld [vmem:[#allocation14_spill] sm:$0xff] }
 0x408   :  { %3172 = vmatpush.msrb.mxu1 %v4490_v23  ;;  %v4688_v23 = vld [vmem:[%s7338_s3 + $0x8] sm:$0xff] }
 0x409   :  { %v2971_v13 = vmax.f32 %v2963_v45, 0.0  ;;  %v2797_v11 = vadd.f32 %v2787_v39, %v2716_v47  ;;  %v4689_v45 = vld [vmem:[%s7338_s3] sm:$0xff]  ;;  %v7519_v39 = vld [vmem:[#allocation28_spill] sm:$0xff] }
 0x40a   :  { %3173 = vmatpush.msrb.mxu1 %v4489_v22  ;;  %v7520_v47 = vld [vmem:[#allocation8_spill] sm:$0xff] }
 0x40b   :  { %4478 = vmatmul.msk.f32.vlgmr.msrb.gmra.mxu2 %vm147_vm2, %v2971_v13 }
 0x40c   :  { %v2940_v55 = vpop.f32.mrf.mxu0  ;;  %3199 = vmatpush.msrb.mxu2 %v4497_v35  ;;  %v6882_v35 = vld [vmem:[#allocation2 + $0x1d0] sm:$0xff] }
 0x40d   :  { %v2956_v9 = vadd.f32 %v2940_v55, %v2875_v15  ;;  %v2868_v17 = vpop.f32.mrf.mxu3  ;;  %v4692_v15 = vld [vmem:[%s7338_s3 + $0x88] sm:$0xff]  ;;  %v4693_v55 = vld [vmem:[%s7338_s3 + $0x80] sm:$0xff] }
 0x40e   :  { %3200 = vmatpush.msrb.mxu2 %v4496_v3  ;;  %v2878_v22 = vadd.f32 %v2868_v17, %v2797_v11  ;;  %v7523_v17 = vld [vmem:[#allocation15_spill] sm:$0xff] }
 0x40f   :  { %v2964_v4 = vadd.f32 %v6402_v2, %v2956_v9  ;;  %4559 = vmatmul.msk.f32.gmra.mxu0 %vm147_vm2, %v6546_v28  ;;  %v4697_v9 = vld [vmem:[%s7338_s3 + $0xa0] sm:$0xff] }
 0x410   :  { %3201 = vmatpush.msrb.mxu2 %v4495_v19  ;;  %v7501_v19 = vld [vmem:[#allocation18_spill] sm:$0xff] }
 0x411   :  { %v2972_v34 = vmax.f32 %v2964_v4, 0.0  ;;  %v7505_v4 = vld [vmem:[#allocation24_spill] sm:$0xff] }
 0x412   :  { %3202 = vmatpush.msrb.mxu2 %v4494_v60  ;;  %v7506_v60 = vld [vmem:[#allocation29_spill] sm:$0xff] }
 0x413   :  { %4483 = vmatmul.msk.f32.vlgmr.msra.gmra.mxu1 %vm147_vm2, %v2972_v34  ;;  %v7509_v34 = vld [vmem:[#allocation30_spill] sm:$0xff] }
 0x414   :  { %v2943_v57 = vpop.f32.mrf.mxu0  ;;  %3220 = vmatpush.msra.mxu1 %v4682_v46 }
 0x415   :  { %v2957_v36 = vadd.f32 %v2943_v57, %v2876_v53  ;;  %v7512_v57 = vld [vmem:[#allocation12_spill] sm:$0xff] }
 0x416   :  { %3221 = vmatpush.msra.mxu1 %v4683_v24  ;;  %v7514_v24 = vld [vmem:[#allocation4_spill] sm:$0xff] }
 0x417   :  { %v2965_v16 = vadd.f32 %v6402_v2, %v2957_v36  ;;  %4560 = vmatmul.msk.f32.gmra.mxu0 %vm147_vm2, %v6560_v25 }
 0x418   :  { %3222 = vmatpush.msra.mxu1 %v4684_v50  ;;  %v7516_v50 = vld [vmem:[#allocation26_spill] sm:$0xff] }
 0x419   :  { %v2973_v29 = vmax.f32 %v2965_v16, 0.0  ;;  %v7515_v16 = vld [vmem:[#allocation5_spill] sm:$0xff] }
 0x41a   :  { %3223 = vmatpush.msra.mxu1 %v4685_v59 }
 0x41b   :  { %4488 = vmatmul.msk.f32.vlgmr.msra.gmra.mxu2 %vm147_vm2, %v2973_v29  ;;  %v4700_v29 = vld [vmem:[#allocation2 + $0x150] sm:$0xff] }
 0x41c   :  { %v2946_v49 = vpop.f32.mrf.mxu0  ;;  %3261 = vmatpush.msra.mxu2 %v4686_v38  ;;  %v4701_v38 = vld [vmem:[#allocation2 + $0x158] sm:$0xff] }
 0x41d   :  { %v2958_v12 = vadd.f32 %v2946_v49, %v2877_v18 }
 0x41e   :  { %3262 = vmatpush.msra.mxu2 %v4687_v33  ;;  %v7521_v33 = vld [vmem:[#allocation25_spill] sm:$0xff] }
 0x41f   :  { %v2966_v48 = vadd.f32 %v6402_v2, %v2958_v12  ;;  %4561 = vmatmul.msk.f32.gmra.mxu0 %vm147_vm2, %v6576_v1 }
 0x420   :  { %3263 = vmatpush.msra.mxu2 %v4688_v23  ;;  %v7522_v23 = vld [vmem:[#allocation9_spill] sm:$0xff] }
 0x421   :  { %v2974_v63 = vmax.f32 %v2966_v48, 0.0 }
 0x422   :  { %3264 = vmatpush.msra.mxu2 %v4689_v45  ;;  %v7524_v45 = vld [vmem:[#allocation31_spill] sm:$0xff] }
 0x423   :  { %4493 = vmatmul.msk.f32.vlgmr.msrb.gmra.mxu1 %vm147_vm2, %v2974_v63 }
 0x424   :  { %v2949_v6 = vpop.f32.mrf.mxu0  ;;  %3400 = vmatpush.msrb.mxu1 %v4690_v51 }
 0x425   :  { %v2959_v13 = vadd.f32 %v2949_v6, %v2878_v22 }
 0x426   :  { %3401 = vmatpush.msrb.mxu1 %v4691_v58 }
 0x427   :  { %v2967_v43 = vadd.f32 %v6402_v2, %v2959_v13  ;;  %4562 = vmatmul.msk.f32.gmra.mxu0 %vm147_vm2, %v6882_v35  ;;  %v4694_v2 = vld [vmem:[%s7338_s3 + $0xb8] sm:$0xff] }
 0x428   :  { %3402 = vmatpush.msrb.mxu1 %v4692_v15 }
 0x429   :  { %v2975_v3 = vmax.f32 %v2967_v43, 0.0  ;;  %v7525_v43 = vld [vmem:[#allocation19_spill] sm:$0xff] }
 0x42a   :  { %3403 = vmatpush.msrb.mxu1 %v4693_v55 }
 0x42b   :  { %4498 = vmatmul.msk.f32.vlgmr.msrb.gmra.mxu2 %vm147_vm2, %v2975_v3  ;;  %4499 = vmatmul.msk.f32.vlgmr.msra.gmra.mxu1 %vm147_vm2, %v6477_v41 }
 0x42c   :  { %3449 = vmatpush.msrb.mxu2 %v4694_v2  ;;  %3692 = vmatpush.msra.mxu1 %v6389_v52  ;;  %v7500_v52 = vld [vmem:[#allocation20_spill] sm:$0xff]  ;;  %v7526_v2 = vld [vmem:[#allocation11_spill] sm:$0xff] }
 0x42e   :  { %3450 = vmatpush.msrb.mxu2 %v4695_v27  ;;  %3693 = vmatpush.msra.mxu1 %v6396_v5  ;;  %v7502_v5 = vld [vmem:[#allocation21_spill] sm:$0xff] }
 0x430   :  { %3451 = vmatpush.msrb.mxu2 %v4696_v61  ;;  %3694 = vmatpush.msra.mxu1 %v6409_v56  ;;  %v7503_v56 = vld [vmem:[#allocation22_spill] sm:$0xff]  ;;  %v7527_v61 = vld [vmem:[#allocation16_spill] sm:$0xff] }
 0x432   :  { %3452 = vmatpush.msrb.mxu2 %v4697_v9  ;;  %3695 = vmatpush.msra.mxu1 %v7500_v52 }
 0x433   :  { %4500 = vmatmul.msk.f32.gmra.mxu1 %vm147_vm2, %v7501_v19  ;;  %4507 = vmatmul.msk.f32.vlgmr.msra.gmra.mxu2 %vm147_vm2, %v4698_v44 }
 0x43b   :  { %4501 = vmatmul.msk.f32.gmra.mxu1 %vm147_vm2, %v7502_v5  ;;  %4508 = vmatmul.msk.f32.gmra.mxu2 %vm147_vm2, %v6477_v41  ;;  %v7507_v41 = vld [vmem:[#allocation7_spill] sm:$0xff] }
 0x43c   :  { %v1494_v10 = vadd.f32 %v7508_v32, %v7507_v41 }
 0x43e   :  { %v1524_v7 = vadd.f32 %v7510_v42, %v1494_v10 }
 0x440   :  { %v1553_v53 = vadd.f32 %v7511_v26, %v1524_v7  ;;  %v7005_v7 = vpop.f32.mrf.mxu0 }
 0x442   :  { %v1582_v46 = vadd.f32 %v7512_v57, %v1553_v53 }
 0x443   :  { %4502 = vmatmul.msk.f32.gmra.mxu1 %vm147_vm2, %v7503_v56  ;;  %4509 = vmatmul.msk.f32.gmra.mxu2 %vm147_vm2, %v7501_v19 }
 0x444   :  { %v1611_v36 = vadd.f32 %v7513_v21, %v1582_v46 }
 0x446   :  { %v1640_v30 = vadd.f32 %v7514_v24, %v1611_v36 }
 0x448   :  { %v1669_v40 = vadd.f32 %v7515_v16, %v1640_v30  ;;  %v3655_v30 = vld [vmem:[#allocation2 + $0x1d8] sm:$0xff] }
 0x44a   :  { %v2235_v8 = vadd.f32 %v7516_v50, %v1669_v40  ;;  %v4574_v50 = vld [vmem:[%s7340_s5 + $0x318] sm:$0xff] }
 0x44b   :  { %4503 = vmatmul.msk.f32.gmra.mxu1 %vm147_vm2, %v7504_v62  ;;  %4510 = vmatmul.msk.f32.gmra.mxu2 %vm147_vm2, %v7502_v5  ;;  %v7528_v5 = vld [vmem:[#allocation17_spill] sm:$0xff] }
 0x44c   :  { %v2264_v59 = vadd.f32 %v7517_v0, %v2235_v8  ;;  %3765 = vmatpush.msra.mxu2 %v4574_v50  ;;  %v4587_v50 = vld [vmem:[%s7340_s5 + $0x368] sm:$0xff] }
 0x44e   :  { %v2293_v18 = vadd.f32 %v7518_v31, %v2264_v59  ;;  %v4579_v59 = vld [vmem:[%s7340_s5 + $0x338] sm:$0xff] }
 0x44f   :  { %3794 = vmatpush.msrb.mxu3 %v4579_v59 }
 0x450   :  { %v2322_v49 = vadd.f32 %v7519_v39, %v2293_v18 }
 0x452   :  { %v2351_v12 = vadd.f32 %v7520_v47, %v2322_v49  ;;  %v4573_v49 = vld [vmem:[%s7340_s5 + $0x310] sm:$0xff] }
 0x453   :  { %4504 = vmatmul.msk.f32.gmra.mxu1 %vm147_vm2, %v7505_v4  ;;  %4511 = vmatmul.msk.f32.gmra.mxu2 %vm147_vm2, %v7503_v56 }
 0x454   :  { %v2380_v11 = vadd.f32 %v7521_v33, %v2351_v12  ;;  %3766 = vmatpush.msra.mxu2 %v4573_v49  ;;  %v4578_v33 = vld [vmem:[%s7340_s5 + $0x330] sm:$0xff]  ;;  %v4586_v49 = vld [vmem:[%s7340_s5 + $0x360] sm:$0xff] }
 0x455   :  { %3795 = vmatpush.msrb.mxu3 %v4578_v33 }
 0x456   :  { %v2409_v63 = vadd.f32 %v7522_v23, %v2380_v11 }
 0x458   :  { %v2438_v22 = vadd.f32 %v7524_v45, %v2409_v63 }
 0x45b   :  { %4505 = vmatmul.msk.f32.gmra.mxu1 %vm147_vm2, %v7506_v60  ;;  %4512 = vmatmul.msk.f32.gmra.mxu2 %vm147_vm2, %v7504_v62  ;;  %v7529_v62 = vld [vmem:[#allocation32_spill] sm:$0xff] }
 0x463   :  { %4506 = vmatmul.msk.f32.gmra.mxu1 %vm147_vm2, %v7509_v34  ;;  %4513 = vmatmul.msk.f32.gmra.mxu2 %vm147_vm2, %v7505_v4 }
 0x46b   :  { %4514 = vmatmul.msk.f32.gmra.mxu2 %vm147_vm2, %v7506_v60  ;;  %4531 = vmatmul.msk.f32.vlgmr.msrb.gmra.mxu1 %vm147_vm2, %v4699_v54 }
 0x470   :  { %v3001_v48 = vpop.f32.mrf.mxu1 }
 0x471   :  { %v3004_v51 = vadd.f32 %v3001_v48, %v2438_v22 }
 0x473   :  { %4532 = vmatmul.msk.f32.gmra.mxu1 %vm147_vm2, %v4700_v29  ;;  %4539 = vmatmul.msk.f32.vlgmr.msrb.gmra.mxu2 %vm147_vm2, %v4700_v29 }
 0x47b   :  { %4533 = vmatmul.msk.f32.gmra.mxu1 %vm147_vm2, %v4701_v38  ;;  %4540 = vmatmul.msk.f32.gmra.mxu2 %vm147_vm2, %v4701_v38 }
 0x47e   :  { %v3030_v6 = vpop.f32.mrf.mxu2 }
 0x47f   :  { %v3033_v13 = vadd.f32 %v3030_v6, %v3004_v51  ;;  %v4571_v6 = vld [vmem:[%s7340_s5 + $0x300] sm:$0xff] }
 0x480   :  { %v3059_v58 = vpop.f32.mrf.mxu1 }
 0x481   :  { %v3062_v15 = vadd.f32 %v3059_v58, %v3033_v13  ;;  %v4577_v13 = vld [vmem:[%s7340_s5 + $0x328] sm:$0xff] }
 0x482   :  { %3796 = vmatpush.msrb.mxu3 %v4577_v13 }
 0x483   :  { %4534 = vmatmul.msk.f32.gmra.mxu1 %vm147_vm2, %v7523_v17  ;;  %4541 = vmatmul.msk.f32.gmra.mxu2 %vm147_vm2, %v7523_v17  ;;  %v4572_v17 = vld [vmem:[%s7340_s5 + $0x308] sm:$0xff] }
 0x484   :  { %3767 = vmatpush.msra.mxu2 %v4572_v17 }
 0x486   :  { %3768 = vmatpush.msra.mxu2 %v4571_v6 }
 0x48b   :  { %4535 = vmatmul.msk.f32.gmra.mxu1 %vm147_vm2, %v7525_v43  ;;  %4542 = vmatmul.msk.f32.gmra.mxu2 %vm147_vm2, %v7525_v43 }
 0x48e   :  { %v3088_v3 = vpop.f32.mrf.mxu2 }
 0x48f   :  { %v3091_v55 = vadd.f32 %v3088_v3, %v3062_v15  ;;  %v4576_v15 = vld [vmem:[%s7340_s5 + $0x320] sm:$0xff] }
 0x490   :  { %v3117_v27 = vpop.f32.mrf.mxu1  ;;  %3797 = vmatpush.msrb.mxu3 %v4576_v15 }
 0x491   :  { %v3120_v9 = vadd.f32 %v3117_v27, %v3091_v55 }
 0x493   :  { %4536 = vmatmul.msk.f32.gmra.mxu1 %vm147_vm2, %v7526_v2  ;;  %4543 = vmatmul.msk.f32.gmra.mxu2 %vm147_vm2, %v7526_v2 }
 0x49b   :  { %4537 = vmatmul.msk.f32.gmra.mxu1 %vm147_vm2, %v7527_v61  ;;  %4544 = vmatmul.msk.f32.gmra.mxu2 %vm147_vm2, %v7527_v61  ;;  %v4584_v61 = vld [vmem:[%s7340_s5 + $0x358] sm:$0xff] }
 0x49c   :  { %3823 = vmatpush.msrb.mxu2 %v4584_v61  ;;  %v4593_v61 = vld [vmem:[%s7340_s5 + $0x390] sm:$0xff] }
 0x49e   :  { %v3146_v52 = vpop.f32.mrf.mxu2 }
 0x49f   :  { %v3149_v19 = vadd.f32 %v3146_v52, %v3120_v9  ;;  %v4583_v9 = vld [vmem:[%s7340_s5 + $0x350] sm:$0xff] }
 0x4a0   :  { %v3175_v44 = vpop.f32.mrf.mxu1  ;;  %3824 = vmatpush.msrb.mxu2 %v4583_v9 }
 0x4a1   :  { %v3178_v4 = vadd.f32 %v3175_v44, %v3149_v19  ;;  %v4582_v44 = vld [vmem:[%s7340_s5 + $0x348] sm:$0xff] }
 0x4a2   :  { %3825 = vmatpush.msrb.mxu2 %v4582_v44 }
 0x4a3   :  { %4538 = vmatmul.msk.f32.gmra.mxu1 %vm147_vm2, %v7528_v5  ;;  %4545 = vmatmul.msk.f32.gmra.mxu2 %vm147_vm2, %v7528_v5 }
 0x4a8   :  { %v6985_v56 = vpop.f32.mrf.mxu1 }
 0x4ab   :  { %4546 = vmatmul.msk.f32.gmra.mxu2 %vm147_vm2, %v7529_v62  ;;  %4563 = vmatmul.msk.f32.vlgmr.msra.gmra.mxu1 %vm147_vm2, %v6508_v14  ;;  %v3307_v14 = vpop.f32.mrf.mxu3 }
 0x4ae   :  { %v3204_v60 = vpop.f32.mrf.mxu2 }
 0x4af   :  { %v6991_v41 = vadd.f32 %v3204_v60, %v3178_v4 }
 0x4b0   :  { %v6993_v32 = vpop.f32.mrf.mxu1 }
 0x4b3   :  { %4564 = vmatmul.msk.f32.gmra.mxu1 %vm147_vm2, %v6520_v20  ;;  %v7011_v20 = vpop.f32.mrf.mxu3 }
 0x4b6   :  { %v3266_v34 = vpop.f32.mrf.mxu2 }
 0x4b7   :  { %v3267_v58 = vadd.f32 %v3266_v34, %v6985_v56  ;;  %v4581_v56 = vld [vmem:[%s7340_s5 + $0x340] sm:$0xff] }
 0x4b8   :  { %v6997_v10 = vpop.f32.mrf.mxu1  ;;  %3826 = vmatpush.msrb.mxu2 %v4581_v56 }
 0x4b9   :  { %v3331_v55 = vadd.f32 %v3307_v14, %v3267_v58 }
 0x4bb   :  { %4565 = vmatmul.msk.f32.gmra.mxu1 %vm147_vm2, %v6532_v37  ;;  %v7015_v37 = vpop.f32.mrf.mxu0  ;;  %v3380_v19 = vadd.f32 %v7005_v7, %v3331_v55 }
 0x4be   :  { %v3269_v26 = vpop.f32.mrf.mxu2 }
 0x4bf   :  { %v3270_v52 = vadd.f32 %v3269_v26, %v6993_v32  ;;  %v4589_v32 = vld [vmem:[%s7340_s5 + $0x378] sm:$0xff]  ;;  %v4588_v26 = vld [vmem:[%s7340_s5 + $0x370] sm:$0xff] }
 0x4c0   :  { %v7001_v42 = vpop.f32.mrf.mxu1  ;;  %3852 = vmatpush.msra.mxu3 %v4589_v32 }
 0x4c1   :  { %v3332_v4 = vadd.f32 %v7011_v20, %v3270_v52 }
 0x4c2   :  { %3853 = vmatpush.msra.mxu3 %v4588_v26  ;;  %v4598_v26 = vld [vmem:[%s7340_s5 + $0x3b0] sm:$0xff] }
 0x4c3   :  { %4566 = vmatmul.msk.f32.gmra.mxu1 %vm147_vm2, %v6546_v28  ;;  %v7021_v28 = vpop.f32.mrf.mxu3  ;;  %v7025_v21 = vpop.f32.mrf.mxu0  ;;  %v3381_v20 = vadd.f32 %v7015_v37, %v3332_v4 }
 0x4c4   :  { %3854 = vmatpush.msra.mxu3 %v4587_v50 }
 0x4c6   :  { %v7017_v46 = vpop.f32.mrf.mxu2  ;;  %3855 = vmatpush.msra.mxu3 %v4586_v49  ;;  %v4596_v49 = vld [vmem:[%s7340_s5 + $0x3a0] sm:$0xff] }
 0x4c8   :  { %v7007_v53 = vpop.f32.mrf.mxu1 }
 0x4cb   :  { %4567 = vmatmul.msk.f32.gmra.mxu1 %vm147_vm2, %v6560_v25  ;;  %v7033_v24 = vpop.f32.mrf.mxu3  ;;  %v7036_v16 = vpop.f32.mrf.mxu0 }
 0x4ce   :  { %v7029_v25 = vpop.f32.mrf.mxu2 }
 0x4cf   :  { %v3276_v13 = vadd.f32 %v7029_v25, %v7001_v42 }
 0x4d0   :  { %v7013_v57 = vpop.f32.mrf.mxu1 }
 0x4d1   :  { %v3334_v42 = vadd.f32 %v7033_v24, %v3276_v13 }
 0x4d3   :  { %4568 = vmatmul.msk.f32.gmra.mxu1 %vm147_vm2, %v6576_v1  ;;  %v7045_v8 = vpop.f32.mrf.mxu0  ;;  %v3383_v44 = vadd.f32 %v7036_v16, %v3334_v42  ;;  %v4609_v42 = vld [vmem:[%s7340_s5 + $0x3f8] sm:$0xff] }
 0x4d6   :  { %v7038_v1 = vpop.f32.mrf.mxu2 }
 0x4d7   :  { %v3279_v24 = vadd.f32 %v7038_v1, %v7007_v53 }
 0x4d8   :  { %v7023_v54 = vpop.f32.mrf.mxu1 }
 0x4db   :  { %4569 = vmatmul.msk.f32.gmra.mxu1 %vm147_vm2, %v6882_v35  ;;  %v7043_v35 = vpop.f32.mrf.mxu3  ;;  %v7056_v39 = vpop.f32.mrf.mxu0 }
 0x4dc   :  { %v3335_v53 = vadd.f32 %v7043_v35, %v3279_v24 }
 0x4de   :  { %v7047_v29 = vpop.f32.mrf.mxu2  ;;  %v3384_v35 = vadd.f32 %v7045_v8, %v3335_v53 }
 0x4e0   :  { %v7031_v36 = vpop.f32.mrf.mxu1 }
 0x4e3   :  { %4570 = vmatmul.msk.f32.gmra.mxu1 %vm147_vm2, %v3655_v30  ;;  %v7052_v31 = vpop.f32.mrf.mxu3  ;;  %v7070_v11 = vpop.f32.mrf.mxu0  ;;  %v3273_v30 = vadd.f32 %v7017_v46, %v6997_v10 }
 0x4e5   :  { %v3333_v33 = vadd.f32 %v7021_v28, %v3273_v30 }
 0x4e6   :  { %v7061_v38 = vpop.f32.mrf.mxu2 }
 0x4e7   :  { %v3382_v58 = vadd.f32 %v7025_v21, %v3333_v33 }
 0x4e8   :  { %v3405_v40 = vpop.f32.mrf.mxu1 }
 0x4e9   :  { %v3429_v5 = vadd.f32 %v3405_v40, %v3380_v19 }
 0x4eb   :  { %v7063_v47 = vpop.f32.mrf.mxu3  ;;  %v7081_v45 = vpop.f32.mrf.mxu0 }
 0x4ee   :  { %v7072_v48 = vpop.f32.mrf.mxu2 }
 0x4f0   :  { %v3408_v0 = vpop.f32.mrf.mxu1 }
 0x4f1   :  { %v3430_v59 = vadd.f32 %v3408_v0, %v3381_v20  ;;  %v4597_v20 = vld [vmem:[%s7340_s5 + $0x3a8] sm:$0xff] }
 0x4f3   :  { %v7076_v63 = vpop.f32.mrf.mxu3  ;;  %v3616_v3 = vpop.f32.mrf.mxu0 }
 0x4f6   :  { %v3454_v22 = vpop.f32.mrf.mxu2 }
 0x4f7   :  { %v3478_v60 = vadd.f32 %v3454_v22, %v3429_v5 }
 0x4f8   :  { %v7054_v18 = vpop.f32.mrf.mxu1 }
 0x4fb   :  { %v3535_v43 = vpop.f32.mrf.mxu3  ;;  %v3619_v14 = vpop.f32.mrf.mxu0 }
 0x4fc   :  { %v3559_v40 = vadd.f32 %v3535_v43, %v3478_v60  ;;  %v7136_v43 = vld [vmem:[%s7339_s4] ss:$0 sm:$0xff] }
 0x4fe   :  { %v3457_v2 = vpop.f32.mrf.mxu2  ;;  %v3640_v22 = vadd.f32 %v3616_v3, %v3559_v40  ;;  %v3431_v3 = vadd.f32 %v7054_v18, %v3382_v58  ;;  %v4592_v18 = vld [vmem:[%s7340_s5 + $0x388] sm:$0xff]  ;;  %v3282_v40 = vadd.f32 %v7047_v29, %v7013_v57 }
 0x4ff   :  { %v3479_v17 = vadd.f32 %v3457_v2, %v3430_v59  ;;  %v4594_v2 = vld [vmem:[%s7340_s5 + $0x398] sm:$0xff]  ;;  %v4602_v58 = vld [vmem:[%s7340_s5 + $0x3c8] sm:$0xff] }
 0x500   :  { %v7065_v12 = vpop.f32.mrf.mxu1  ;;  %v3336_v8 = vadd.f32 %v7052_v31, %v3282_v40  ;;  %v3285_v31 = vadd.f32 %v7061_v38, %v7023_v54 }
 0x501   :  { %v3432_v60 = vadd.f32 %v7065_v12, %v3383_v44 }
 0x502   :  { %v3337_v54 = vadd.f32 %v7063_v47, %v3285_v31  ;;  %v4607_v47 = vld [vmem:[%s7340_s5 + $0x3e8] sm:$0xff]  ;;  %v3987_v31 = vld [vmem:[%s7341_s7 + $0x20] sm:$0xff] }
 0x503   :  { %v3538_v62 = vpop.f32.mrf.mxu3  ;;  %v3622_v6 = vpop.f32.mrf.mxu0 }
 0x504   :  { %v3560_v0 = vadd.f32 %v3538_v62, %v3479_v17  ;;  %v4591_v62 = vld [vmem:[%s7340_s5 + $0x380] sm:$0xff]  ;;  %v3386_v24 = vadd.f32 %v7070_v11, %v3337_v54  ;;  %v4037_v54 = vld [vmem:[%s7344_s9 + $0x68] sm:$0xff] }
 0x506   :  { %v3460_v7 = vpop.f32.mrf.mxu2  ;;  %v3641_v21 = vadd.f32 %v3619_v14, %v3560_v0  ;;  %v4599_v14 = vld [vmem:[%s7340_s5 + $0x3b8] sm:$0xff]  ;;  %v3385_v0 = vadd.f32 %v7056_v39, %v3336_v8  ;;  %v3996_v8 = vld [vmem:[%s7341_s7 + $0x68] sm:$0xff] }
 0x507   :  { %v3480_v25 = vadd.f32 %v3460_v7, %v3431_v3  ;;  %v4601_v3 = vld [vmem:[%s7340_s5 + $0x3c0] sm:$0xff] }
 0x508   :  { %v7074_v23 = vpop.f32.mrf.mxu1 }
 0x509   :  { %v3433_v17 = vadd.f32 %v7074_v23, %v3384_v35 }
 0x50b   :  { %v3541_v10 = vpop.f32.mrf.mxu3  ;;  %v3625_v4 = vpop.f32.mrf.mxu0 }
 0x50c   :  { %v3561_v5 = vadd.f32 %v3541_v10, %v3480_v25  ;;  %v4604_v10 = vld [vmem:[%s7340_s5 + $0x3d8] sm:$0xff] }
 0x50e   :  { %v3463_v15 = vpop.f32.mrf.mxu2  ;;  %v3642_v1 = vadd.f32 %v3622_v6, %v3561_v5 }
 0x50f   :  { %v3481_v16 = vadd.f32 %v3463_v15, %v3432_v60 }
 0x510   :  { %v7086_v51 = vpop.f32.mrf.mxu1 }
 0x513   :  { %v3544_v19 = vpop.f32.mrf.mxu3  ;;  %v3628_v57 = vpop.f32.mrf.mxu0 }
 0x514   :  { %v3562_v50 = vadd.f32 %v3544_v19, %v3481_v16  ;;  %v3288_v19 = vadd.f32 %v7072_v48, %v7031_v36 }
 0x516   :  { %v3466_v7 = vpop.f32.mrf.mxu2  ;;  %v3338_v60 = vadd.f32 %v7076_v63, %v3288_v19 }
 0x517   :  { %v3482_v29 = vadd.f32 %v3466_v7, %v3433_v17 }
 0x518   :  { %v7095_v27 = vpop.f32.mrf.mxu1  ;;  %v3387_v7 = vadd.f32 %v7081_v45, %v3338_v60  ;;  %v4028_v60 = vld [vmem:[%s7344_s9 + $0x20] sm:$0xff] }
 0x51b   :  { %v3547_v33 = vpop.f32.mrf.mxu3 }
 0x51e   :  { %v3469_v6 = vpop.f32.mrf.mxu2 }
 0x520   :  { %v7112_v34 = vpop.f32.mrf.mxu1 }
 0x523   :  { %v3550_v25 = vpop.f32.mrf.mxu3 }
 0x528   :  { %v3697_v46 = vpop.f32.mrf.mxu1 }
 0x529   :  { %v3721_v37 = vadd.f32 %v3697_v46, %v3640_v22  ;;  %v3643_v46 = vadd.f32 %v3625_v4, %v3562_v50 }
 0x52b   :  { %v3729_v28 = vadd.f32 %v7136_v43, %v3721_v37  ;;  %v4603_v37 = vld [vmem:[%s7340_s5 + $0x3d0] sm:$0xff]  ;;  %v3553_v48 = vpop.f32.mrf.mxu3 }
 0x52d   :  { %v3737_v55 = vmax.f32 %v3729_v28, 0.0  ;;  %v3563_v28 = vadd.f32 %v3547_v33, %v3482_v29  ;;  %v3995_v29 = vld [vmem:[%s7341_s7 + $0x60] sm:$0xff] }
 0x52f   :  { %4575 = vmatmul.msk.f32.vlgmr.msra.gmra.mxu2 %vm147_vm2, %v3737_v55  ;;  %v3434_v55 = vadd.f32 %v7086_v51, %v3385_v0  ;;  %v3644_v38 = vadd.f32 %v3628_v57, %v3563_v28  ;;  %v3998_v51 = vld [vmem:[%s7341_s7 + $0x78] sm:$0xff]  ;;  %v3997_v57 = vld [vmem:[%s7341_s7 + $0x70] sm:$0xff] }
 0x530   :  { %v3700_v9 = vpop.f32.mrf.mxu1  ;;  %3881 = vmatpush.msra.mxu2 %v4594_v2  ;;  %4003 = vmatpush.msra.mxu0 %v3998_v51  ;;  %v3986_v0 = vld [vmem:[%s7341_s7 + $0x18] sm:$0xff]  ;;  %v3985_v28 = vld [vmem:[%s7341_s7 + $0x10] sm:$0xff] }
 0x531   :  { %v3722_v52 = vadd.f32 %v3700_v9, %v3641_v21  ;;  %v3483_v39 = vadd.f32 %v3469_v6, %v3434_v55  ;;  %v4608_v21 = vld [vmem:[%s7340_s5 + $0x3f0] sm:$0xff]  ;;  %v3991_v6 = vld [vmem:[%s7341_s7 + $0x40] sm:$0xff] }
 0x532   :  { %3882 = vmatpush.msra.mxu2 %v4593_v61  ;;  %4004 = vmatpush.msra.mxu0 %v3997_v57  ;;  %v3983_v55 = vld [vmem:[%s7341_s7] sm:$0xff]  ;;  %v4034_v51 = vld [vmem:[%s7344_s9 + $0x50] sm:$0xff] }
 0x533   :  { %v3730_v56 = vadd.f32 %v7136_v43, %v3722_v52  ;;  %v3631_v52 = vpop.f32.mrf.mxu0  ;;  %v3564_v44 = vadd.f32 %v3550_v25, %v3483_v39  ;;  %v3556_v35 = vpop.f32.mrf.mxu3  ;;  %v4036_v39 = vld [vmem:[%s7344_s9 + $0x60] sm:$0xff] }
 0x534   :  { %3883 = vmatpush.msra.mxu2 %v4592_v18  ;;  %v3472_v18 = vpop.f32.mrf.mxu2  ;;  %4005 = vmatpush.msra.mxu0 %v3996_v8 }
 0x535   :  { %v3738_v32 = vmax.f32 %v3730_v56, 0.0  ;;  %v4606_v56 = vld [vmem:[%s7340_s5 + $0x3e0] sm:$0xff]  ;;  %v3645_v36 = vadd.f32 %v3631_v52, %v3564_v44 }
 0x536   :  { %3884 = vmatpush.msra.mxu2 %v4591_v62  ;;  %v3435_v62 = vadd.f32 %v7095_v27, %v3386_v24  ;;  %v3436_v27 = vadd.f32 %v7112_v34, %v3387_v7  ;;  %4006 = vmatpush.msra.mxu0 %v3995_v29  ;;  %v4032_v52 = vld [vmem:[%s7344_s9 + $0x40] sm:$0xff]  ;;  %v4031_v24 = vld [vmem:[%s7344_s9 + $0x38] sm:$0xff] }
 0x537   :  { %4580 = vmatmul.msk.f32.vlgmr.msrb.gmra.mxu3 %vm147_vm2, %v3738_v32 }
 0x538   :  { %v3703_v30 = vpop.f32.mrf.mxu1  ;;  %3910 = vmatpush.msrb.mxu3 %v4599_v14  ;;  %v3484_v32 = vadd.f32 %v3472_v18, %v3435_v62  ;;  %v4029_v62 = vld [vmem:[%s7344_s9 + $0x28] sm:$0xff] }
 0x539   :  { %v3723_v12 = vadd.f32 %v3703_v30, %v3642_v1 }
 0x53a   :  { %3911 = vmatpush.msrb.mxu3 %v4598_v26  ;;  %v3565_v53 = vadd.f32 %v3553_v48, %v3484_v32  ;;  %v4027_v48 = vld [vmem:[%s7344_s9 + $0x18] sm:$0xff] }
 0x53b   :  { %v3731_v59 = vadd.f32 %v7136_v43, %v3723_v12  ;;  %v3634_v1 = vpop.f32.mrf.mxu0 }
 0x53c   :  { %3912 = vmatpush.msrb.mxu3 %v4597_v20  ;;  %v3475_v26 = vpop.f32.mrf.mxu2  ;;  %v3646_v63 = vadd.f32 %v3634_v1, %v3565_v53 }
 0x53d   :  { %v3739_v22 = vmax.f32 %v3731_v59, 0.0  ;;  %v3485_v12 = vadd.f32 %v3475_v26, %v3436_v27  ;;  %v4026_v26 = vld [vmem:[%s7344_s9 + $0x10] sm:$0xff]  ;;  %v4025_v27 = vld [vmem:[%s7344_s9 + $0x8] sm:$0xff] }
 0x53e   :  { %3913 = vmatpush.msrb.mxu3 %v4596_v49 }
 0x53f   :  { %4585 = vmatmul.msk.f32.vlgmr.msrb.gmra.mxu2 %vm147_vm2, %v3739_v22  ;;  %v3566_v50 = vadd.f32 %v3556_v35, %v3485_v12  ;;  %v4618_v12 = vld [vmem:[%s7343_s8] ss:$0 sm:$0xff] }
 0x540   :  { %v3706_v13 = vpop.f32.mrf.mxu1  ;;  %3939 = vmatpush.msrb.mxu2 %v4604_v10  ;;  %v4619_v35 = vld [vmem:[%s7345_s10] ss:$0 sm:$0xff] }
 0x541   :  { %v3724_v23 = vadd.f32 %v3706_v13, %v3643_v46  ;;  %v3993_v46 = vld [vmem:[%s7341_s7 + $0x50] sm:$0xff]  ;;  %v3990_v13 = vld [vmem:[%s7341_s7 + $0x38] sm:$0xff] }
 0x542   :  { %3940 = vmatpush.msrb.mxu2 %v4603_v37  ;;  %v3992_v37 = vld [vmem:[%s7341_s7 + $0x48] sm:$0xff] }
 0x543   :  { %v3732_v15 = vadd.f32 %v7136_v43, %v3724_v23  ;;  %v3637_v45 = vpop.f32.mrf.mxu0  ;;  %v3989_v23 = vld [vmem:[%s7341_s7 + $0x30] sm:$0xff] }
 0x544   :  { %3941 = vmatpush.msrb.mxu2 %v4602_v58  ;;  %v3647_v33 = vadd.f32 %v3637_v45, %v3566_v50  ;;  %v3988_v58 = vld [vmem:[%s7341_s7 + $0x28] sm:$0xff] }
 0x545   :  { %v3740_v2 = vmax.f32 %v3732_v15, 0.0  ;;  %v3984_v15 = vld [vmem:[%s7341_s7 + $0x8] sm:$0xff] }
 0x546   :  { %3942 = vmatpush.msrb.mxu2 %v4601_v3 }
 0x547   :  { %4590 = vmatmul.msk.f32.vlgmr.msra.gmra.mxu3 %vm147_vm2, %v3740_v2  ;;  %v4039_v2 = vld [vmem:[%s7344_s9 + $0x78] sm:$0xff] }
 0x548   :  { %v3709_v61 = vpop.f32.mrf.mxu1  ;;  %3968 = vmatpush.msra.mxu3 %v4609_v42  ;;  %v4038_v42 = vld [vmem:[%s7344_s9 + $0x70] sm:$0xff] }
 0x549   :  { %v3725_v9 = vadd.f32 %v3709_v61, %v3644_v38 }
 0x54a   :  { %3969 = vmatpush.msra.mxu3 %v4608_v21  ;;  %v4035_v21 = vld [vmem:[%s7344_s9 + $0x58] sm:$0xff] }
 0x54b   :  { %v3733_v5 = vadd.f32 %v7136_v43, %v3725_v9  ;;  %v4033_v9 = vld [vmem:[%s7344_s9 + $0x48] sm:$0xff] }
 0x54c   :  { %3970 = vmatpush.msra.mxu3 %v4607_v47 }
 0x54d   :  { %v3741_v4 = vmax.f32 %v3733_v5, 0.0  ;;  %v4030_v5 = vld [vmem:[%s7344_s9 + $0x30] sm:$0xff] }
 0x54e   :  { %3971 = vmatpush.msra.mxu3 %v4606_v56 }
 0x54f   :  { %4595 = vmatmul.msk.f32.vlgmr.msra.gmra.mxu2 %vm147_vm2, %v3741_v4 }
 0x550   :  { %v3712_v11 = vpop.f32.mrf.mxu1  ;;  %4044 = vmatpush.msra.mxu2 %v4039_v2 }
 0x551   :  { %v3726_v14 = vadd.f32 %v3712_v11, %v3645_v36 }
 0x552   :  { %4045 = vmatpush.msra.mxu2 %v4038_v42 }
 0x553   :  { %v3734_v16 = vadd.f32 %v7136_v43, %v3726_v14  ;;  %v4617_v14 = vld [vmem:[%s7342_s6] ss:$0 sm:$0xff] }
 0x554   :  { %4046 = vmatpush.msra.mxu2 %v4037_v54 }
 0x555   :  { %v3742_v30 = vmax.f32 %v3734_v16, 0.0 }
 0x556   :  { %4047 = vmatpush.msra.mxu2 %v4036_v39 }
 0x557   :  { %4600 = vmatmul.msk.f32.vlgmr.msrb.gmra.mxu3 %vm147_vm2, %v3742_v30  ;;  %v4024_v30 = vld [vmem:[%s7344_s9] sm:$0xff] }
 0x558   :  { %v3715_v20 = vpop.f32.mrf.mxu1  ;;  %4048 = vmatpush.msra.mxu2 %v4035_v21 }
 0x559   :  { %v3727_v40 = vadd.f32 %v3715_v20, %v3646_v63 }
 0x55a   :  { %4049 = vmatpush.msra.mxu2 %v4034_v51 }
 0x55b   :  { %v3735_v59 = vadd.f32 %v7136_v43, %v3727_v40 }
 0x55c   :  { %4050 = vmatpush.msra.mxu2 %v4033_v9 }
 0x55d   :  { %v3743_v49 = vmax.f32 %v3735_v59, 0.0 }
 0x55e   :  { %4051 = vmatpush.msra.mxu2 %v4032_v52 }
 0x55f   :  { %4605 = vmatmul.msk.f32.vlgmr.msrb.gmra.mxu2 %vm147_vm2, %v3743_v49 }
 0x560   :  { %v3718_v17 = vpop.f32.mrf.mxu1  ;;  %4052 = vmatpush.msra.mxu2 %v4031_v24 }
 0x561   :  { %v3728_v22 = vadd.f32 %v3718_v17, %v3647_v33 }
 0x562   :  { %4053 = vmatpush.msra.mxu2 %v4030_v5 }
 0x563   :  { %v3736_v34 = vadd.f32 %v7136_v43, %v3728_v22  ;;  %v3994_v43 = vld [vmem:[%s7341_s7 + $0x58] sm:$0xff] }
 0x564   :  { %4007 = vmatpush.msra.mxu0 %v3994_v43  ;;  %4054 = vmatpush.msra.mxu2 %v4029_v62 }
 0x565   :  { %v3744_v10 = vmax.f32 %v3736_v34, 0.0 }
 0x566   :  { %4008 = vmatpush.msra.mxu0 %v3993_v46  ;;  %4055 = vmatpush.msra.mxu2 %v4028_v60 }
 0x567   :  { %4610 = vmatmul.msk.f32.vlgmr.msra.gmra.mxu3 %vm147_vm2, %v3744_v10 }
 0x568   :  { %4009 = vmatpush.msra.mxu0 %v3992_v37  ;;  %4056 = vmatpush.msra.mxu2 %v4027_v48 }
 0x56a   :  { %4010 = vmatpush.msra.mxu0 %v3991_v6  ;;  %4057 = vmatpush.msra.mxu2 %v4026_v26 }
 0x56c   :  { %4011 = vmatpush.msra.mxu0 %v3990_v13  ;;  %4058 = vmatpush.msra.mxu2 %v4025_v27 }
 0x56e   :  { %4012 = vmatpush.msra.mxu0 %v3989_v23  ;;  %4059 = vmatpush.msra.mxu2 %v4024_v30 }
 0x570   :  { %4013 = vmatpush.msra.mxu0 %v3988_v58 }
 0x572   :  { %4014 = vmatpush.msra.mxu0 %v3987_v31 }
 0x574   :  { %4015 = vmatpush.msra.mxu0 %v3986_v0 }
 0x576   :  { %4016 = vmatpush.msra.mxu0 %v3985_v28 }
 0x578   :  { %4017 = vmatpush.msra.mxu0 %v3984_v15 }
 0x57a   :  { %4018 = vmatpush.msra.mxu0 %v3983_v55 }
 0x5b2   :  { %v3770_v3 = vpop.f32.mrf.mxu2 }
 0x5b3   :  { %v3773_v47 = vadd.f32 %v3770_v3, %v6991_v41 }
 0x5ba   :  { %v3799_v25 = vpop.f32.mrf.mxu3 }
 0x5bb   :  { %v3802_v19 = vadd.f32 %v3799_v25, %v3773_v47 }
 0x5c2   :  { %v3828_v38 = vpop.f32.mrf.mxu2 }
 0x5c3   :  { %v3831_v44 = vadd.f32 %v3828_v38, %v3802_v19 }
 0x5ca   :  { %v3857_v61 = vpop.f32.mrf.mxu3 }
 0x5cb   :  { %v3860_v41 = vadd.f32 %v3857_v61, %v3831_v44 }
 0x5d2   :  { %v3886_v18 = vpop.f32.mrf.mxu2 }
 0x5d3   :  { %v3889_v4 = vadd.f32 %v3886_v18, %v3860_v41 }
 0x5da   :  { %v3915_v56 = vpop.f32.mrf.mxu3 }
 0x5db   :  { %v3918_v36 = vadd.f32 %v3915_v56, %v3889_v4 }
 0x5e2   :  { %v3944_v32 = vpop.f32.mrf.mxu2 }
 0x5e3   :  { %v3947_v11 = vadd.f32 %v3944_v32, %v3918_v36 }
 0x5ea   :  { %v3973_v7 = vpop.f32.mrf.mxu3 }
 0x5eb   :  { %v3976_v53 = vadd.f32 %v3973_v7, %v3947_v11 }
 0x5ed   :  { %v3981_v16 = vadd.f32 %v4617_v14, %v3976_v53 }
 0x5ef   :  { %v3982_v1 = vmax.f32 %v3981_v16, 0.0 }
 0x5f1   :  { %4019 = vmatmul.f32.vlgmr.msra.gmra.mxu0 %v3982_v1 }
 0x66e   :  { %v4020_v63 = vpop.f32.mrf.mxu0 }
 0x66f   :  { %v4021_v20 = vadd.f32 %v4618_v12, %v4020_v63 }
 0x671   :  { %v4023_v40 = vmax.f32 %v4021_v20, 0.0 }
 0x673   :  { %4060 = vmatmul.f32.vlgmr.msra.gmra.mxu2 %v4023_v40 }
 0x6f6   :  { %v4061_v50 = vpop.f32.mrf.mxu2 }
 0x6f7   :  { %v4062_v59 = vadd.f32 %v4619_v35, %v4061_v50 }
 0x6f9   :  { %4064 = vst [vmem:[%s7346_s11] sm:$0xff] %v4062_v59 }

</bundles_post_ra>
